<compile_context>
chip_gen: v7x
topology: tpu7x:2x2x1
jax: 0.10.0
libtpu: 0.0.40
codegen_flags: <defaults>
</compile_context>

<pallas_src>
import functools

import numpy as np

import jax
import jax.numpy as jnp
from jax.experimental import pallas as pl
from jax.experimental.pallas import tpu as pltpu

_SQRT_HALF = 0.7071067811865476


# ----------------------------------------------------------------------------
# In-kernel math helpers (elementwise only -> always lowerable on Mosaic)
# ----------------------------------------------------------------------------
def _erf_approx(x):
    # Abramowitz & Stegun 7.1.26, max abs err ~1.5e-7 (float32-level accuracy).
    a1, a2, a3, a4, a5 = 0.254829592, -0.284496736, 1.421413741, -1.453152027, 1.061405429
    p = 0.3275911
    sign = jnp.where(x >= 0, 1.0, -1.0)
    ax = jnp.abs(x)
    t = 1.0 / (1.0 + p * ax)
    poly = ((((a5 * t + a4) * t + a3) * t + a2) * t + a1) * t
    return sign * (1.0 - poly * jnp.exp(-ax * ax))


def _gelu(x):
    # exact (erf-based) GELU, matching torch.nn.GELU(approximate='none')
    return 0.5 * x * (1.0 + _erf_approx(x * _SQRT_HALF))


# ----------------------------------------------------------------------------
# Fused MixerLayer kernel: one grid step == TB batch elements
# ----------------------------------------------------------------------------
def _mixer_kernel(
        x_ref,
        ln_g_ref, ln_gt_ref,
        tm_g_ref, tm_b_ref,
        tm1_w1_ref, tm1_b1_ref, tm1_w2_ref, tm1_b2_ref,
        tm2_k1_ref, tm2_b1_ref, tm2_k2_ref, tm2_b2_ref,
        cm_g_ref, cm_b_ref, cm_k1_ref, cm_b1_ref, cm_k2_ref, cm_b2_ref,
        nm_g_ref, nm_b_ref, nm_k1_ref, nm_b1_ref, nm_k2_ref, nm_b2_ref,
        o_ref,
        vpad_ref,
        *, tb, h, w, c, k, matmul_dtype):
    wc = w * c
    pd = k // 2
    rows = tb * h

    def mm(a, bmat):   # MXU matmul in matmul_dtype with f32 accumulation
        return jnp.dot(a.astype(matmul_dtype), bmat.astype(matmul_dtype),
                       preferred_element_type=jnp.float32)

    def mmf(a, bmat):  # f32 matmul (LayerNorm statistics stay full precision)
        return jnp.dot(a, bmat, preferred_element_type=jnp.float32)

    G = ln_g_ref[...]    # (wc, w): 0/1 matrix summing each c-sized lane group
    GT = ln_gt_ref[...]  # (w, wc): broadcasts the per-group value back to its c lanes

    def layernorm(v, gamma, beta, eps=1e-5):
        # LayerNorm over c while staying in the lane-dense (rows, w*c) layout:
        # group reductions / broadcasts via tiny MXU dots (no relayouts, no XLU).
        mu = mmf(v, G) * (1.0 / c)                          # (rows, w)
        vc = v - mmf(mu, GT)                                # centered
        var = mmf(mmf(vc * vc, G) * (1.0 / c), GT)          # (rows, wc)
        return vc * jax.lax.rsqrt(var + eps) * gamma + beta

    x = x_ref[...].reshape(rows, wc).astype(jnp.float32)    # (tb*h, w*c), lane-dense

    # ---------------- token mixing ----------------
    t = layernorm(x, tm_g_ref[...], tm_b_ref[...])

    # MLP over the h axis (contraction lives in the row space): two MXU dots with
    # N = w*c per batch element.  tb is small (<=8), so the static unroll is cheap.
    w1a, b1a = tm1_w1_ref[...], tm1_b1_ref[...]
    w2a, b2a = tm1_w2_ref[...], tm1_b2_ref[...]
    if tb == 1:
        t1 = mm(w2a, _gelu(mm(w1a, t) + b1a)) + b2a                     # (h, wc)
    else:
        parts = []
        for bi in range(tb):
            ts = t[bi * h:(bi + 1) * h, :]
            parts.append(mm(w2a, _gelu(mm(w1a, ts) + b1a)) + b2a)
        t1 = jnp.concatenate(parts, axis=0)                             # (rows, wc)

    # MLP over the w axis: folded into the lane dim via kron(W^T, I_c) weights,
    # so the whole batch tile is one lane-dense dot pair (no transposes).
    u2 = _gelu(mm(t1, tm2_k1_ref[...]) + tm2_b1_ref[...])               # (rows, P*c)
    x1 = x + mm(u2, tm2_k2_ref[...]) + tm2_b2_ref[...]                  # token residual

    # ---------------- channel mixing ----------------
    t2 = layernorm(x1, cm_g_ref[...], cm_b_ref[...])
    u3 = _gelu(mm(t2, cm_k1_ref[...]) + cm_b1_ref[...])                 # (rows, w*P)
    x2 = x1 + mm(u3, cm_k2_ref[...]) + cm_b2_ref[...]                   # channel residual

    # ---------------- neighbourhood mixing ----------------
    t3 = layernorm(x2, nm_g_ref[...], nm_b_ref[...])

    # Horizontal taps + w zero-padding are folded into k dense (wc, wc) weight
    # matrices; only the h halo needs data movement.  vpad keeps pd zero halo rows
    # per image; ONLY the halo strips are zeroed (interior is fully overwritten).
    if pd > 0:
        zhalo = jnp.zeros((tb, pd, wc), vpad_ref.dtype)
        vpad_ref[:, :pd, :] = zhalo
        vpad_ref[:, pd + h:, :] = zhalo

    def conv(src, kref, bias):
        vpad_ref[:, pd:pd + h, :] = src.reshape(tb, h, wc).astype(vpad_ref.dtype)
        acc = bias
        for dy in range(k):
            win = vpad_ref[:, dy:dy + h, :].reshape(rows, wc)           # row-shifted view
            acc = acc + mm(win, kref[dy])                               # lane-dense dot
        return acc                                                       # (rows, wc)

    y = _gelu(conv(t3, nm_k1_ref, nm_b1_ref[...]))
    y = conv(y, nm_k2_ref, nm_b2_ref[...])

    o_ref[...] = (x2 + y).reshape(tb, h, wc).astype(o_ref.dtype)        # lane-dense store


# ----------------------------------------------------------------------------
# Wrapper: one gridded pallas_call for the whole layer (jit'ed)
# ----------------------------------------------------------------------------
_ORDER = ('ln_g', 'ln_gt',
          'tm_g', 'tm_b',
          'tm1_w1', 'tm1_b1', 'tm1_w2', 'tm1_b2',
          'tm2_k1', 'tm2_b1', 'tm2_k2', 'tm2_b2',
          'cm_g', 'cm_b', 'cm_k1', 'cm_b1', 'cm_k2', 'cm_b2',
          'nm_g', 'nm_b', 'nm_k1', 'nm_b1', 'nm_k2', 'nm_b2')


def _pick_batch_tile(b, h, wc, vmem_budget_bytes=16 * 1024 * 1024, cap=8):
    # Rough f32 working set per batch element: double-buffered in/out blocks,
    # the conv halo scratch and ~8 live activation slabs.
    per_b = (2 * 2 + 1 + 8) * h * wc * 4
    tb = max(1, min(b, cap, vmem_budget_bytes // max(per_b, 1)))
    # tb must divide b (no partial blocks) and, when b >= 2, keep the parallel
    # grid length >= 2 so both v7x TensorCores get work (no-op on v5e/v6e).
    while tb > 1 and (b % tb != 0 or b // tb < 2):
        tb -= 1
    return int(tb)


@functools.partial(jax.jit, static_argnames=("neighbourhood", "matmul_dtype"))
def mixer_layer_forward(x, kp, *, neighbourhood, matmul_dtype=jnp.float32):
    b, h, w, c = x.shape
    wc = w * c
    k = neighbourhood
    weights = [kp[name] for name in _ORDER]
    tb = _pick_batch_tile(b, h, wc)

    x2d = x.reshape(b, h, wc)        # lane-dense HBM<->VMEM layout (last dim = w*c)

    def whole(a):  # grid-invariant whole-array VMEM block (loaded once, stays resident)
        return pl.BlockSpec(a.shape, lambda i, nd=a.ndim: (0,) * nd)

    kernel = functools.partial(_mixer_kernel, tb=tb, h=h, w=w, c=c, k=k,
                               matmul_dtype=matmul_dtype)

    out = pl.pallas_call(
        kernel,
        out_shape=jax.ShapeDtypeStruct((b, h, wc), x.dtype),
        grid_spec=pltpu.PrefetchScalarGridSpec(
            num_scalar_prefetch=0,
            grid=(b // tb,),
            in_specs=[pl.BlockSpec((tb, h, wc), lambda i: (i, 0, 0))]
                     + [whole(a) for a in weights],
            out_specs=pl.BlockSpec((tb, h, wc), lambda i: (i, 0, 0)),
            scratch_shapes=[
                pltpu.VMEM((tb, h + 2 * (k // 2), wc), matmul_dtype),  # conv row-halo buffer
            ]),
        compiler_params=pltpu.CompilerParams(
            dimension_semantics=("parallel",),
            vmem_limit_bytes=32 * 1024 * 1024),
    )(x2d, *weights)
    return out.reshape(b, h, w, c)


# ----------------------------------------------------------------------------
# Parameters (torch layouts) + one-time kernel-layout preparation
# ----------------------------------------------------------------------------
def init_params(key, n_patches, f_hidden, embd_channels, neighbourhood):
    hidden = n_patches * f_hidden
    c = embd_channels
    k = neighbourhood
    keys = jax.random.split(key, 10)

    def lin(kk, din, dout):
        k1, k2 = jax.random.split(kk)
        wmat = jax.random.normal(k1, (dout, din), jnp.float32) * 0.05   # torch layout (out, in)
        bvec = jax.random.normal(k2, (dout,), jnp.float32) * 0.05
        return wmat, bvec

    p = {}
    p['tm_gamma'] = jnp.ones((c,), jnp.float32)
    p['tm_beta'] = jnp.zeros((c,), jnp.float32)
    p['tm1_w1'], p['tm1_b1'] = lin(keys[0], n_patches, hidden)
    p['tm1_w2'], p['tm1_b2'] = lin(keys[1], hidden, n_patches)
    p['tm2_w1'], p['tm2_b1'] = lin(keys[2], n_patches, hidden)
    p['tm2_w2'], p['tm2_b2'] = lin(keys[3], hidden, n_patches)
    p['cm_gamma'] = jnp.ones((c,), jnp.float32)
    p['cm_beta'] = jnp.zeros((c,), jnp.float32)
    p['cm_w1'], p['cm_b1'] = lin(keys[4], c, hidden)
    p['cm_w2'], p['cm_b2'] = lin(keys[5], hidden, c)
    p['nm_gamma'] = jnp.ones((c,), jnp.float32)
    p['nm_beta'] = jnp.zeros((c,), jnp.float32)
    p['nm_conv1_w'] = jax.random.normal(keys[6], (c, c, k, k), jnp.float32) * 0.05
    p['nm_conv1_b'] = jax.random.normal(keys[7], (c,), jnp.float32) * 0.05
    p['nm_conv2_w'] = jax.random.normal(keys[8], (c, c, k, k), jnp.float32) * 0.05
    p['nm_conv2_b'] = jax.random.normal(keys[9], (c,), jnp.float32) * 0.05
    return p


def prepare_params(p, n_patches, f_hidden, embd_channels, neighbourhood,
                   matmul_dtype=jnp.float32):
    """One-time re-layout of torch-layout params into kernel layouts.

    Lane layout inside the kernel is (w, c) flattened to w*c lanes, so:
      * per-c vectors (LN gamma/beta, conv biases, channel-mix output bias) tile w times,
      * per-unit vectors whose unit replaces the w slot repeat c times,
      * Linear weights acting on the w slot become kron(W^T, I_c),
      * Linear weights acting on the c slot become kron(I_w, W^T),
      * conv weights fold the dx taps + w zero-padding into k dense (w*c, w*c) matrices.
    Matmul weights are pre-cast ONCE to `matmul_dtype` (halves DMA/VMEM for bf16).
    """
    c = embd_channels
    k = neighbourhood
    pd = k // 2
    w = n_patches
    wc = w * c
    md = matmul_dtype
    f32 = jnp.float32

    tilew = lambda v: jnp.tile(jnp.asarray(v, f32), w).reshape(1, -1)
    repc = lambda v: jnp.repeat(jnp.asarray(v, f32), c).reshape(1, -1)
    col = lambda v: jnp.asarray(v, f32).reshape(-1, 1)

    eye_c = np.eye(c, dtype=np.float32)
    eye_w = np.eye(w, dtype=np.float32)

    def kron_c(wt):    # Linear over the w slot of the lane dim: (out,in) -> (in*c, out*c)
        return jnp.asarray(np.kron(np.asarray(wt).T, eye_c), md)

    def kron_w(wt):    # Linear over the c slot, applied per w: (out,in) -> (w*in, w*out)
        return jnp.asarray(np.kron(eye_w, np.asarray(wt).T), md)

    def conv_fold(wt):  # torch OIHW (co, ci, kh, kw) -> (kh, w*ci, w*co)
        wt = np.asarray(wt)
        kk = np.zeros((k, wc, wc), np.float32)
        for dy in range(k):
            for dx in range(k):
                for wo in range(w):
                    wi = wo + dx - pd
                    if 0 <= wi < w:
                        kk[dy, wi * c:(wi + 1) * c, wo * c:(wo + 1) * c] = wt[:, :, dy, dx].T
        return jnp.asarray(kk, md)

    # LayerNorm group-sum (over each c-sized lane group) and broadcast-back matrices.
    G = np.kron(eye_w, np.ones((c, 1), np.float32))          # (w*c, w)

    return {
        'ln_g': jnp.asarray(G, f32),
        'ln_gt': jnp.asarray(G.T.copy(), f32),
        'tm_g': tilew(p['tm_gamma']), 'tm_b': tilew(p['tm_beta']),
        'tm1_w1': jnp.asarray(p['tm1_w1'], md), 'tm1_b1': col(p['tm1_b1']),
        'tm1_w2': jnp.asarray(p['tm1_w2'], md), 'tm1_b2': col(p['tm1_b2']),
        'tm2_k1': kron_c(p['tm2_w1']), 'tm2_b1': repc(p['tm2_b1']),
        'tm2_k2': kron_c(p['tm2_w2']), 'tm2_b2': repc(p['tm2_b2']),
        'cm_g': tilew(p['cm_gamma']), 'cm_b': tilew(p['cm_beta']),
        'cm_k1': kron_w(p['cm_w1']), 'cm_b1': tilew(p['cm_b1']),
        'cm_k2': kron_w(p['cm_w2']), 'cm_b2': tilew(p['cm_b2']),
        'nm_g': tilew(p['nm_gamma']), 'nm_b': tilew(p['nm_beta']),
        'nm_k1': conv_fold(p['nm_conv1_w']), 'nm_b1': tilew(p['nm_conv1_b']),
        'nm_k2': conv_fold(p['nm_conv2_w']), 'nm_b2': tilew(p['nm_conv2_b']),
    }


# ----------------------------------------------------------------------------
# Pure-JAX reference of the PyTorch forward (for verification)
# ----------------------------------------------------------------------------
def reference_forward(x, p, neighbourhood):
    def gelu(v):
        return 0.5 * v * (1.0 + jax.scipy.special.erf(v * _SQRT_HALF))

    def ln(v, g, bt):
        mu = jnp.mean(v, axis=-1, keepdims=True)
        var = jnp.mean((v - mu) ** 2, axis=-1, keepdims=True)
        return (v - mu) / jnp.sqrt(var + 1e-5) * g + bt

    def mlp(v, w1, b1, w2, b2):
        return gelu(v @ w1.T + b1) @ w2.T + b2

    pd = neighbourhood // 2
    # token mix
    t = ln(x, p['tm_gamma'], p['tm_beta'])
    t = jnp.transpose(t, (0, 3, 2, 1))                       # b c w h
    t = mlp(t, p['tm1_w1'], p['tm1_b1'], p['tm1_w2'], p['tm1_b2'])
    t = jnp.transpose(t, (0, 1, 3, 2))                       # b c h w
    t = mlp(t, p['tm2_w1'], p['tm2_b1'], p['tm2_w2'], p['tm2_b2'])
    t = jnp.transpose(t, (0, 2, 3, 1))                       # b h w c
    x = x + t
    # channel mix
    t = ln(x, p['cm_gamma'], p['cm_beta'])
    t = mlp(t, p['cm_w1'], p['cm_b1'], p['cm_w2'], p['cm_b2'])
    x = x + t
    # neighbourhood mix
    t = ln(x, p['nm_gamma'], p['nm_beta'])
    t = jnp.transpose(t, (0, 3, 1, 2))                       # b c h w
    t = jax.lax.conv_general_dilated(t, p['nm_conv1_w'], (1, 1), [(pd, pd), (pd, pd)],
                                     dimension_numbers=('NCHW', 'OIHW', 'NCHW'))
    t = gelu(t + p['nm_conv1_b'][None, :, None, None])
    t = jax.lax.conv_general_dilated(t, p['nm_conv2_w'], (1, 1), [(pd, pd), (pd, pd)],
                                     dimension_numbers=('NCHW', 'OIHW', 'NCHW'))
    t = t + p['nm_conv2_b'][None, :, None, None]
    t = jnp.transpose(t, (0, 2, 3, 1))                       # b h w c
    x = x + t
    return x


if __name__ == "__main__":
    b, n_patches, embd_channels, f_hidden, neighbourhood = 2, 8, 16, 2, 3

    key = jax.random.PRNGKey(0)
    kx, kprm = jax.random.split(key)
    x = jax.random.normal(kx, (b, n_patches, n_patches, embd_channels), jnp.float32)
    params = init_params(kprm, n_patches, f_hidden, embd_channels, neighbourhood)

    ref = reference_forward(x, params, neighbourhood)

    # f32 matmul path: tight correctness check
    kparams_f32 = prepare_params(params, n_patches, f_hidden, embd_channels,
                                 neighbourhood, matmul_dtype=jnp.float32)
    out = mixer_layer_forward(x, kparams_f32, neighbourhood=neighbourhood,
                              matmul_dtype=jnp.float32)
    out = jax.block_until_ready(out)
    assert out.shape == ref.shape
    err = float(jnp.max(jnp.abs(out - ref)))
    if err > 2e-3:
        raise AssertionError(f"f32 mismatch vs reference: max abs err = {err}")

    # bf16 matmul inputs/weights (v6e/v7x MXU path), f32 accumulation: looser tolerance
    kparams_bf16 = prepare_params(params, n_patches, f_hidden, embd_channels,
                                  neighbourhood, matmul_dtype=jnp.bfloat16)
    out_bf = mixer_layer_forward(x, kparams_bf16, neighbourhood=neighbourhood,
                                 matmul_dtype=jnp.bfloat16)
    out_bf = jax.block_until_ready(out_bf)
    err_bf = float(jnp.max(jnp.abs(out_bf - ref)))
    if err_bf > 5e-2:
        raise AssertionError(f"bf16 mismatch vs reference: max abs err = {err_bf}")

    print("KERNEL_OK")
</pallas_src>

<mosaic_0001>
module attributes {stable_mosaic.version = 11 : i64} {
  func.func @_mixer_kernel(%arg0: i32, %arg1: memref<1x8x128xf32, #tpu.memory_space<vmem>>, %arg2: memref<128x8xf32, #tpu.memory_space<vmem>>, %arg3: memref<8x128xf32, #tpu.memory_space<vmem>>, %arg4: memref<1x128xf32, #tpu.memory_space<vmem>>, %arg5: memref<1x128xf32, #tpu.memory_space<vmem>>, %arg6: memref<16x8xf32, #tpu.memory_space<vmem>>, %arg7: memref<16x1xf32, #tpu.memory_space<vmem>>, %arg8: memref<8x16xf32, #tpu.memory_space<vmem>>, %arg9: memref<8x1xf32, #tpu.memory_space<vmem>>, %arg10: memref<128x256xf32, #tpu.memory_space<vmem>>, %arg11: memref<1x256xf32, #tpu.memory_space<vmem>>, %arg12: memref<256x128xf32, #tpu.memory_space<vmem>>, %arg13: memref<1x128xf32, #tpu.memory_space<vmem>>, %arg14: memref<1x128xf32, #tpu.memory_space<vmem>>, %arg15: memref<1x128xf32, #tpu.memory_space<vmem>>, %arg16: memref<128x128xf32, #tpu.memory_space<vmem>>, %arg17: memref<1x128xf32, #tpu.memory_space<vmem>>, %arg18: memref<128x128xf32, #tpu.memory_space<vmem>>, %arg19: memref<1x128xf32, #tpu.memory_space<vmem>>, %arg20: memref<1x128xf32, #tpu.memory_space<vmem>>, %arg21: memref<1x128xf32, #tpu.memory_space<vmem>>, %arg22: memref<3x128x128xf32, #tpu.memory_space<vmem>>, %arg23: memref<1x128xf32, #tpu.memory_space<vmem>>, %arg24: memref<3x128x128xf32, #tpu.memory_space<vmem>>, %arg25: memref<1x128xf32, #tpu.memory_space<vmem>>, %arg26: memref<1x8x128xf32, #tpu.memory_space<vmem>>, %arg27: memref<1x10x128xf32, #tpu.memory_space<vmem>>) attributes {dimension_semantics = [#tpu.dimension_semantics<parallel>], iteration_bounds = array<i64: 2>, scalar_prefetch = 0 : i64, scratch_operands = 1 : i64, tpu.core_type = #tpu.core_type<tc>, window_params = [{transform_indices = @transform_0, window_bounds = array<i64: 1, 8, 128>}, {pipeline_mode = #tpu.pipeline_mode<synchronous>, transform_indices = @transform_1, window_bounds = array<i64: 128, 8>}, {pipeline_mode = #tpu.pipeline_mode<synchronous>, transform_indices = @transform_2, window_bounds = array<i64: 8, 128>}, {pipeline_mode = #tpu.pipeline_mode<synchronous>, transform_indices = @transform_3, window_bounds = array<i64: 1, 128>}, {pipeline_mode = #tpu.pipeline_mode<synchronous>, transform_indices = @transform_4, window_bounds = array<i64: 1, 128>}, {pipeline_mode = #tpu.pipeline_mode<synchronous>, transform_indices = @transform_5, window_bounds = array<i64: 16, 8>}, {pipeline_mode = #tpu.pipeline_mode<synchronous>, transform_indices = @transform_6, window_bounds = array<i64: 16, 1>}, {pipeline_mode = #tpu.pipeline_mode<synchronous>, transform_indices = @transform_7, window_bounds = array<i64: 8, 16>}, {pipeline_mode = #tpu.pipeline_mode<synchronous>, transform_indices = @transform_8, window_bounds = array<i64: 8, 1>}, {pipeline_mode = #tpu.pipeline_mode<synchronous>, transform_indices = @transform_9, window_bounds = array<i64: 128, 256>}, {pipeline_mode = #tpu.pipeline_mode<synchronous>, transform_indices = @transform_10, window_bounds = array<i64: 1, 256>}, {pipeline_mode = #tpu.pipeline_mode<synchronous>, transform_indices = @transform_11, window_bounds = array<i64: 256, 128>}, {pipeline_mode = #tpu.pipeline_mode<synchronous>, transform_indices = @transform_12, window_bounds = array<i64: 1, 128>}, {pipeline_mode = #tpu.pipeline_mode<synchronous>, transform_indices = @transform_13, window_bounds = array<i64: 1, 128>}, {pipeline_mode = #tpu.pipeline_mode<synchronous>, transform_indices = @transform_14, window_bounds = array<i64: 1, 128>}, {pipeline_mode = #tpu.pipeline_mode<synchronous>, transform_indices = @transform_15, window_bounds = array<i64: 128, 128>}, {pipeline_mode = #tpu.pipeline_mode<synchronous>, transform_indices = @transform_16, window_bounds = array<i64: 1, 128>}, {pipeline_mode = #tpu.pipeline_mode<synchronous>, transform_indices = @transform_17, window_bounds = array<i64: 128, 128>}, {pipeline_mode = #tpu.pipeline_mode<synchronous>, transform_indices = @transform_18, window_bounds = array<i64: 1, 128>}, {pipeline_mode = #tpu.pipeline_mode<synchronous>, transform_indices = @transform_19, window_bounds = array<i64: 1, 128>}, {pipeline_mode = #tpu.pipeline_mode<synchronous>, transform_indices = @transform_20, window_bounds = array<i64: 1, 128>}, {pipeline_mode = #tpu.pipeline_mode<synchronous>, transform_indices = @transform_21, window_bounds = array<i64: 3, 128, 128>}, {pipeline_mode = #tpu.pipeline_mode<synchronous>, transform_indices = @transform_22, window_bounds = array<i64: 1, 128>}, {pipeline_mode = #tpu.pipeline_mode<synchronous>, transform_indices = @transform_23, window_bounds = array<i64: 3, 128, 128>}, {pipeline_mode = #tpu.pipeline_mode<synchronous>, transform_indices = @transform_24, window_bounds = array<i64: 1, 128>}, {transform_indices = @transform_25, window_bounds = array<i64: 1, 8, 128>}]} {
    %c0 = arith.constant 0 : index
    %c0_0 = arith.constant 0 : index
    %0 = vector.load %arg2[%c0, %c0_0] : memref<128x8xf32, #tpu.memory_space<vmem>>, vector<128x8xf32>
    %c0_1 = arith.constant 0 : index
    %c0_2 = arith.constant 0 : index
    %1 = vector.load %arg3[%c0_1, %c0_2] : memref<8x128xf32, #tpu.memory_space<vmem>>, vector<8x128xf32>
    %c0_3 = arith.constant 0 : index
    %c0_4 = arith.constant 0 : index
    %c0_5 = arith.constant 0 : index
    %2 = vector.load %arg1[%c0_3, %c0_4, %c0_5] : memref<1x8x128xf32, #tpu.memory_space<vmem>>, vector<1x8x128xf32>
    %3 = vector.shape_cast %2 : vector<1x8x128xf32> to vector<8x128xf32>
    %c0_6 = arith.constant 0 : index
    %c0_7 = arith.constant 0 : index
    %4 = vector.load %arg4[%c0_6, %c0_7] : memref<1x128xf32, #tpu.memory_space<vmem>>, vector<1x128xf32>
    %c0_8 = arith.constant 0 : index
    %c0_9 = arith.constant 0 : index
    %5 = vector.load %arg5[%c0_8, %c0_9] : memref<1x128xf32, #tpu.memory_space<vmem>>, vector<1x128xf32>
    %cst = arith.constant dense<0.000000e+00> : vector<8x8xf32>
    %6 = tpu.matmul %3, %0, %cst {dimension_numbers = #tpu.dot_dimension_numbers<[1], [0], [0], [1], [0, 0, 1, 1], [], []>} : vector<8x128xf32>, vector<128x8xf32>, vector<8x8xf32> -> vector<8x8xf32>
    %cst_10 = arith.constant 6.250000e-02 : f32
    %7 = vector.broadcast %cst_10 : f32 to vector<8x8xf32>
    %8 = arith.mulf %6, %7 : vector<8x8xf32>
    %cst_11 = arith.constant dense<0.000000e+00> : vector<8x128xf32>
    %9 = tpu.matmul %8, %1, %cst_11 {dimension_numbers = #tpu.dot_dimension_numbers<[1], [0], [0], [1], [0, 0, 1, 1], [], []>} : vector<8x8xf32>, vector<8x128xf32>, vector<8x128xf32> -> vector<8x128xf32>
    %10 = arith.subf %3, %9 : vector<8x128xf32>
    %11 = arith.mulf %10, %10 : vector<8x128xf32>
    %cst_12 = arith.constant dense<0.000000e+00> : vector<8x8xf32>
    %12 = tpu.matmul %11, %0, %cst_12 {dimension_numbers = #tpu.dot_dimension_numbers<[1], [0], [0], [1], [0, 0, 1, 1], [], []>} : vector<8x128xf32>, vector<128x8xf32>, vector<8x8xf32> -> vector<8x8xf32>
    %cst_13 = arith.constant 6.250000e-02 : f32
    %13 = vector.broadcast %cst_13 : f32 to vector<8x8xf32>
    %14 = arith.mulf %12, %13 : vector<8x8xf32>
    %cst_14 = arith.constant dense<0.000000e+00> : vector<8x128xf32>
    %15 = tpu.matmul %14, %1, %cst_14 {dimension_numbers = #tpu.dot_dimension_numbers<[1], [0], [0], [1], [0, 0, 1, 1], [], []>} : vector<8x8xf32>, vector<8x128xf32>, vector<8x128xf32> -> vector<8x128xf32>
    %cst_15 = arith.constant 9.99999974E-6 : f32
    %16 = vector.broadcast %cst_15 : f32 to vector<8x128xf32>
    %17 = arith.addf %15, %16 : vector<8x128xf32>
    %18 = math.rsqrt %17 : vector<8x128xf32>
    %19 = arith.mulf %10, %18 : vector<8x128xf32>
    %20 = vector.broadcast %4 : vector<1x128xf32> to vector<8x128xf32>
    %21 = arith.mulf %19, %20 : vector<8x128xf32>
    %22 = vector.broadcast %5 : vector<1x128xf32> to vector<8x128xf32>
    %23 = arith.addf %21, %22 : vector<8x128xf32>
    %c0_16 = arith.constant 0 : index
    %c0_17 = arith.constant 0 : index
    %24 = vector.load %arg6[%c0_16, %c0_17] : memref<16x8xf32, #tpu.memory_space<vmem>>, vector<16x8xf32>
    %c0_18 = arith.constant 0 : index
    %c0_19 = arith.constant 0 : index
    %25 = vector.load %arg7[%c0_18, %c0_19] : memref<16x1xf32, #tpu.memory_space<vmem>>, vector<16x1xf32>
    %c0_20 = arith.constant 0 : index
    %c0_21 = arith.constant 0 : index
    %26 = vector.load %arg8[%c0_20, %c0_21] : memref<8x16xf32, #tpu.memory_space<vmem>>, vector<8x16xf32>
    %c0_22 = arith.constant 0 : index
    %c0_23 = arith.constant 0 : index
    %27 = vector.load %arg9[%c0_22, %c0_23] : memref<8x1xf32, #tpu.memory_space<vmem>>, vector<8x1xf32>
    %cst_24 = arith.constant dense<0.000000e+00> : vector<16x128xf32>
    %28 = tpu.matmul %24, %23, %cst_24 {dimension_numbers = #tpu.dot_dimension_numbers<[1], [0], [0], [1], [0, 0, 1, 1], [], []>} : vector<16x8xf32>, vector<8x128xf32>, vector<16x128xf32> -> vector<16x128xf32>
    %29 = vector.broadcast %25 : vector<16x1xf32> to vector<16x128xf32>
    %30 = arith.addf %28, %29 : vector<16x128xf32>
    %cst_25 = arith.constant 5.000000e-01 : f32
    %31 = vector.broadcast %cst_25 : f32 to vector<16x128xf32>
    %32 = arith.mulf %31, %30 : vector<16x128xf32>
    %cst_26 = arith.constant 0.707106769 : f32
    %33 = vector.broadcast %cst_26 : f32 to vector<16x128xf32>
    %34 = arith.mulf %30, %33 : vector<16x128xf32>
    %cst_27 = arith.constant 0.000000e+00 : f32
    %35 = vector.broadcast %cst_27 : f32 to vector<16x128xf32>
    %36 = arith.cmpf oge, %34, %35 : vector<16x128xf32>
    %cst_28 = arith.constant 1.000000e+00 : f32
    %cst_29 = arith.constant -1.000000e+00 : f32
    %37 = vector.broadcast %cst_28 : f32 to vector<16x128xf32>
    %38 = vector.broadcast %cst_29 : f32 to vector<16x128xf32>
    %39 = arith.select %36, %37, %38 : vector<16x128xi1>, vector<16x128xf32>
    %40 = math.absf %34 : vector<16x128xf32>
    %cst_30 = arith.constant 0.327591091 : f32
    %41 = vector.broadcast %cst_30 : f32 to vector<16x128xf32>
    %42 = arith.mulf %41, %40 : vector<16x128xf32>
    %cst_31 = arith.constant 1.000000e+00 : f32
    %43 = vector.broadcast %cst_31 : f32 to vector<16x128xf32>
    %44 = arith.addf %43, %42 : vector<16x128xf32>
    %cst_32 = arith.constant 1.000000e+00 : f32
    %45 = vector.broadcast %cst_32 : f32 to vector<16x128xf32>
    %46 = arith.divf %45, %44 : vector<16x128xf32>
    %cst_33 = arith.constant 1.06140542 : f32
    %47 = vector.broadcast %cst_33 : f32 to vector<16x128xf32>
    %48 = arith.mulf %47, %46 : vector<16x128xf32>
    %cst_34 = arith.constant -1.45315206 : f32
    %49 = vector.broadcast %cst_34 : f32 to vector<16x128xf32>
    %50 = arith.addf %48, %49 : vector<16x128xf32>
    %51 = arith.mulf %50, %46 : vector<16x128xf32>
    %cst_35 = arith.constant 1.42141378 : f32
    %52 = vector.broadcast %cst_35 : f32 to vector<16x128xf32>
    %53 = arith.addf %51, %52 : vector<16x128xf32>
    %54 = arith.mulf %53, %46 : vector<16x128xf32>
    %cst_36 = arith.constant -0.284496725 : f32
    %55 = vector.broadcast %cst_36 : f32 to vector<16x128xf32>
    %56 = arith.addf %54, %55 : vector<16x128xf32>
    %57 = arith.mulf %56, %46 : vector<16x128xf32>
    %cst_37 = arith.constant 0.254829586 : f32
    %58 = vector.broadcast %cst_37 : f32 to vector<16x128xf32>
    %59 = arith.addf %57, %58 : vector<16x128xf32>
    %60 = arith.mulf %59, %46 : vector<16x128xf32>
    %cst_38 = arith.constant 0.000000e+00 : f32
    %61 = vector.broadcast %cst_38 : f32 to vector<16x128xf32>
    %62 = arith.subf %61, %40 : vector<16x128xf32>
    %63 = arith.mulf %62, %40 : vector<16x128xf32>
    %64 = math.exp %63 : vector<16x128xf32>
    %65 = arith.mulf %60, %64 : vector<16x128xf32>
    %cst_39 = arith.constant 1.000000e+00 : f32
    %66 = vector.broadcast %cst_39 : f32 to vector<16x128xf32>
    %67 = arith.subf %66, %65 : vector<16x128xf32>
    %68 = arith.mulf %39, %67 : vector<16x128xf32>
    %cst_40 = arith.constant 1.000000e+00 : f32
    %69 = vector.broadcast %cst_40 : f32 to vector<16x128xf32>
    %70 = arith.addf %69, %68 : vector<16x128xf32>
    %71 = arith.mulf %32, %70 : vector<16x128xf32>
    %cst_41 = arith.constant dense<0.000000e+00> : vector<8x128xf32>
    %72 = tpu.matmul %26, %71, %cst_41 {dimension_numbers = #tpu.dot_dimension_numbers<[1], [0], [0], [1], [0, 0, 1, 1], [], []>} : vector<8x16xf32>, vector<16x128xf32>, vector<8x128xf32> -> vector<8x128xf32>
    %73 = vector.broadcast %27 : vector<8x1xf32> to vector<8x128xf32>
    %74 = arith.addf %72, %73 : vector<8x128xf32>
    %c0_42 = arith.constant 0 : index
    %c0_43 = arith.constant 0 : index
    %75 = vector.load %arg10[%c0_42, %c0_43] : memref<128x256xf32, #tpu.memory_space<vmem>>, vector<128x256xf32>
    %cst_44 = arith.constant dense<0.000000e+00> : vector<8x256xf32>
    %76 = tpu.matmul %74, %75, %cst_44 {dimension_numbers = #tpu.dot_dimension_numbers<[1], [0], [0], [1], [0, 0, 1, 1], [], []>} : vector<8x128xf32>, vector<128x256xf32>, vector<8x256xf32> -> vector<8x256xf32>
    %c0_45 = arith.constant 0 : index
    %c0_46 = arith.constant 0 : index
    %77 = vector.load %arg11[%c0_45, %c0_46] : memref<1x256xf32, #tpu.memory_space<vmem>>, vector<1x256xf32>
    %78 = vector.broadcast %77 : vector<1x256xf32> to vector<8x256xf32>
    %79 = arith.addf %76, %78 : vector<8x256xf32>
    %cst_47 = arith.constant 5.000000e-01 : f32
    %80 = vector.broadcast %cst_47 : f32 to vector<8x256xf32>
    %81 = arith.mulf %80, %79 : vector<8x256xf32>
    %cst_48 = arith.constant 0.707106769 : f32
    %82 = vector.broadcast %cst_48 : f32 to vector<8x256xf32>
    %83 = arith.mulf %79, %82 : vector<8x256xf32>
    %cst_49 = arith.constant 0.000000e+00 : f32
    %84 = vector.broadcast %cst_49 : f32 to vector<8x256xf32>
    %85 = arith.cmpf oge, %83, %84 : vector<8x256xf32>
    %cst_50 = arith.constant 1.000000e+00 : f32
    %cst_51 = arith.constant -1.000000e+00 : f32
    %86 = vector.broadcast %cst_50 : f32 to vector<8x256xf32>
    %87 = vector.broadcast %cst_51 : f32 to vector<8x256xf32>
    %88 = arith.select %85, %86, %87 : vector<8x256xi1>, vector<8x256xf32>
    %89 = math.absf %83 : vector<8x256xf32>
    %cst_52 = arith.constant 0.327591091 : f32
    %90 = vector.broadcast %cst_52 : f32 to vector<8x256xf32>
    %91 = arith.mulf %90, %89 : vector<8x256xf32>
    %cst_53 = arith.constant 1.000000e+00 : f32
    %92 = vector.broadcast %cst_53 : f32 to vector<8x256xf32>
    %93 = arith.addf %92, %91 : vector<8x256xf32>
    %cst_54 = arith.constant 1.000000e+00 : f32
    %94 = vector.broadcast %cst_54 : f32 to vector<8x256xf32>
    %95 = arith.divf %94, %93 : vector<8x256xf32>
    %cst_55 = arith.constant 1.06140542 : f32
    %96 = vector.broadcast %cst_55 : f32 to vector<8x256xf32>
    %97 = arith.mulf %96, %95 : vector<8x256xf32>
    %cst_56 = arith.constant -1.45315206 : f32
    %98 = vector.broadcast %cst_56 : f32 to vector<8x256xf32>
    %99 = arith.addf %97, %98 : vector<8x256xf32>
    %100 = arith.mulf %99, %95 : vector<8x256xf32>
    %cst_57 = arith.constant 1.42141378 : f32
    %101 = vector.broadcast %cst_57 : f32 to vector<8x256xf32>
    %102 = arith.addf %100, %101 : vector<8x256xf32>
    %103 = arith.mulf %102, %95 : vector<8x256xf32>
    %cst_58 = arith.constant -0.284496725 : f32
    %104 = vector.broadcast %cst_58 : f32 to vector<8x256xf32>
    %105 = arith.addf %103, %104 : vector<8x256xf32>
    %106 = arith.mulf %105, %95 : vector<8x256xf32>
    %cst_59 = arith.constant 0.254829586 : f32
    %107 = vector.broadcast %cst_59 : f32 to vector<8x256xf32>
    %108 = arith.addf %106, %107 : vector<8x256xf32>
    %109 = arith.mulf %108, %95 : vector<8x256xf32>
    %cst_60 = arith.constant 0.000000e+00 : f32
    %110 = vector.broadcast %cst_60 : f32 to vector<8x256xf32>
    %111 = arith.subf %110, %89 : vector<8x256xf32>
    %112 = arith.mulf %111, %89 : vector<8x256xf32>
    %113 = math.exp %112 : vector<8x256xf32>
    %114 = arith.mulf %109, %113 : vector<8x256xf32>
    %cst_61 = arith.constant 1.000000e+00 : f32
    %115 = vector.broadcast %cst_61 : f32 to vector<8x256xf32>
    %116 = arith.subf %115, %114 : vector<8x256xf32>
    %117 = arith.mulf %88, %116 : vector<8x256xf32>
    %cst_62 = arith.constant 1.000000e+00 : f32
    %118 = vector.broadcast %cst_62 : f32 to vector<8x256xf32>
    %119 = arith.addf %118, %117 : vector<8x256xf32>
    %120 = arith.mulf %81, %119 : vector<8x256xf32>
    %c0_63 = arith.constant 0 : index
    %c0_64 = arith.constant 0 : index
    %121 = vector.load %arg12[%c0_63, %c0_64] : memref<256x128xf32, #tpu.memory_space<vmem>>, vector<256x128xf32>
    %cst_65 = arith.constant dense<0.000000e+00> : vector<8x128xf32>
    %122 = tpu.matmul %120, %121, %cst_65 {dimension_numbers = #tpu.dot_dimension_numbers<[1], [0], [0], [1], [0, 0, 1, 1], [], []>} : vector<8x256xf32>, vector<256x128xf32>, vector<8x128xf32> -> vector<8x128xf32>
    %123 = arith.addf %3, %122 : vector<8x128xf32>
    %c0_66 = arith.constant 0 : index
    %c0_67 = arith.constant 0 : index
    %124 = vector.load %arg13[%c0_66, %c0_67] : memref<1x128xf32, #tpu.memory_space<vmem>>, vector<1x128xf32>
    %125 = vector.broadcast %124 : vector<1x128xf32> to vector<8x128xf32>
    %126 = arith.addf %123, %125 : vector<8x128xf32>
    %c0_68 = arith.constant 0 : index
    %c0_69 = arith.constant 0 : index
    %127 = vector.load %arg14[%c0_68, %c0_69] : memref<1x128xf32, #tpu.memory_space<vmem>>, vector<1x128xf32>
    %c0_70 = arith.constant 0 : index
    %c0_71 = arith.constant 0 : index
    %128 = vector.load %arg15[%c0_70, %c0_71] : memref<1x128xf32, #tpu.memory_space<vmem>>, vector<1x128xf32>
    %cst_72 = arith.constant dense<0.000000e+00> : vector<8x8xf32>
    %129 = tpu.matmul %126, %0, %cst_72 {dimension_numbers = #tpu.dot_dimension_numbers<[1], [0], [0], [1], [0, 0, 1, 1], [], []>} : vector<8x128xf32>, vector<128x8xf32>, vector<8x8xf32> -> vector<8x8xf32>
    %cst_73 = arith.constant 6.250000e-02 : f32
    %130 = vector.broadcast %cst_73 : f32 to vector<8x8xf32>
    %131 = arith.mulf %129, %130 : vector<8x8xf32>
    %cst_74 = arith.constant dense<0.000000e+00> : vector<8x128xf32>
    %132 = tpu.matmul %131, %1, %cst_74 {dimension_numbers = #tpu.dot_dimension_numbers<[1], [0], [0], [1], [0, 0, 1, 1], [], []>} : vector<8x8xf32>, vector<8x128xf32>, vector<8x128xf32> -> vector<8x128xf32>
    %133 = arith.subf %126, %132 : vector<8x128xf32>
    %134 = arith.mulf %133, %133 : vector<8x128xf32>
    %cst_75 = arith.constant dense<0.000000e+00> : vector<8x8xf32>
    %135 = tpu.matmul %134, %0, %cst_75 {dimension_numbers = #tpu.dot_dimension_numbers<[1], [0], [0], [1], [0, 0, 1, 1], [], []>} : vector<8x128xf32>, vector<128x8xf32>, vector<8x8xf32> -> vector<8x8xf32>
    %cst_76 = arith.constant 6.250000e-02 : f32
    %136 = vector.broadcast %cst_76 : f32 to vector<8x8xf32>
    %137 = arith.mulf %135, %136 : vector<8x8xf32>
    %cst_77 = arith.constant dense<0.000000e+00> : vector<8x128xf32>
    %138 = tpu.matmul %137, %1, %cst_77 {dimension_numbers = #tpu.dot_dimension_numbers<[1], [0], [0], [1], [0, 0, 1, 1], [], []>} : vector<8x8xf32>, vector<8x128xf32>, vector<8x128xf32> -> vector<8x128xf32>
    %cst_78 = arith.constant 9.99999974E-6 : f32
    %139 = vector.broadcast %cst_78 : f32 to vector<8x128xf32>
    %140 = arith.addf %138, %139 : vector<8x128xf32>
    %141 = math.rsqrt %140 : vector<8x128xf32>
    %142 = arith.mulf %133, %141 : vector<8x128xf32>
    %143 = vector.broadcast %127 : vector<1x128xf32> to vector<8x128xf32>
    %144 = arith.mulf %142, %143 : vector<8x128xf32>
    %145 = vector.broadcast %128 : vector<1x128xf32> to vector<8x128xf32>
    %146 = arith.addf %144, %145 : vector<8x128xf32>
    %c0_79 = arith.constant 0 : index
    %c0_80 = arith.constant 0 : index
    %147 = vector.load %arg16[%c0_79, %c0_80] : memref<128x128xf32, #tpu.memory_space<vmem>>, vector<128x128xf32>
    %cst_81 = arith.constant dense<0.000000e+00> : vector<8x128xf32>
    %148 = tpu.matmul %146, %147, %cst_81 {dimension_numbers = #tpu.dot_dimension_numbers<[1], [0], [0], [1], [0, 0, 1, 1], [], []>} : vector<8x128xf32>, vector<128x128xf32>, vector<8x128xf32> -> vector<8x128xf32>
    %c0_82 = arith.constant 0 : index
    %c0_83 = arith.constant 0 : index
    %149 = vector.load %arg17[%c0_82, %c0_83] : memref<1x128xf32, #tpu.memory_space<vmem>>, vector<1x128xf32>
    %150 = vector.broadcast %149 : vector<1x128xf32> to vector<8x128xf32>
    %151 = arith.addf %148, %150 : vector<8x128xf32>
    %cst_84 = arith.constant 5.000000e-01 : f32
    %152 = vector.broadcast %cst_84 : f32 to vector<8x128xf32>
    %153 = arith.mulf %152, %151 : vector<8x128xf32>
    %cst_85 = arith.constant 0.707106769 : f32
    %154 = vector.broadcast %cst_85 : f32 to vector<8x128xf32>
    %155 = arith.mulf %151, %154 : vector<8x128xf32>
    %cst_86 = arith.constant 0.000000e+00 : f32
    %156 = vector.broadcast %cst_86 : f32 to vector<8x128xf32>
    %157 = arith.cmpf oge, %155, %156 : vector<8x128xf32>
    %cst_87 = arith.constant 1.000000e+00 : f32
    %cst_88 = arith.constant -1.000000e+00 : f32
    %158 = vector.broadcast %cst_87 : f32 to vector<8x128xf32>
    %159 = vector.broadcast %cst_88 : f32 to vector<8x128xf32>
    %160 = arith.select %157, %158, %159 : vector<8x128xi1>, vector<8x128xf32>
    %161 = math.absf %155 : vector<8x128xf32>
    %cst_89 = arith.constant 0.327591091 : f32
    %162 = vector.broadcast %cst_89 : f32 to vector<8x128xf32>
    %163 = arith.mulf %162, %161 : vector<8x128xf32>
    %cst_90 = arith.constant 1.000000e+00 : f32
    %164 = vector.broadcast %cst_90 : f32 to vector<8x128xf32>
    %165 = arith.addf %164, %163 : vector<8x128xf32>
    %cst_91 = arith.constant 1.000000e+00 : f32
    %166 = vector.broadcast %cst_91 : f32 to vector<8x128xf32>
    %167 = arith.divf %166, %165 : vector<8x128xf32>
    %cst_92 = arith.constant 1.06140542 : f32
    %168 = vector.broadcast %cst_92 : f32 to vector<8x128xf32>
    %169 = arith.mulf %168, %167 : vector<8x128xf32>
    %cst_93 = arith.constant -1.45315206 : f32
    %170 = vector.broadcast %cst_93 : f32 to vector<8x128xf32>
    %171 = arith.addf %169, %170 : vector<8x128xf32>
    %172 = arith.mulf %171, %167 : vector<8x128xf32>
    %cst_94 = arith.constant 1.42141378 : f32
    %173 = vector.broadcast %cst_94 : f32 to vector<8x128xf32>
    %174 = arith.addf %172, %173 : vector<8x128xf32>
    %175 = arith.mulf %174, %167 : vector<8x128xf32>
    %cst_95 = arith.constant -0.284496725 : f32
    %176 = vector.broadcast %cst_95 : f32 to vector<8x128xf32>
    %177 = arith.addf %175, %176 : vector<8x128xf32>
    %178 = arith.mulf %177, %167 : vector<8x128xf32>
    %cst_96 = arith.constant 0.254829586 : f32
    %179 = vector.broadcast %cst_96 : f32 to vector<8x128xf32>
    %180 = arith.addf %178, %179 : vector<8x128xf32>
    %181 = arith.mulf %180, %167 : vector<8x128xf32>
    %cst_97 = arith.constant 0.000000e+00 : f32
    %182 = vector.broadcast %cst_97 : f32 to vector<8x128xf32>
    %183 = arith.subf %182, %161 : vector<8x128xf32>
    %184 = arith.mulf %183, %161 : vector<8x128xf32>
    %185 = math.exp %184 : vector<8x128xf32>
    %186 = arith.mulf %181, %185 : vector<8x128xf32>
    %cst_98 = arith.constant 1.000000e+00 : f32
    %187 = vector.broadcast %cst_98 : f32 to vector<8x128xf32>
    %188 = arith.subf %187, %186 : vector<8x128xf32>
    %189 = arith.mulf %160, %188 : vector<8x128xf32>
    %cst_99 = arith.constant 1.000000e+00 : f32
    %190 = vector.broadcast %cst_99 : f32 to vector<8x128xf32>
    %191 = arith.addf %190, %189 : vector<8x128xf32>
    %192 = arith.mulf %153, %191 : vector<8x128xf32>
    %c0_100 = arith.constant 0 : index
    %c0_101 = arith.constant 0 : index
    %193 = vector.load %arg18[%c0_100, %c0_101] : memref<128x128xf32, #tpu.memory_space<vmem>>, vector<128x128xf32>
    %cst_102 = arith.constant dense<0.000000e+00> : vector<8x128xf32>
    %194 = tpu.matmul %192, %193, %cst_102 {dimension_numbers = #tpu.dot_dimension_numbers<[1], [0], [0], [1], [0, 0, 1, 1], [], []>} : vector<8x128xf32>, vector<128x128xf32>, vector<8x128xf32> -> vector<8x128xf32>
    %195 = arith.addf %126, %194 : vector<8x128xf32>
    %c0_103 = arith.constant 0 : index
    %c0_104 = arith.constant 0 : index
    %196 = vector.load %arg19[%c0_103, %c0_104] : memref<1x128xf32, #tpu.memory_space<vmem>>, vector<1x128xf32>
    %197 = vector.broadcast %196 : vector<1x128xf32> to vector<8x128xf32>
    %198 = arith.addf %195, %197 : vector<8x128xf32>
    %c0_105 = arith.constant 0 : index
    %c0_106 = arith.constant 0 : index
    %199 = vector.load %arg20[%c0_105, %c0_106] : memref<1x128xf32, #tpu.memory_space<vmem>>, vector<1x128xf32>
    %c0_107 = arith.constant 0 : index
    %c0_108 = arith.constant 0 : index
    %200 = vector.load %arg21[%c0_107, %c0_108] : memref<1x128xf32, #tpu.memory_space<vmem>>, vector<1x128xf32>
    %cst_109 = arith.constant dense<0.000000e+00> : vector<8x8xf32>
    %201 = tpu.matmul %198, %0, %cst_109 {dimension_numbers = #tpu.dot_dimension_numbers<[1], [0], [0], [1], [0, 0, 1, 1], [], []>} : vector<8x128xf32>, vector<128x8xf32>, vector<8x8xf32> -> vector<8x8xf32>
    %cst_110 = arith.constant 6.250000e-02 : f32
    %202 = vector.broadcast %cst_110 : f32 to vector<8x8xf32>
    %203 = arith.mulf %201, %202 : vector<8x8xf32>
    %cst_111 = arith.constant dense<0.000000e+00> : vector<8x128xf32>
    %204 = tpu.matmul %203, %1, %cst_111 {dimension_numbers = #tpu.dot_dimension_numbers<[1], [0], [0], [1], [0, 0, 1, 1], [], []>} : vector<8x8xf32>, vector<8x128xf32>, vector<8x128xf32> -> vector<8x128xf32>
    %205 = arith.subf %198, %204 : vector<8x128xf32>
    %206 = arith.mulf %205, %205 : vector<8x128xf32>
    %cst_112 = arith.constant dense<0.000000e+00> : vector<8x8xf32>
    %207 = tpu.matmul %206, %0, %cst_112 {dimension_numbers = #tpu.dot_dimension_numbers<[1], [0], [0], [1], [0, 0, 1, 1], [], []>} : vector<8x128xf32>, vector<128x8xf32>, vector<8x8xf32> -> vector<8x8xf32>
    %cst_113 = arith.constant 6.250000e-02 : f32
    %208 = vector.broadcast %cst_113 : f32 to vector<8x8xf32>
    %209 = arith.mulf %207, %208 : vector<8x8xf32>
    %cst_114 = arith.constant dense<0.000000e+00> : vector<8x128xf32>
    %210 = tpu.matmul %209, %1, %cst_114 {dimension_numbers = #tpu.dot_dimension_numbers<[1], [0], [0], [1], [0, 0, 1, 1], [], []>} : vector<8x8xf32>, vector<8x128xf32>, vector<8x128xf32> -> vector<8x128xf32>
    %cst_115 = arith.constant 9.99999974E-6 : f32
    %211 = vector.broadcast %cst_115 : f32 to vector<8x128xf32>
    %212 = arith.addf %210, %211 : vector<8x128xf32>
    %213 = math.rsqrt %212 : vector<8x128xf32>
    %214 = arith.mulf %205, %213 : vector<8x128xf32>
    %215 = vector.broadcast %199 : vector<1x128xf32> to vector<8x128xf32>
    %216 = arith.mulf %214, %215 : vector<8x128xf32>
    %217 = vector.broadcast %200 : vector<1x128xf32> to vector<8x128xf32>
    %218 = arith.addf %216, %217 : vector<8x128xf32>
    %cst_116 = arith.constant 0.000000e+00 : f32
    %219 = vector.broadcast %cst_116 : f32 to vector<1x1x128xf32>
    %c0_117 = arith.constant 0 : index
    %c0_118 = arith.constant 0 : index
    %c0_119 = arith.constant 0 : index
    %220 = vector.load %arg27[%c0_117, %c0_118, %c0_119] : memref<1x10x128xf32, #tpu.memory_space<vmem>>, vector<1x1x128xf32>
    tpu.vector_store %arg27[%c0_117, %c0_118, %c0_119], %219 {strides = array<i32>} : memref<1x10x128xf32, #tpu.memory_space<vmem>>, vector<1x1x128xf32>,
    %c0_120 = arith.constant 0 : index
    %c9 = arith.constant 9 : index
    %c0_121 = arith.constant 0 : index
    %221 = vector.load %arg27[%c0_120, %c9, %c0_121] : memref<1x10x128xf32, #tpu.memory_space<vmem>>, vector<1x1x128xf32>
    tpu.vector_store %arg27[%c0_120, %c9, %c0_121], %219 {strides = array<i32>} : memref<1x10x128xf32, #tpu.memory_space<vmem>>, vector<1x1x128xf32>,
    %c0_122 = arith.constant 0 : index
    %c0_123 = arith.constant 0 : index
    %222 = vector.load %arg23[%c0_122, %c0_123] : memref<1x128xf32, #tpu.memory_space<vmem>>, vector<1x128xf32>
    %223 = vector.shape_cast %218 : vector<8x128xf32> to vector<1x8x128xf32>
    %c0_124 = arith.constant 0 : index
    %c1 = arith.constant 1 : index
    %c0_125 = arith.constant 0 : index
    %224 = vector.load %arg27[%c0_124, %c1, %c0_125] : memref<1x10x128xf32, #tpu.memory_space<vmem>>, vector<1x8x128xf32>
    tpu.vector_store %arg27[%c0_124, %c1, %c0_125], %223 {strides = array<i32>} : memref<1x10x128xf32, #tpu.memory_space<vmem>>, vector<1x8x128xf32>,
    %c0_126 = arith.constant 0 : index
    %c0_127 = arith.constant 0 : index
    %c0_128 = arith.constant 0 : index
    %225 = vector.load %arg27[%c0_126, %c0_127, %c0_128] : memref<1x10x128xf32, #tpu.memory_space<vmem>>, vector<1x8x128xf32>
    %226 = vector.shape_cast %225 : vector<1x8x128xf32> to vector<8x128xf32>
    %c0_129 = arith.constant 0 : index
    %c0_130 = arith.constant 0 : index
    %c0_131 = arith.constant 0 : index
    %227 = vector.load %arg22[%c0_129, %c0_130, %c0_131] : memref<3x128x128xf32, #tpu.memory_space<vmem>>, vector<1x128x128xf32>
    %228 = vector.shape_cast %227 : vector<1x128x128xf32> to vector<128x128xf32>
    %cst_132 = arith.constant dense<0.000000e+00> : vector<8x128xf32>
    %229 = tpu.matmul %226, %228, %cst_132 {dimension_numbers = #tpu.dot_dimension_numbers<[1], [0], [0], [1], [0, 0, 1, 1], [], []>} : vector<8x128xf32>, vector<128x128xf32>, vector<8x128xf32> -> vector<8x128xf32>
    %230 = vector.broadcast %222 : vector<1x128xf32> to vector<8x128xf32>
    %231 = arith.addf %230, %229 : vector<8x128xf32>
    %c0_133 = arith.constant 0 : index
    %c1_134 = arith.constant 1 : index
    %c0_135 = arith.constant 0 : index
    %232 = vector.load %arg27[%c0_133, %c1_134, %c0_135] : memref<1x10x128xf32, #tpu.memory_space<vmem>>, vector<1x8x128xf32>
    %233 = vector.shape_cast %232 : vector<1x8x128xf32> to vector<8x128xf32>
    %c1_136 = arith.constant 1 : index
    %c0_137 = arith.constant 0 : index
    %c0_138 = arith.constant 0 : index
    %234 = vector.load %arg22[%c1_136, %c0_137, %c0_138] : memref<3x128x128xf32, #tpu.memory_space<vmem>>, vector<1x128x128xf32>
    %235 = vector.shape_cast %234 : vector<1x128x128xf32> to vector<128x128xf32>
    %cst_139 = arith.constant dense<0.000000e+00> : vector<8x128xf32>
    %236 = tpu.matmul %233, %235, %cst_139 {dimension_numbers = #tpu.dot_dimension_numbers<[1], [0], [0], [1], [0, 0, 1, 1], [], []>} : vector<8x128xf32>, vector<128x128xf32>, vector<8x128xf32> -> vector<8x128xf32>
    %237 = arith.addf %231, %236 : vector<8x128xf32>
    %c0_140 = arith.constant 0 : index
    %c2 = arith.constant 2 : index
    %c0_141 = arith.constant 0 : index
    %238 = vector.load %arg27[%c0_140, %c2, %c0_141] : memref<1x10x128xf32, #tpu.memory_space<vmem>>, vector<1x8x128xf32>
    %239 = vector.shape_cast %238 : vector<1x8x128xf32> to vector<8x128xf32>
    %c2_142 = arith.constant 2 : index
    %c0_143 = arith.constant 0 : index
    %c0_144 = arith.constant 0 : index
    %240 = vector.load %arg22[%c2_142, %c0_143, %c0_144] : memref<3x128x128xf32, #tpu.memory_space<vmem>>, vector<1x128x128xf32>
    %241 = vector.shape_cast %240 : vector<1x128x128xf32> to vector<128x128xf32>
    %cst_145 = arith.constant dense<0.000000e+00> : vector<8x128xf32>
    %242 = tpu.matmul %239, %241, %cst_145 {dimension_numbers = #tpu.dot_dimension_numbers<[1], [0], [0], [1], [0, 0, 1, 1], [], []>} : vector<8x128xf32>, vector<128x128xf32>, vector<8x128xf32> -> vector<8x128xf32>
    %243 = arith.addf %237, %242 : vector<8x128xf32>
    %cst_146 = arith.constant 5.000000e-01 : f32
    %244 = vector.broadcast %cst_146 : f32 to vector<8x128xf32>
    %245 = arith.mulf %244, %243 : vector<8x128xf32>
    %cst_147 = arith.constant 0.707106769 : f32
    %246 = vector.broadcast %cst_147 : f32 to vector<8x128xf32>
    %247 = arith.mulf %243, %246 : vector<8x128xf32>
    %cst_148 = arith.constant 0.000000e+00 : f32
    %248 = vector.broadcast %cst_148 : f32 to vector<8x128xf32>
    %249 = arith.cmpf oge, %247, %248 : vector<8x128xf32>
    %cst_149 = arith.constant 1.000000e+00 : f32
    %cst_150 = arith.constant -1.000000e+00 : f32
    %250 = vector.broadcast %cst_149 : f32 to vector<8x128xf32>
    %251 = vector.broadcast %cst_150 : f32 to vector<8x128xf32>
    %252 = arith.select %249, %250, %251 : vector<8x128xi1>, vector<8x128xf32>
    %253 = math.absf %247 : vector<8x128xf32>
    %cst_151 = arith.constant 0.327591091 : f32
    %254 = vector.broadcast %cst_151 : f32 to vector<8x128xf32>
    %255 = arith.mulf %254, %253 : vector<8x128xf32>
    %cst_152 = arith.constant 1.000000e+00 : f32
    %256 = vector.broadcast %cst_152 : f32 to vector<8x128xf32>
    %257 = arith.addf %256, %255 : vector<8x128xf32>
    %cst_153 = arith.constant 1.000000e+00 : f32
    %258 = vector.broadcast %cst_153 : f32 to vector<8x128xf32>
    %259 = arith.divf %258, %257 : vector<8x128xf32>
    %cst_154 = arith.constant 1.06140542 : f32
    %260 = vector.broadcast %cst_154 : f32 to vector<8x128xf32>
    %261 = arith.mulf %260, %259 : vector<8x128xf32>
    %cst_155 = arith.constant -1.45315206 : f32
    %262 = vector.broadcast %cst_155 : f32 to vector<8x128xf32>
    %263 = arith.addf %261, %262 : vector<8x128xf32>
    %264 = arith.mulf %263, %259 : vector<8x128xf32>
    %cst_156 = arith.constant 1.42141378 : f32
    %265 = vector.broadcast %cst_156 : f32 to vector<8x128xf32>
    %266 = arith.addf %264, %265 : vector<8x128xf32>
    %267 = arith.mulf %266, %259 : vector<8x128xf32>
    %cst_157 = arith.constant -0.284496725 : f32
    %268 = vector.broadcast %cst_157 : f32 to vector<8x128xf32>
    %269 = arith.addf %267, %268 : vector<8x128xf32>
    %270 = arith.mulf %269, %259 : vector<8x128xf32>
    %cst_158 = arith.constant 0.254829586 : f32
    %271 = vector.broadcast %cst_158 : f32 to vector<8x128xf32>
    %272 = arith.addf %270, %271 : vector<8x128xf32>
    %273 = arith.mulf %272, %259 : vector<8x128xf32>
    %cst_159 = arith.constant 0.000000e+00 : f32
    %274 = vector.broadcast %cst_159 : f32 to vector<8x128xf32>
    %275 = arith.subf %274, %253 : vector<8x128xf32>
    %276 = arith.mulf %275, %253 : vector<8x128xf32>
    %277 = math.exp %276 : vector<8x128xf32>
    %278 = arith.mulf %273, %277 : vector<8x128xf32>
    %cst_160 = arith.constant 1.000000e+00 : f32
    %279 = vector.broadcast %cst_160 : f32 to vector<8x128xf32>
    %280 = arith.subf %279, %278 : vector<8x128xf32>
    %281 = arith.mulf %252, %280 : vector<8x128xf32>
    %cst_161 = arith.constant 1.000000e+00 : f32
    %282 = vector.broadcast %cst_161 : f32 to vector<8x128xf32>
    %283 = arith.addf %282, %281 : vector<8x128xf32>
    %284 = arith.mulf %245, %283 : vector<8x128xf32>
    %c0_162 = arith.constant 0 : index
    %c0_163 = arith.constant 0 : index
    %285 = vector.load %arg25[%c0_162, %c0_163] : memref<1x128xf32, #tpu.memory_space<vmem>>, vector<1x128xf32>
    %286 = vector.shape_cast %284 : vector<8x128xf32> to vector<1x8x128xf32>
    %c0_164 = arith.constant 0 : index
    %c1_165 = arith.constant 1 : index
    %c0_166 = arith.constant 0 : index
    %287 = vector.load %arg27[%c0_164, %c1_165, %c0_166] : memref<1x10x128xf32, #tpu.memory_space<vmem>>, vector<1x8x128xf32>
    tpu.vector_store %arg27[%c0_164, %c1_165, %c0_166], %286 {strides = array<i32>} : memref<1x10x128xf32, #tpu.memory_space<vmem>>, vector<1x8x128xf32>,
    %c0_167 = arith.constant 0 : index
    %c0_168 = arith.constant 0 : index
    %c0_169 = arith.constant 0 : index
    %288 = vector.load %arg27[%c0_167, %c0_168, %c0_169] : memref<1x10x128xf32, #tpu.memory_space<vmem>>, vector<1x8x128xf32>
    %289 = vector.shape_cast %288 : vector<1x8x128xf32> to vector<8x128xf32>
    %c0_170 = arith.constant 0 : index
    %c0_171 = arith.constant 0 : index
    %c0_172 = arith.constant 0 : index
    %290 = vector.load %arg24[%c0_170, %c0_171, %c0_172] : memref<3x128x128xf32, #tpu.memory_space<vmem>>, vector<1x128x128xf32>
    %291 = vector.shape_cast %290 : vector<1x128x128xf32> to vector<128x128xf32>
    %cst_173 = arith.constant dense<0.000000e+00> : vector<8x128xf32>
    %292 = tpu.matmul %289, %291, %cst_173 {dimension_numbers = #tpu.dot_dimension_numbers<[1], [0], [0], [1], [0, 0, 1, 1], [], []>} : vector<8x128xf32>, vector<128x128xf32>, vector<8x128xf32> -> vector<8x128xf32>
    %293 = vector.broadcast %285 : vector<1x128xf32> to vector<8x128xf32>
    %294 = arith.addf %293, %292 : vector<8x128xf32>
    %c0_174 = arith.constant 0 : index
    %c1_175 = arith.constant 1 : index
    %c0_176 = arith.constant 0 : index
    %295 = vector.load %arg27[%c0_174, %c1_175, %c0_176] : memref<1x10x128xf32, #tpu.memory_space<vmem>>, vector<1x8x128xf32>
    %296 = vector.shape_cast %295 : vector<1x8x128xf32> to vector<8x128xf32>
    %c1_177 = arith.constant 1 : index
    %c0_178 = arith.constant 0 : index
    %c0_179 = arith.constant 0 : index
    %297 = vector.load %arg24[%c1_177, %c0_178, %c0_179] : memref<3x128x128xf32, #tpu.memory_space<vmem>>, vector<1x128x128xf32>
    %298 = vector.shape_cast %297 : vector<1x128x128xf32> to vector<128x128xf32>
    %cst_180 = arith.constant dense<0.000000e+00> : vector<8x128xf32>
    %299 = tpu.matmul %296, %298, %cst_180 {dimension_numbers = #tpu.dot_dimension_numbers<[1], [0], [0], [1], [0, 0, 1, 1], [], []>} : vector<8x128xf32>, vector<128x128xf32>, vector<8x128xf32> -> vector<8x128xf32>
    %300 = arith.addf %294, %299 : vector<8x128xf32>
    %c0_181 = arith.constant 0 : index
    %c2_182 = arith.constant 2 : index
    %c0_183 = arith.constant 0 : index
    %301 = vector.load %arg27[%c0_181, %c2_182, %c0_183] : memref<1x10x128xf32, #tpu.memory_space<vmem>>, vector<1x8x128xf32>
    %302 = vector.shape_cast %301 : vector<1x8x128xf32> to vector<8x128xf32>
    %c2_184 = arith.constant 2 : index
    %c0_185 = arith.constant 0 : index
    %c0_186 = arith.constant 0 : index
    %303 = vector.load %arg24[%c2_184, %c0_185, %c0_186] : memref<3x128x128xf32, #tpu.memory_space<vmem>>, vector<1x128x128xf32>
    %304 = vector.shape_cast %303 : vector<1x128x128xf32> to vector<128x128xf32>
    %cst_187 = arith.constant dense<0.000000e+00> : vector<8x128xf32>
    %305 = tpu.matmul %302, %304, %cst_187 {dimension_numbers = #tpu.dot_dimension_numbers<[1], [0], [0], [1], [0, 0, 1, 1], [], []>} : vector<8x128xf32>, vector<128x128xf32>, vector<8x128xf32> -> vector<8x128xf32>
    %306 = arith.addf %300, %305 : vector<8x128xf32>
    %307 = arith.addf %198, %306 : vector<8x128xf32>
    %308 = vector.shape_cast %307 : vector<8x128xf32> to vector<1x8x128xf32>
    %c0_188 = arith.constant 0 : index
    %c0_189 = arith.constant 0 : index
    %c0_190 = arith.constant 0 : index
    %309 = vector.load %arg26[%c0_188, %c0_189, %c0_190] : memref<1x8x128xf32, #tpu.memory_space<vmem>>, vector<1x8x128xf32>
    tpu.vector_store %arg26[%c0_188, %c0_189, %c0_190], %308 {strides = array<i32>} : memref<1x8x128xf32, #tpu.memory_space<vmem>>, vector<1x8x128xf32>,
    return
  }
  func.func @transform_0(%arg0: i32) -> (i32, i32, i32) {
    %c0_i32 = arith.constant 0 : i32
    %c0_i32_0 = arith.constant 0 : i32
    %c0_i32_1 = arith.constant 0 : i32
    return %arg0, %c0_i32, %c0_i32_0 : i32, i32, i32
  }
  func.func @transform_1(%arg0: i32) -> (i32, i32) {
    %c0_i32 = arith.constant 0 : i32
    %c0_i32_0 = arith.constant 0 : i32
    %c0_i32_1 = arith.constant 0 : i32
    return %c0_i32, %c0_i32_0 : i32, i32
  }
  func.func @transform_2(%arg0: i32) -> (i32, i32) {
    %c0_i32 = arith.constant 0 : i32
    %c0_i32_0 = arith.constant 0 : i32
    %c0_i32_1 = arith.constant 0 : i32
    return %c0_i32, %c0_i32_0 : i32, i32
  }
  func.func @transform_3(%arg0: i32) -> (i32, i32) {
    %c0_i32 = arith.constant 0 : i32
    %c0_i32_0 = arith.constant 0 : i32
    %c0_i32_1 = arith.constant 0 : i32
    return %c0_i32, %c0_i32_0 : i32, i32
  }
  func.func @transform_4(%arg0: i32) -> (i32, i32) {
    %c0_i32 = arith.constant 0 : i32
    %c0_i32_0 = arith.constant 0 : i32
    %c0_i32_1 = arith.constant 0 : i32
    return %c0_i32, %c0_i32_0 : i32, i32
  }
  func.func @transform_5(%arg0: i32) -> (i32, i32) {
    %c0_i32 = arith.constant 0 : i32
    %c0_i32_0 = arith.constant 0 : i32
    %c0_i32_1 = arith.constant 0 : i32
    return %c0_i32, %c0_i32_0 : i32, i32
  }
  func.func @transform_6(%arg0: i32) -> (i32, i32) {
    %c0_i32 = arith.constant 0 : i32
    %c0_i32_0 = arith.constant 0 : i32
    %c0_i32_1 = arith.constant 0 : i32
    return %c0_i32, %c0_i32_0 : i32, i32
  }
  func.func @transform_7(%arg0: i32) -> (i32, i32) {
    %c0_i32 = arith.constant 0 : i32
    %c0_i32_0 = arith.constant 0 : i32
    %c0_i32_1 = arith.constant 0 : i32
    return %c0_i32, %c0_i32_0 : i32, i32
  }
  func.func @transform_8(%arg0: i32) -> (i32, i32) {
    %c0_i32 = arith.constant 0 : i32
    %c0_i32_0 = arith.constant 0 : i32
    %c0_i32_1 = arith.constant 0 : i32
    return %c0_i32, %c0_i32_0 : i32, i32
  }
  func.func @transform_9(%arg0: i32) -> (i32, i32) {
    %c0_i32 = arith.constant 0 : i32
    %c0_i32_0 = arith.constant 0 : i32
    %c0_i32_1 = arith.constant 0 : i32
    return %c0_i32, %c0_i32_0 : i32, i32
  }
  func.func @transform_10(%arg0: i32) -> (i32, i32) {
    %c0_i32 = arith.constant 0 : i32
    %c0_i32_0 = arith.constant 0 : i32
    %c0_i32_1 = arith.constant 0 : i32
    return %c0_i32, %c0_i32_0 : i32, i32
  }
  func.func @transform_11(%arg0: i32) -> (i32, i32) {
    %c0_i32 = arith.constant 0 : i32
    %c0_i32_0 = arith.constant 0 : i32
    %c0_i32_1 = arith.constant 0 : i32
    return %c0_i32, %c0_i32_0 : i32, i32
  }
  func.func @transform_12(%arg0: i32) -> (i32, i32) {
    %c0_i32 = arith.constant 0 : i32
    %c0_i32_0 = arith.constant 0 : i32
    %c0_i32_1 = arith.constant 0 : i32
    return %c0_i32, %c0_i32_0 : i32, i32
  }
  func.func @transform_13(%arg0: i32) -> (i32, i32) {
    %c0_i32 = arith.constant 0 : i32
    %c0_i32_0 = arith.constant 0 : i32
    %c0_i32_1 = arith.constant 0 : i32
    return %c0_i32, %c0_i32_0 : i32, i32
  }
  func.func @transform_14(%arg0: i32) -> (i32, i32) {
    %c0_i32 = arith.constant 0 : i32
    %c0_i32_0 = arith.constant 0 : i32
    %c0_i32_1 = arith.constant 0 : i32
    return %c0_i32, %c0_i32_0 : i32, i32
  }
  func.func @transform_15(%arg0: i32) -> (i32, i32) {
    %c0_i32 = arith.constant 0 : i32
    %c0_i32_0 = arith.constant 0 : i32
    %c0_i32_1 = arith.constant 0 : i32
    return %c0_i32, %c0_i32_0 : i32, i32
  }
  func.func @transform_16(%arg0: i32) -> (i32, i32) {
    %c0_i32 = arith.constant 0 : i32
    %c0_i32_0 = arith.constant 0 : i32
    %c0_i32_1 = arith.constant 0 : i32
    return %c0_i32, %c0_i32_0 : i32, i32
  }
  func.func @transform_17(%arg0: i32) -> (i32, i32) {
    %c0_i32 = arith.constant 0 : i32
    %c0_i32_0 = arith.constant 0 : i32
    %c0_i32_1 = arith.constant 0 : i32
    return %c0_i32, %c0_i32_0 : i32, i32
  }
  func.func @transform_18(%arg0: i32) -> (i32, i32) {
    %c0_i32 = arith.constant 0 : i32
    %c0_i32_0 = arith.constant 0 : i32
    %c0_i32_1 = arith.constant 0 : i32
    return %c0_i32, %c0_i32_0 : i32, i32
  }
  func.func @transform_19(%arg0: i32) -> (i32, i32) {
    %c0_i32 = arith.constant 0 : i32
    %c0_i32_0 = arith.constant 0 : i32
    %c0_i32_1 = arith.constant 0 : i32
    return %c0_i32, %c0_i32_0 : i32, i32
  }
  func.func @transform_20(%arg0: i32) -> (i32, i32) {
    %c0_i32 = arith.constant 0 : i32
    %c0_i32_0 = arith.constant 0 : i32
    %c0_i32_1 = arith.constant 0 : i32
    return %c0_i32, %c0_i32_0 : i32, i32
  }
  func.func @transform_21(%arg0: i32) -> (i32, i32, i32) {
    %c0_i32 = arith.constant 0 : i32
    %c0_i32_0 = arith.constant 0 : i32
    %c0_i32_1 = arith.constant 0 : i32
    %c0_i32_2 = arith.constant 0 : i32
    return %c0_i32, %c0_i32_0, %c0_i32_1 : i32, i32, i32
  }
  func.func @transform_22(%arg0: i32) -> (i32, i32) {
    %c0_i32 = arith.constant 0 : i32
    %c0_i32_0 = arith.constant 0 : i32
    %c0_i32_1 = arith.constant 0 : i32
    return %c0_i32, %c0_i32_0 : i32, i32
  }
  func.func @transform_23(%arg0: i32) -> (i32, i32, i32) {
    %c0_i32 = arith.constant 0 : i32
    %c0_i32_0 = arith.constant 0 : i32
    %c0_i32_1 = arith.constant 0 : i32
    %c0_i32_2 = arith.constant 0 : i32
    return %c0_i32, %c0_i32_0, %c0_i32_1 : i32, i32, i32
  }
  func.func @transform_24(%arg0: i32) -> (i32, i32) {
    %c0_i32 = arith.constant 0 : i32
    %c0_i32_0 = arith.constant 0 : i32
    %c0_i32_1 = arith.constant 0 : i32
    return %c0_i32, %c0_i32_0 : i32, i32
  }
  func.func @transform_25(%arg0: i32) -> (i32, i32, i32) {
    %c0_i32 = arith.constant 0 : i32
    %c0_i32_0 = arith.constant 0 : i32
    %c0_i32_1 = arith.constant 0 : i32
    return %arg0, %c0_i32, %c0_i32_0 : i32, i32, i32
  }
}

</mosaic_0001>

<bundles_post_ra>
// kernel: mixer_layer_forward.1
= control target key start
LH: loop header
LB: loop body
LE: loop exit
PB: predicated region body
PF: predicated region fallthrough
CT: control target
= control target key end

     0   :  { %s6296_s0 = inlined_call_operand.vmem [shape: f32[2,8,128], index: 0, kind: input, shape index: {}]   ;;  %s6297_s1 = inlined_call_operand.vmem [shape: f32[128,8], index: 1, kind: input, shape index: {}]   ;;  %s6298_s2 = inlined_call_operand.vmem [shape: f32[8,128], index: 2, kind: input, shape index: {}]   ;;  %s6299_s3 = inlined_call_operand.vmem [shape: f32[1,128], index: 3, kind: input, shape index: {}]   ;;  %s6300_s4 = inlined_call_operand.vmem [shape: f32[1,128], index: 4, kind: input, shape index: {}]   ;;  %s6301_s5 = inlined_call_operand.vmem [shape: f32[16,8], index: 5, kind: input, shape index: {}]   ;;  %s6302_s6 = inlined_call_operand.vmem [shape: f32[16,1], index: 6, kind: input, shape index: {}]   ;;  %s6303_s7 = inlined_call_operand.vmem [shape: f32[8,16], index: 7, kind: input, shape index: {}]   ;;  %s6304_s8 = inlined_call_operand.vmem [shape: f32[8,1], index: 8, kind: input, shape index: {}]   ;;  %s6305_s9 = inlined_call_operand.vmem [shape: f32[128,256], index: 9, kind: input, shape index: {}]   ;;  %s6306_s10 = inlined_call_operand.hbm [shape: f32[1,256], index: 10, kind: input, shape index: {}]   ;;  %s6307_s11 = inlined_call_operand.hbm [shape: f32[256,128], index: 11, kind: input, shape index: {}]   ;;  %s6308_s12 = inlined_call_operand.hbm [shape: f32[1,128], index: 12, kind: input, shape index: {}]   ;;  %s6309_s13 = inlined_call_operand.hbm [shape: f32[1,128], index: 13, kind: input, shape index: {}]   ;;  %s6310_s14 = inlined_call_operand.hbm [shape: f32[1,128], index: 14, kind: input, shape index: {}]   ;;  %s6311_s15 = inlined_call_operand.vmem [shape: f32[128,128], index: 15, kind: input, shape index: {}]   ;;  %s6312_s16 = inlined_call_operand.hbm [shape: f32[1,128], index: 16, kind: input, shape index: {}]   ;;  %s6313_s17 = inlined_call_operand.hbm [shape: f32[128,128], index: 17, kind: input, shape index: {}]   ;;  %s6314_s18 = inlined_call_operand.hbm [shape: f32[1,128], index: 18, kind: input, shape index: {}]   ;;  %s6315_s19 = inlined_call_operand.hbm [shape: f32[1,128], index: 19, kind: input, shape index: {}]   ;;  %s6316_s20 = inlined_call_operand.hbm [shape: f32[1,128], index: 20, kind: input, shape index: {}]   ;;  %s6317_s21 = inlined_call_operand.hbm [shape: f32[3,128,128], index: 21, kind: input, shape index: {}]   ;;  %s6318_s22 = inlined_call_operand.hbm [shape: f32[1,128], index: 22, kind: input, shape index: {}]   ;;  %s6319_s23 = inlined_call_operand.hbm [shape: f32[3,128,128], index: 23, kind: input, shape index: {}]   ;;  %s6320_s24 = inlined_call_operand.hbm [shape: f32[1,128], index: 24, kind: input, shape index: {}]   ;;  %s6321_s25 = inlined_call_operand.vmem [shape: f32[2,8,128], index: 25, kind: output, shape index: {}]  }
   0x1   :  { %6335 = sst [smem:[#allocation36_spill]] %s6296_s0 }
   0x2   :  { %6336 = sst [smem:[#allocation37_spill]] %s6297_s1 }
   0x3   :  { %6337 = sst [smem:[#allocation38_spill]] %s6298_s2 }
   0x4   :  { %6338 = sst [smem:[#allocation39_spill]] %s6299_s3 }
   0x5   :  { %6339 = sst [smem:[#allocation40_spill]] %s6300_s4 }
   0x6   :  { %6340 = sst [smem:[#allocation41_spill]] %s6301_s5 }
   0x7   :  { %6341 = sst [smem:[#allocation42_spill]] %s6302_s6 }
   0x8   :  { %6342 = sst [smem:[#allocation43_spill]] %s6303_s7 }
   0x9   :  { %6343 = sst [smem:[#allocation44_spill]] %s6304_s8 }
   0xa   :  { %6344 = sst [smem:[#allocation45_spill]] %s6305_s9 }
   0xb   :  { %6345 = sst [smem:[#allocation46_spill]] %s6311_s15 }
   0xc   :  { %6346 = sst [smem:[#allocation47_spill]] %s6321_s25 }
   0xd   :  { %30 = vsyncpa [#allocation4], 0 }
   0xe   :  { %31 = vsyncpa [#allocation6], 0 }
   0xf   :  { %32 = vsyncpa [#allocation9], 0 }
  0x10   :  { %33 = vsyncpa [#allocation12], 0 }
  0x11   :  { %34 = vsyncpa [#allocation15], 0 }
  0x12   :  { %35 = vsyncpa [#allocation18], 0 }
  0x13   :  { %36 = vsyncpa [#allocation21], 0 }
  0x14   :  { %37 = vsyncpa [#allocation24], 0  ;;  %s5440_s29 = smov 0  }
  0x15 LB: > { %6347 = sst [smem:[#allocation33_spill]] %s5287_s29  ;;  %s5289_s2 = smov [#allocation5]   ;;  %s5287_s29 = sphi %s5440_s29, %s43_s29  }
  0x16   : > { %s654_s6 = sshll.u32 %s5289_s2, 4  ;;  %s5446_s30 = sadd.s32 4294967295, %s5287_s29   ;;  %s5451_s6 = int_to_ptr.vmem [resolvable:$true] %s654_s6 }
  0x17   : > { %6348 = sst [smem:[#allocation34_spill]] %s5446_s30  ;;  %p3382_p0 = scmp.ge.s32.totalorder %s5287_s29, 1 }
  0x18   : > { %p604_p1 = scmp.lt.s32.totalorder %s5287_s29, 3  ;;  %p6332_p2 = scmp.eq.s32.totalorder %s5446_s30, 0 }
  0x19   : > { %s5290_s3 = smov [#allocation8]   ;;  %s5291_s8 = smov [#allocation11]  }
  0x1a   : > { %p5453_p3 = pnand %p3382_p0, %p604_p1  ;;  %s679_s26 = sshll.u32 %s5290_s3, 4  ;;  %s5459_s26 = int_to_ptr.vmem [resolvable:$true] %s679_s26 }
  0x1b   : > { %s704_s27 = sshll.u32 %s5291_s8, 4  ;;  %s5292_s4 = smov [#allocation14]   ;;  %s5467_s27 = int_to_ptr.vmem [resolvable:$true] %s704_s27 }
  0x1c   : > { %s6349_s7 = scalar_select %p5453_p3, 1, 0 }
  0x1d   : > { %p4724_p4 = pneg %p5453_p3  ;;  %s5469_s28 = sshll.u32 %s5292_s4, 4  ;;  %s729_s28 = int_to_ptr.vmem [resolvable:$true] %s5469_s28 }
  0x1e   : > { %6350 = sst [smem:[#allocation35_spill]] %s6349_s7  ;;  %s4857_s0 = scalar_lea.hbm %s6307_s11, 4096 }
  0x1f   : > { %p5463_p5 = pnand %p6332_p2, %p4724_p4  ;;  %p4858_p6 = scmp.ne.s32.totalorder %s6307_s11, %s4857_s0 }
  0x20   : > { %p4864_p10 = scmp.lt.u32.totalorder %s4857_s0, %s6307_s11 }
  0x21   : > { %p5479_p7 = pneg %p5463_p5 }
  0x23   : > { %p4860_p8 = pnand %p5479_p7, %p4858_p6 }
  0x25   : > { %p4861_p9 = pneg %p4860_p8 }
  0x27   : > { %p4866_p11 = pnand %p4864_p10, %p4861_p9 }
  0x29   : > { %4869 = shalt.err (!%p4866_p11)
}
  0x2a   : > { %s4870_s9 = scalar_lea.vmem %s5451_s6, 4096  ;;  %p4878_p1 = scmp.lt.s32.totalorder %s5451_s6, %s5451_s6 }
  0x2b   : > { %p4871_p12 = scmp.ne.s32.totalorder %s5451_s6, %s4870_s9  ;;  %p4879_p4 = scmp.lt.s32.totalorder %s4870_s9, %s4870_s9 }
  0x2d   : > { %p4873_p13 = pnand %p4871_p12, %p5479_p7  ;;  %p4880_p6 = por %p4879_p4, %p4878_p1 }
  0x2f   : > { %p4874_p0 = pneg %p4873_p13 }
  0x31   : > { %p4881_p8 = pnand %p4880_p6, %p4874_p0 }
  0x33   : > { %4884 = shalt.err (!%p4881_p8)
}
  0x34   : > { %s5293_s5 = smov 128   ;;  %s5294_s0 = smov 8  }
  0x35   : > { %4730 = dma.hbm_to_vmem [thread:$0]  (!%p5463_p5), %s6307_s11, 4096, %s5451_s6, [#allocation6], %s5293_s5, %s5293_s5, %s5294_s0  }
  0x36   : > { %s4885_s9 = scalar_lea.hbm %s6309_s13, 16 }
  0x37   : > { %p4886_p9 = scmp.ne.s32.totalorder %s6309_s13, %s4885_s9  ;;  %p4892_p12 = scmp.lt.u32.totalorder %s4885_s9, %s6309_s13 }
  0x39   : > { %p4888_p10 = pnand %p4886_p9, %p5479_p7 }
  0x3b   : > { %p4889_p11 = pneg %p4888_p10 }
  0x3d   : > { %p4894_p13 = pnand %p4892_p12, %p4889_p11 }
  0x3f   : > { %4897 = shalt.err (!%p4894_p13)
}
  0x40   : > { %s4898_s6 = scalar_lea.vmem %s5459_s26, 16  ;;  %s4905_s15 = scalar_lea.vmem %s5459_s26, 32 }
  0x41   : > { %p4899_p0 = scmp.ne.s32.totalorder %s5459_s26, %s4898_s6  ;;  %p4906_p6 = scmp.lt.s32.totalorder %s5459_s26, %s5459_s26 }
  0x42   : > { %p4907_p8 = scmp.lt.s32.totalorder %s4905_s15, %s4898_s6 }
  0x43   : > { %p4901_p1 = pnand %p4899_p0, %p5479_p7 }
  0x44   : > { %p4908_p9 = por %p4907_p8, %p4906_p6 }
  0x45   : > { %p4902_p4 = pneg %p4901_p1 }
  0x47   : > { %p4909_p10 = pnand %p4908_p9, %p4902_p4 }
  0x49   : > { %4912 = shalt.err (!%p4909_p10)
}
  0x4a   : > { %4736 = dma.hbm_to_vmem [thread:$0]  (!%p5463_p5), %s6309_s13, 16, %s5459_s26, [#allocation9]  }
  0x4b   : > { %s4913_s3 = scalar_lea.hbm %s6312_s16, 16 }
  0x4c   : > { %p4914_p11 = scmp.ne.s32.totalorder %s6312_s16, %s4913_s3  ;;  %p4920_p0 = scmp.lt.u32.totalorder %s4913_s3, %s6312_s16 }
  0x4e   : > { %p4916_p12 = pnand %p4914_p11, %p5479_p7 }
  0x50   : > { %p4917_p13 = pneg %p4916_p12 }
  0x52   : > { %p4922_p1 = pnand %p4920_p0, %p4917_p13 }
  0x54   : > { %4925 = shalt.err (!%p4922_p1)
}
  0x55   : > { %s4926_s26 = scalar_lea.vmem %s5467_s27, 16  ;;  %s4933_s15 = scalar_lea.vmem %s5467_s27, 32 }
  0x56   : > { %p4927_p4 = scmp.ne.s32.totalorder %s5467_s27, %s4926_s26  ;;  %p4934_p9 = scmp.lt.s32.totalorder %s5467_s27, %s5467_s27 }
  0x57   : > { %p4935_p10 = scmp.lt.s32.totalorder %s4933_s15, %s4926_s26 }
  0x58   : > { %p4929_p6 = pnand %p4927_p4, %p5479_p7 }
  0x59   : > { %p4936_p11 = por %p4935_p10, %p4934_p9 }
  0x5a   : > { %p4930_p8 = pneg %p4929_p6 }
  0x5c   : > { %p4937_p12 = pnand %p4936_p11, %p4930_p8 }
  0x5e   : > { %4940 = shalt.err (!%p4937_p12)
}
  0x5f   : > { %4742 = dma.hbm_to_vmem [thread:$0]  (!%p5463_p5), %s6312_s16, 16, %s5467_s27, [#allocation12]  }
  0x60   : > { %s4941_s3 = scalar_lea.hbm %s6314_s18, 16 }
  0x61   : > { %p4942_p13 = scmp.ne.s32.totalorder %s6314_s18, %s4941_s3  ;;  %p4948_p4 = scmp.lt.u32.totalorder %s4941_s3, %s6314_s18 }
  0x63   : > { %p4944_p0 = pnand %p4942_p13, %p5479_p7 }
  0x65   : > { %p4945_p1 = pneg %p4944_p0 }
  0x67   : > { %p4950_p6 = pnand %p4948_p4, %p4945_p1 }
  0x69   : > { %4953 = shalt.err (!%p4950_p6)
}
  0x6a   : > { %s4954_s26 = scalar_lea.vmem %s729_s28, 16  ;;  %s4961_s27 = scalar_lea.vmem %s729_s28, 32 }
  0x6b   : > { %p4955_p8 = scmp.ne.s32.totalorder %s729_s28, %s4954_s26  ;;  %p4962_p11 = scmp.lt.s32.totalorder %s729_s28, %s729_s28 }
  0x6c   : > { %p4963_p12 = scmp.lt.s32.totalorder %s4961_s27, %s4954_s26 }
  0x6d   : > { %p4957_p9 = pnand %p4955_p8, %p5479_p7 }
  0x6e   : > { %p4964_p2 = por %p4963_p12, %p4962_p11 }
  0x6f   : > { %p4958_p10 = pneg %p4957_p9 }
  0x71   : > { %p4965_p3 = pnand %p4964_p2, %p4958_p10 }
  0x73   : > { %4968 = shalt.err (!%p4965_p3)
}
  0x74   : > { %4748 = dma.hbm_to_vmem [thread:$0]  (!%p5463_p5), %s6314_s18, 16, %s729_s28, [#allocation15]  }
  0x75   : > { %s5295_s30 = smov [#allocation17]   ;;  %s5296_s2 = smov [#allocation20]  }
  0x76   : > { %s750_s7 = sshll.u32 %s5295_s30, 4  ;;  %s774_s3 = sshll.u32 %s5296_s2, 4  ;;  %s751_s7 = int_to_ptr.vmem [resolvable:$true] %s750_s7  ;;  %s775_s3 = int_to_ptr.vmem [resolvable:$true] %s774_s3 }
  0x77   : > { %s4969_s9 = scalar_lea.hbm %s6316_s20, 16 }
  0x78   : > { %p4970_p2 = scmp.ne.s32.totalorder %s6316_s20, %s4969_s9  ;;  %p4976_p0 = scmp.lt.u32.totalorder %s4969_s9, %s6316_s20 }
  0x7a   : > { %p4972_p3 = pnand %p4970_p2, %p5479_p7 }
  0x7c   : > { %p4973_p13 = pneg %p4972_p3 }
  0x7e   : > { %p4978_p1 = pnand %p4976_p0, %p4973_p13 }
  0x80   : > { %4981 = shalt.err (!%p4978_p1)
}
  0x81   : > { %s4982_s28 = scalar_lea.vmem %s751_s7, 16  ;;  %s4989_s25 = scalar_lea.vmem %s751_s7, 32 }
  0x82   : > { %p4983_p4 = scmp.ne.s32.totalorder %s751_s7, %s4982_s28  ;;  %p4990_p9 = scmp.lt.s32.totalorder %s751_s7, %s751_s7 }
  0x83   : > { %p4991_p10 = scmp.lt.s32.totalorder %s4989_s25, %s4982_s28 }
  0x84   : > { %p4985_p6 = pnand %p4983_p4, %p5479_p7 }
  0x85   : > { %p4992_p11 = por %p4991_p10, %p4990_p9 }
  0x86   : > { %p4986_p8 = pneg %p4985_p6 }
  0x88   : > { %p4993_p12 = pnand %p4992_p11, %p4986_p8 }
  0x8a   : > { %4996 = shalt.err (!%p4993_p12)
}
  0x8b   : > { %4754 = dma.hbm_to_vmem [thread:$0]  (!%p5463_p5), %s6316_s20, 16, %s751_s7, [#allocation18]  }
  0x8c   : > { %s4997_s9 = scalar_lea.hbm %s6318_s22, 16 }
  0x8d   : > { %p4998_p2 = scmp.ne.s32.totalorder %s6318_s22, %s4997_s9  ;;  %p5004_p0 = scmp.lt.u32.totalorder %s4997_s9, %s6318_s22 }
  0x8f   : > { %p5000_p3 = pnand %p4998_p2, %p5479_p7 }
  0x91   : > { %p5001_p13 = pneg %p5000_p3 }
  0x93   : > { %p5006_p1 = pnand %p5004_p0, %p5001_p13 }
  0x95   : > { %5009 = shalt.err (!%p5006_p1)
}
  0x96   : > { %s5010_s28 = scalar_lea.vmem %s775_s3, 16  ;;  %s5017_s7 = scalar_lea.vmem %s775_s3, 32 }
  0x97   : > { %p5011_p4 = scmp.ne.s32.totalorder %s775_s3, %s5010_s28  ;;  %p5018_p9 = scmp.lt.s32.totalorder %s775_s3, %s775_s3 }
  0x98   : > { %p5019_p10 = scmp.lt.s32.totalorder %s5017_s7, %s5010_s28 }
  0x99   : > { %p5013_p6 = pnand %p5011_p4, %p5479_p7 }
  0x9a   : > { %p5020_p11 = por %p5019_p10, %p5018_p9 }
  0x9b   : > { %p5014_p8 = pneg %p5013_p6 }
  0x9d   : > { %p5021_p12 = pnand %p5020_p11, %p5014_p8 }
  0x9f   : > { %5024 = shalt.err (!%p5021_p12)
}
  0xa0   : > { %4760 = dma.hbm_to_vmem [thread:$0]  (!%p5463_p5), %s6318_s22, 16, %s775_s3, [#allocation21]  }
  0xa1   : > { %s5297_s2 = smov [#allocation3]   ;;  %s5298_s4 = smov [#allocation7]  }
  0xa2   : > { %s644_s8 = sshll.u32 %s5297_s2, 4  ;;  %s668_s9 = sshll.u32 %s5298_s4, 4  ;;  %s645_s8 = int_to_ptr.vmem [resolvable:$true] %s644_s8  ;;  %s669_s9 = int_to_ptr.vmem [resolvable:$true] %s668_s9 }
  0xa3   : > { %s5025_s27 = scalar_lea.hbm %s6306_s10, 32 }
  0xa4   : > { %p5026_p2 = scmp.ne.s32.totalorder %s6306_s10, %s5025_s27  ;;  %p5032_p0 = scmp.lt.u32.totalorder %s5025_s27, %s6306_s10 }
  0xa6   : > { %p5028_p3 = pnand %p5026_p2, %p5479_p7 }
  0xa8   : > { %p5029_p13 = pneg %p5028_p3 }
  0xaa   : > { %p5034_p1 = pnand %p5032_p0, %p5029_p13 }
  0xac   : > { %5037 = shalt.err (!%p5034_p1)
}
  0xad   : > { %s5038_s3 = scalar_lea.vmem %s645_s8, 32  ;;  %p5046_p9 = scmp.lt.s32.totalorder %s645_s8, %s645_s8 }
  0xae   : > { %p5039_p4 = scmp.ne.s32.totalorder %s645_s8, %s5038_s3  ;;  %p5047_p10 = scmp.lt.s32.totalorder %s5038_s3, %s5038_s3 }
  0xb0   : > { %p5041_p6 = pnand %p5039_p4, %p5479_p7  ;;  %p5048_p11 = por %p5047_p10, %p5046_p9 }
  0xb2   : > { %p5042_p8 = pneg %p5041_p6 }
  0xb4   : > { %p5049_p12 = pnand %p5048_p11, %p5042_p8 }
  0xb6   : > { %5052 = shalt.err (!%p5049_p12)
}
  0xb7   : > { %4727 = dma.hbm_to_vmem [thread:$0]  (!%p5463_p5), %s6306_s10, 32, %s645_s8, [#allocation4]  }
  0xb8   : > { %s5053_s26 = scalar_lea.hbm %s6308_s12, 16 }
  0xb9   : > { %p5054_p2 = scmp.ne.s32.totalorder %s6308_s12, %s5053_s26  ;;  %p5060_p0 = scmp.lt.u32.totalorder %s5053_s26, %s6308_s12 }
  0xbb   : > { %p5056_p3 = pnand %p5054_p2, %p5479_p7 }
  0xbd   : > { %p5057_p13 = pneg %p5056_p3 }
  0xbf   : > { %p5062_p1 = pnand %p5060_p0, %p5057_p13 }
  0xc1   : > { %5065 = shalt.err (!%p5062_p1)
}
  0xc2   : > { %s5066_s25 = scalar_lea.vmem %s669_s9, 16  ;;  %s5073_s8 = scalar_lea.vmem %s669_s9, 32 }
  0xc3   : > { %p5067_p4 = scmp.ne.s32.totalorder %s669_s9, %s5066_s25  ;;  %p5074_p9 = scmp.lt.s32.totalorder %s669_s9, %s669_s9 }
  0xc4   : > { %p5075_p10 = scmp.lt.s32.totalorder %s5073_s8, %s5066_s25 }
  0xc5   : > { %p5069_p6 = pnand %p5067_p4, %p5479_p7 }
  0xc6   : > { %p5076_p11 = por %p5075_p10, %p5074_p9 }
  0xc7   : > { %p5070_p8 = pneg %p5069_p6 }
  0xc9   : > { %p5077_p12 = pnand %p5076_p11, %p5070_p8 }
  0xcb   : > { %5080 = shalt.err (!%p5077_p12)
}
  0xcc   : > { %4733 = dma.hbm_to_vmem [thread:$0]  (!%p5463_p5), %s6308_s12, 16, %s669_s9, [#allocation6]  }
  0xcd   : > { %s5299_s2 = smov [#allocation10]   ;;  %s5300_s6 = smov [#allocation13]  }
  0xce   : > { %s690_s4 = sshll.u32 %s5299_s2, 4  ;;  %s714_s26 = sshll.u32 %s5300_s6, 4  ;;  %s691_s4 = int_to_ptr.vmem [resolvable:$true] %s690_s4  ;;  %s715_s26 = int_to_ptr.vmem [resolvable:$true] %s714_s26 }
  0xcf   : > { %s5081_s28 = scalar_lea.hbm %s6310_s14, 16 }
  0xd0   : > { %p5082_p2 = scmp.ne.s32.totalorder %s6310_s14, %s5081_s28  ;;  %p5088_p0 = scmp.lt.u32.totalorder %s5081_s28, %s6310_s14 }
  0xd2   : > { %p5084_p3 = pnand %p5082_p2, %p5479_p7 }
  0xd4   : > { %p5085_p13 = pneg %p5084_p3 }
  0xd6   : > { %p5090_p1 = pnand %p5088_p0, %p5085_p13 }
  0xd8   : > { %5093 = shalt.err (!%p5090_p1)
}
  0xd9   : > { %s5094_s9 = scalar_lea.vmem %s691_s4, 16  ;;  %s5101_s30 = scalar_lea.vmem %s691_s4, 32 }
  0xda   : > { %p5095_p4 = scmp.ne.s32.totalorder %s691_s4, %s5094_s9  ;;  %p5102_p9 = scmp.lt.s32.totalorder %s691_s4, %s691_s4 }
  0xdb   : > { %p5103_p10 = scmp.lt.s32.totalorder %s5101_s30, %s5094_s9 }
  0xdc   : > { %p5097_p6 = pnand %p5095_p4, %p5479_p7 }
  0xdd   : > { %p5104_p11 = por %p5103_p10, %p5102_p9 }
  0xde   : > { %p5098_p8 = pneg %p5097_p6 }
  0xe0   : > { %p5105_p12 = pnand %p5104_p11, %p5098_p8 }
  0xe2   : > { %5108 = shalt.err (!%p5105_p12)
}
  0xe3   : > { %4739 = dma.hbm_to_vmem [thread:$0]  (!%p5463_p5), %s6310_s14, 16, %s691_s4, [#allocation9]  }
  0xe4   : > { %s5109_s28 = scalar_lea.hbm %s6313_s17, 2048 }
  0xe5   : > { %p5110_p2 = scmp.ne.s32.totalorder %s6313_s17, %s5109_s28  ;;  %p5116_p0 = scmp.lt.u32.totalorder %s5109_s28, %s6313_s17 }
  0xe7   : > { %p5112_p3 = pnand %p5110_p2, %p5479_p7 }
  0xe9   : > { %p5113_p13 = pneg %p5112_p3 }
  0xeb   : > { %p5118_p1 = pnand %p5116_p0, %p5113_p13 }
  0xed   : > { %5121 = shalt.err (!%p5118_p1)
}
  0xee   : > { %s5122_s9 = scalar_lea.vmem %s715_s26, 2048  ;;  %p5130_p9 = scmp.lt.s32.totalorder %s715_s26, %s715_s26 }
  0xef   : > { %p5123_p4 = scmp.ne.s32.totalorder %s715_s26, %s5122_s9  ;;  %p5131_p10 = scmp.lt.s32.totalorder %s5122_s9, %s5122_s9 }
  0xf1   : > { %p5125_p6 = pnand %p5123_p4, %p5479_p7  ;;  %p5132_p11 = por %p5131_p10, %p5130_p9 }
  0xf3   : > { %p5126_p8 = pneg %p5125_p6 }
  0xf5   : > { %p5133_p12 = pnand %p5132_p11, %p5126_p8 }
  0xf7   : > { %5136 = shalt.err (!%p5133_p12)
}
  0xf8   : > { %4745 = dma.hbm_to_vmem [thread:$0]  (!%p5463_p5), %s6313_s17, 2048, %s715_s26, [#allocation12], %s5293_s5, %s5293_s5, %s5294_s0  }
  0xf9   : > { %s5301_s2 = smov [#allocation16]   ;;  %s5302_s27 = smov [#allocation19]  }
  0xfa   : > { %s739_s6 = sshll.u32 %s5301_s2, 4  ;;  %s760_s15 = sshll.u32 %s5302_s27, 4  ;;  %s740_s6 = int_to_ptr.vmem [resolvable:$true] %s739_s6  ;;  %s761_s15 = int_to_ptr.vmem [resolvable:$true] %s760_s15 }
  0xfb   : > { %s5137_s25 = scalar_lea.hbm %s6315_s19, 16 }
  0xfc   : > { %p5138_p2 = scmp.ne.s32.totalorder %s6315_s19, %s5137_s25  ;;  %p5144_p0 = scmp.lt.u32.totalorder %s5137_s25, %s6315_s19 }
  0xfe   : > { %p5140_p3 = pnand %p5138_p2, %p5479_p7 }
 0x100   : > { %p5141_p13 = pneg %p5140_p3 }
 0x102   : > { %p5146_p1 = pnand %p5144_p0, %p5141_p13 }
 0x104   : > { %5149 = shalt.err (!%p5146_p1)
}
 0x105   : > { %s5150_s26 = scalar_lea.vmem %s740_s6, 16  ;;  %s5157_s30 = scalar_lea.vmem %s740_s6, 32 }
 0x106   : > { %p5151_p4 = scmp.ne.s32.totalorder %s740_s6, %s5150_s26  ;;  %p5158_p9 = scmp.lt.s32.totalorder %s740_s6, %s740_s6 }
 0x107   : > { %p5159_p10 = scmp.lt.s32.totalorder %s5157_s30, %s5150_s26 }
 0x108   : > { %p5153_p6 = pnand %p5151_p4, %p5479_p7 }
 0x109   : > { %p5160_p11 = por %p5159_p10, %p5158_p9 }
 0x10a   : > { %p5154_p8 = pneg %p5153_p6 }
 0x10c   : > { %p5161_p12 = pnand %p5160_p11, %p5154_p8 }
 0x10e   : > { %5164 = shalt.err (!%p5161_p12)
}
 0x10f   : > { %4751 = dma.hbm_to_vmem [thread:$0]  (!%p5463_p5), %s6315_s19, 16, %s740_s6, [#allocation15]  }
 0x110   : > { %s5165_s25 = scalar_lea.hbm %s6317_s21, 6144 }
 0x111   : > { %p5166_p2 = scmp.ne.s32.totalorder %s6317_s21, %s5165_s25  ;;  %p5172_p0 = scmp.lt.u32.totalorder %s5165_s25, %s6317_s21 }
 0x113   : > { %p5168_p3 = pnand %p5166_p2, %p5479_p7 }
 0x115   : > { %p5169_p13 = pneg %p5168_p3 }
 0x117   : > { %p5174_p1 = pnand %p5172_p0, %p5169_p13 }
 0x119   : > { %5177 = shalt.err (!%p5174_p1)
}
 0x11a   : > { %s5178_s26 = scalar_lea.vmem %s761_s15, 6144  ;;  %p5186_p9 = scmp.lt.s32.totalorder %s761_s15, %s761_s15 }
 0x11b   : > { %p5179_p4 = scmp.ne.s32.totalorder %s761_s15, %s5178_s26  ;;  %p5187_p10 = scmp.lt.s32.totalorder %s5178_s26, %s5178_s26 }
 0x11d   : > { %p5181_p6 = pnand %p5179_p4, %p5479_p7  ;;  %p5188_p11 = por %p5187_p10, %p5186_p9 }
 0x11f   : > { %p5182_p8 = pneg %p5181_p6 }
 0x121   : > { %p5189_p12 = pnand %p5188_p11, %p5182_p8 }
 0x123   : > { %5192 = shalt.err (!%p5189_p12)
}
 0x124   : > { %4757 = dma.hbm_to_vmem [thread:$0]  (!%p5463_p5), %s6317_s21, 6144, %s761_s15, [#allocation18], %s5293_s5, %s5293_s5, %s5294_s0  }
 0x125   : > { %s5303_s2 = smov [#allocation22]   ;;  %s5304_s28 = smov [#allocation23]  }
 0x126   : > { %s784_s27 = sshll.u32 %s5303_s2, 4  ;;  %s798_s7 = sshll.u32 %s5304_s28, 4  ;;  %s785_s27 = int_to_ptr.vmem [resolvable:$true] %s784_s27  ;;  %s799_s7 = int_to_ptr.vmem [resolvable:$true] %s798_s7 }
 0x127   : > { %s5193_s3 = scalar_lea.hbm %s6319_s23, 6144 }
 0x128   : > { %p5194_p2 = scmp.ne.s32.totalorder %s6319_s23, %s5193_s3  ;;  %p5200_p0 = scmp.lt.u32.totalorder %s5193_s3, %s6319_s23 }
 0x12a   : > { %p5196_p3 = pnand %p5194_p2, %p5479_p7 }
 0x12c   : > { %p5197_p13 = pneg %p5196_p3 }
 0x12e   : > { %p5202_p1 = pnand %p5200_p0, %p5197_p13 }
 0x130   : > { %5205 = shalt.err (!%p5202_p1)
}
 0x131   : > { %s5206_s15 = scalar_lea.vmem %s785_s27, 6144  ;;  %p5214_p9 = scmp.lt.s32.totalorder %s785_s27, %s785_s27 }
 0x132   : > { %p5207_p4 = scmp.ne.s32.totalorder %s785_s27, %s5206_s15  ;;  %p5215_p10 = scmp.lt.s32.totalorder %s5206_s15, %s5206_s15 }
 0x134   : > { %p5209_p6 = pnand %p5207_p4, %p5479_p7  ;;  %p5216_p11 = por %p5215_p10, %p5214_p9 }
 0x136   : > { %p5210_p8 = pneg %p5209_p6 }
 0x138   : > { %p5217_p12 = pnand %p5216_p11, %p5210_p8 }
 0x13a   : > { %5220 = shalt.err (!%p5217_p12)
}
 0x13b   : > { %4763 = dma.hbm_to_vmem [thread:$0]  (!%p5463_p5), %s6319_s23, 6144, %s785_s27, [#allocation21], %s5293_s5, %s5293_s5, %s5294_s0  }
 0x13c   : > { %s5221_s8 = scalar_lea.hbm %s6320_s24, 16 }
 0x13d   : > { %p5222_p2 = scmp.ne.s32.totalorder %s6320_s24, %s5221_s8  ;;  %p5228_p0 = scmp.lt.u32.totalorder %s5221_s8, %s6320_s24 }
 0x13f   : > { %p5224_p3 = pnand %p5222_p2, %p5479_p7 }
 0x141   : > { %p5225_p13 = pneg %p5224_p3 }
 0x143   : > { %p5230_p1 = pnand %p5228_p0, %p5225_p13 }
 0x145   : > { %5233 = shalt.err (!%p5230_p1)
}
 0x146   : > { %s5234_s6 = scalar_lea.vmem %s799_s7, 16  ;;  %s5241_s5 = scalar_lea.vmem %s799_s7, 32 }
 0x147   : > { %p5235_p4 = scmp.ne.s32.totalorder %s799_s7, %s5234_s6  ;;  %p5242_p9 = scmp.lt.s32.totalorder %s799_s7, %s799_s7 }
 0x148   : > { %p5243_p10 = scmp.lt.s32.totalorder %s5241_s5, %s5234_s6 }
 0x149   : > { %p5237_p6 = pnand %p5235_p4, %p5479_p7 }
 0x14a   : > { %p5244_p11 = por %p5243_p10, %p5242_p9 }
 0x14b   : > { %p5238_p8 = pneg %p5237_p6 }
 0x14d   : > { %p5245_p12 = pnand %p5244_p11, %p5238_p8 }
 0x14f   : > { %5248 = shalt.err (!%p5245_p12)
}
 0x150   : > { %4766 = dma.hbm_to_vmem [thread:$0]  (!%p5463_p5), %s6320_s24, 16, %s799_s7, [#allocation24]  }
 0x151   : > { %s6353_s15 = sld [smem:[#allocation35_spill]] }
 0x157   : > { %p6354_p2 = scmp.ne.s32.totalorder %s6353_s15, 0 }
 0x158   : > { %s6355_s30 = sld [smem:[#allocation34_spill]] (!%p6354_p2) }
 0x159   : > { %818 = sbr.rel (%p6354_p2) target bundleno = 5104 (0x13f0), region = 120 }
 0x15e   : > { %p6356_p3 = scmp.eq.s32.totalorder (!%p6354_p2), %s6355_s30, 0 }
 0x160   : > { %5254 = dma.done.wait (%p6356_p3), [#allocation4], 32   ;;  %p6357_p7 = pmov %p6356_p3 }
 0x161   : > { %p6358_p13 = pmov %p6356_p3 }
 0x162   : > { %5256 = vsyncadd (%p6357_p7), [#allocation4], 4294967264 }
 0x163   : > { %5258 = dma.done.wait (%p6358_p13), [#allocation6], 4112   ;;  %p6359_p0 = pmov %p6356_p3 }
 0x165   : > { %5260 = vsyncadd (%p6359_p0), [#allocation6], 4294963184  ;;  %p6360_p1 = pmov %p6359_p0 }
 0x166   : > { %p6361_p5 = pmov %p6359_p0 }
 0x167   : > { %5262 = dma.done.wait (%p6360_p1), [#allocation9], 32  }
 0x168   : > { %5264 = vsyncadd (%p6361_p5), [#allocation9], 4294967264  ;;  %p6362_p4 = pmov %p6359_p0 }
 0x169   : > { %p6363_p6 = pmov %p6359_p0 }
 0x16a   : > { %5266 = dma.done.wait (%p6362_p4), [#allocation12], 2064  }
 0x16b   : > { %5268 = vsyncadd (%p6363_p6), [#allocation12], 4294965232  ;;  %p6364_p8 = pmov %p6359_p0 }
 0x16c   : > { %p6365_p9 = pmov %p6359_p0 }
 0x16d   : > { %5270 = dma.done.wait (%p6364_p8), [#allocation15], 32  }
 0x16e   : > { %5272 = vsyncadd (%p6365_p9), [#allocation15], 4294967264  ;;  %p6366_p10 = pmov %p6359_p0 }
 0x16f   : > { %p6367_p11 = pmov %p6359_p0 }
 0x170   : > { %5274 = dma.done.wait (%p6366_p10), [#allocation18], 6160  }
 0x171   : > { %5276 = vsyncadd (%p6367_p11), [#allocation18], 4294961136  ;;  %p6368_p12 = pmov %p6359_p0 }
 0x172   : > { %p6369_p2 = pmov %p6359_p0 }
 0x173   : > { %5278 = dma.done.wait (%p6368_p12), [#allocation21], 6160  }
 0x174   : > { %5280 = vsyncadd (%p6369_p2), [#allocation21], 4294961136  ;;  %p6370_p3 = pmov %p6359_p0 }
 0x175   : > { %p6371_p7 = pmov %p6359_p0 }
 0x176   : > { %5282 = dma.done.wait (%p6370_p3), [#allocation24], 16  }
 0x177   : > { %5284 = vsyncadd (%p6371_p7), [#allocation24], 4294967280  ;;  %v5305_v0 = vmov 0.0|0.0   ;;  %vm5306_vm0 = vmmov 0   ;;  %v5307_v1 = vmov 0.0   ;;  %s6372_s7 = sld [smem:[#allocation37_spill]] }
 0x178   : > { %4260 = vmatprep.subr.bf16.mxu0 %v5305_v0  ;;  %3760 = vmatprep.mubr.msk.f32.mxu0 %vm5306_vm0, %v5307_v1  ;;  %2612 = vst [vmem:[#allocation2] sm:$0x1] %v5307_v1  ;;  %2613 = vst [vmem:[#allocation2 + $0x9] sm:$0x1] %v5307_v1  ;;  %p936_p13 = scmp.lt.s32.totalorder %s6355_s30, 1  ;;  %s6373_s8 = sld [smem:[#allocation36_spill]] }
 0x179   : > { %3763 = vmatprep.subr.mxu1 %v5307_v1  ;;  %3765 = vmatprep.mubr.msk.f32.mxu1 %vm5306_vm0, %v5307_v1  ;;  %s6374_s26 = sld [smem:[#allocation38_spill]]  ;;  %vm1035_vm1 = vcmask 64512   ;;  %s6375_s0 = sld [smem:[#allocation41_spill]]  ;;  %v5308_v40 = vmov 0   ;;  %vm1427_vm4 = vcmask 130048  }
 0x17a   : > { %s6388_s30 = smov (!%p936_p13, %s6355_s30), 1  ;;  %s6376_s29 = sld [smem:[#allocation42_spill]]  ;;  %4824 = vset.pattern.permute.xlu0 %v5308_v40  ;;  %4825 = vset.pattern.permute.xlu1 %v5308_v40 }
 0x17b   : > { %s6334_s2 = sshll.u32 %s6388_s30, 3  ;;  %s6378_s9 = sld [smem:[#allocation39_spill]] }
 0x17c   : > { %s6379_s5 = sld [smem:[#allocation40_spill]]  ;;  %s6380_s25 = sld [smem:[#allocation44_spill]] }
 0x17d   : > { %v944_v2 = vld [vmem:[%s6372_s7] sm:$0xff]  ;;  %v945_v3 = vld [vmem:[%s6372_s7 + $0x8] sm:$0xff]  ;;  %v946_v4 = vld [vmem:[%s6372_s7 + $0x10] sm:$0xff]  ;;  %s6382_s15 = sld [smem:[#allocation43_spill]]  ;;  %s6383_s6 = sld [smem:[#allocation46_spill]] }
 0x17e   : > { %v5810_v5 = vpack.c.bf16 %v945_v3, %v944_v2  ;;  %v947_v6 = vld [vmem:[%s6372_s7 + $0x18] sm:$0xff]  ;;  %v948_v8 = vld [vmem:[%s6372_s7 + $0x20] sm:$0xff]  ;;  %v949_v9 = vld [vmem:[%s6372_s7 + $0x28] sm:$0xff]  ;;  %s939_s3 = scalar_lea.vmem %s6373_s8, %s6334_s2  ;;  %s6384_s27 = sshll.u32 %s6388_s30, 3 }
 0x17f   : > { %v5816_v7 = vpack.c.bf16 %v947_v6, %v946_v4  ;;  %v5826_v10 = vpack.c.bf16 %v949_v9, %v948_v8  ;;  %v950_v11 = vld [vmem:[%s6372_s7 + $0x30] sm:$0xff]  ;;  %v951_v12 = vld [vmem:[%s6372_s7 + $0x38] sm:$0xff]  ;;  %v952_v14 = vld [vmem:[%s6372_s7 + $0x40] sm:$0xff]  ;;  %s6385_s28 = sld [smem:[#allocation47_spill]] }
 0x180   : > { %4262 = vmatpush3.bf16.msra.mxu0 %v5810_v5  ;;  %v5836_v13 = vpack.c.bf16 %v951_v12, %v950_v11  ;;  %v953_v15 = vld [vmem:[%s6372_s7 + $0x48] sm:$0xff]  ;;  %v954_v17 = vld [vmem:[%s6372_s7 + $0x50] sm:$0xff]  ;;  %v955_v18 = vld [vmem:[%s6372_s7 + $0x58] sm:$0xff]  ;;  %s6377_s1 = smov %s6376_s29 }
 0x181   : > { %4263 = vmatprep.subr.bf16.mxu0 %v5305_v0  ;;  %v5846_v16 = vpack.c.bf16 %v953_v15, %v952_v14  ;;  %v5857_v19 = vpack.c.bf16 %v955_v18, %v954_v17  ;;  %v956_v20 = vld [vmem:[%s6372_s7 + $0x60] sm:$0xff]  ;;  %v957_v21 = vld [vmem:[%s6372_s7 + $0x68] sm:$0xff]  ;;  %v958_v23 = vld [vmem:[%s6372_s7 + $0x70] sm:$0xff] }
 0x182   : > { %v5870_v22 = vpack.c.bf16 %v957_v21, %v956_v20  ;;  %v959_v24 = vld [vmem:[%s6372_s7 + $0x78] sm:$0xff]  ;;  %v5890_v26 = vld [vmem:[%s939_s3] sm:$0xff]  ;;  %v1274_v41 = vld [vmem:[%s6377_s1 + $0x8] sm:$0xff] }
 0x183   : > { %v5881_v25 = vpack.c.bf16 %v959_v24, %v958_v23  ;;  %v5899_v27 = vld [vmem:[%s6374_s26] sm:$0xff]  ;;  %v1272_v51 = vld [vmem:[%s6375_s0 + $0x8] sm:$0xff] }
 0x184   : > { %4265 = vmatpush3.bf16.msra.mxu0 %v5816_v7  ;;  %3764 = vmatpush3.msra.mxu1 %v5899_v27  ;;  %v1271_v38 = vld [vmem:[%s6375_s0] sm:$0xff] }
 0x185   : > { %4266 = vmatprep.subr.bf16.mxu0 %v5305_v0  ;;  %4284 = vmatprep.subr.bf16.mxu1 %v5305_v0  ;;  %v1273_v39 = vld [vmem:[%s6376_s29] sm:$0xff] }
 0x186   : > { %1279 = vperm.xlu0 %4824, %v1273_v39   ;;  %v3417_v46 = vld [vmem:[%s6378_s9] ss:$0 sm:$0xff]  ;;  %s6381_s9 = sld [smem:[#allocation45_spill]] }
 0x187   : > { %v3418_v48 = vld [vmem:[%s6379_s5] ss:$0 sm:$0xff] }
 0x188   : > { %4268 = vmatpush3.bf16.msra.mxu0 %v5826_v10  ;;  %v1276_v52 = vld [vmem:[%s6380_s25] sm:$0xff]  ;;  %s943_s25 = scalar_lea.vmem %s6385_s28, %s6384_s27 }
 0x189   : > { %4269 = vmatprep.subr.bf16.mxu0 %v5305_v0  ;;  %1424 = vperm.xlu1 %4825, %v1276_v52  }
 0x18a   : > { %1284 = vperm.xlu0 %4824, %v1274_v41  }
 0x18c   : > { %4271 = vmatpush3.bf16.msra.mxu0 %v5836_v13  ;;  %v1502_v53 = vld [vmem:[%s6381_s9 + $0x8] sm:$0xff]  ;;  %v1504_v54 = vld [vmem:[%s6381_s9 + $0x18] sm:$0xff]  ;;  %v1501_v56 = vld [vmem:[%s6381_s9] sm:$0xff] }
 0x18d   : > { %4272 = vmatprep.subr.bf16.mxu0 %v5305_v0  ;;  %v4311_v55 = vpack.c.bf16 %v1504_v54, %v1502_v53  ;;  %v1503_v57 = vld [vmem:[%s6381_s9 + $0x10] sm:$0xff]  ;;  %v1506_v58 = vld [vmem:[%s6381_s9 + $0x28] sm:$0xff]  ;;  %v1508_v60 = vld [vmem:[%s6381_s9 + $0x38] sm:$0xff] }
 0x18e   : > { %v4313_v59 = vpack.c.bf16 %v1503_v57, %v1501_v56  ;;  %v1505_v61 = vld [vmem:[%s6381_s9 + $0x20] sm:$0xff]  ;;  %v1507_v62 = vld [vmem:[%s6381_s9 + $0x30] sm:$0xff]  ;;  %v4315_v63 = vpack.c.bf16 %v1508_v60, %v1506_v58  ;;  %v1510_v2 = vld [vmem:[%s6381_s9 + $0x48] sm:$0xff] }
 0x18f   : > { %v1512_v3 = vld [vmem:[%s6381_s9 + $0x58] sm:$0xff]  ;;  %v4317_v4 = vpack.c.bf16 %v1507_v62, %v1505_v61  ;;  %v1509_v8 = vld [vmem:[%s6381_s9 + $0x40] sm:$0xff]  ;;  %v1511_v9 = vld [vmem:[%s6381_s9 + $0x50] sm:$0xff] }
 0x190   : > { %4274 = vmatpush3.bf16.msra.mxu0 %v5846_v16  ;;  %v4319_v6 = vpack.c.bf16 %v1512_v3, %v1510_v2  ;;  %v1514_v11 = vld [vmem:[%s6381_s9 + $0x68] sm:$0xff]  ;;  %v1516_v12 = vld [vmem:[%s6381_s9 + $0x78] sm:$0xff]  ;;  %v4321_v14 = vpack.c.bf16 %v1511_v9, %v1509_v8  ;;  %v1513_v17 = vld [vmem:[%s6381_s9 + $0x60] sm:$0xff] }
 0x191   : > { %4275 = vmatprep.subr.bf16.mxu0 %v5305_v0  ;;  %v4323_v15 = vpack.c.bf16 %v1516_v12, %v1514_v11  ;;  %v1515_v18 = vld [vmem:[%s6381_s9 + $0x70] sm:$0xff]  ;;  %v1518_v20 = vld [vmem:[%s6381_s9 + $0x88] sm:$0xff]  ;;  %v1520_v21 = vld [vmem:[%s6381_s9 + $0x98] sm:$0xff] }
 0x192   : > { %v4325_v23 = vpack.c.bf16 %v1515_v18, %v1513_v17  ;;  %v4327_v24 = vpack.c.bf16 %v1520_v21, %v1518_v20  ;;  %v1525_v40 = vld [vmem:[%s6381_s9 + $0xc0] sm:$0xff]  ;;  %v1527_v41 = vld [vmem:[%s6381_s9 + $0xd0] sm:$0xff] }
 0x194   : > { %4277 = vmatpush3.bf16.msra.mxu0 %v5857_v19 }
 0x195   : > { %4278 = vmatprep.subr.bf16.mxu0 %v5305_v0 }
 0x198   : > { %4280 = vmatpush3.bf16.msra.mxu0 %v5870_v22 }
 0x199   : > { %4281 = vmatprep.subr.bf16.mxu0 %v5305_v0 }
 0x19c   : > { %4283 = vmatpush3.bf16.msra.mxu0 %v5881_v25 }
 0x19d   : > { %3803 = vmatprep.subr.mxu0 %v5307_v1 }
 0x19f   : > { %3761 = vmatmul.mubr.f32.vlgmr.msra.gmra.mrb[0].mxu0 %v5890_v26 }
 0x1a0   : > { %3805 = vmatprep.mubr.msk.f32.mxu0 %vm5306_vm0, %v5307_v1  ;;  %3804 = vmatpush3.msra.mxu0 %v5899_v27 }
 0x1a1   : > { %4308 = vmatprep.subr.bf16.mxu0 %v5305_v0 }
 0x272   : > { %v1030_v28 = vpop.f32.mrb[0].mxu0 }
 0x273   : > { %v1034_v29 = vmul.f32 0.0625, %v1030_v28  ;;  %v3762_v30 = vpop.f32.mrb[1].mxu0  ;;  %v1517_v28 = vld [vmem:[%s6381_s9 + $0x80] sm:$0xff] }
 0x274   : > { %v1522_v30 = vld [vmem:[%s6381_s9 + $0xa8] sm:$0xff] }
 0x275   : > { %3766 = vmatmul.mubr.msk.f32.vlgmr.msra.gmra.mrb[0].mxu1 %vm1035_vm1, %v1034_v29  ;;  %v1519_v29 = vld [vmem:[%s6381_s9 + $0x90] sm:$0xff] }
 0x276   : > { %4286 = vmatpush3.bf16.msra.mxu1 %v5810_v5  ;;  %3800 = vmatprep.mubr.msk.f32.mxu1 %vm5306_vm0, %v5307_v1 }
 0x277   : > { %4287 = vmatprep.subr.bf16.mxu1 %v5305_v0 }
 0x27a   : > { %4289 = vmatpush3.bf16.msra.mxu1 %v5816_v7 }
 0x27b   : > { %4290 = vmatprep.subr.bf16.mxu1 %v5305_v0 }
 0x27e   : > { %4292 = vmatpush3.bf16.msra.mxu1 %v5826_v10 }
 0x27f   : > { %4293 = vmatprep.subr.bf16.mxu1 %v5305_v0 }
 0x282   : > { %4295 = vmatpush3.bf16.msra.mxu1 %v5836_v13 }
 0x283   : > { %4296 = vmatprep.subr.bf16.mxu1 %v5305_v0 }
 0x286   : > { %4298 = vmatpush3.bf16.msra.mxu1 %v5846_v16 }
 0x287   : > { %4299 = vmatprep.subr.bf16.mxu1 %v5305_v0 }
 0x28a   : > { %4301 = vmatpush3.bf16.msra.mxu1 %v5857_v19 }
 0x28b   : > { %4302 = vmatprep.subr.bf16.mxu1 %v5305_v0 }
 0x28e   : > { %4304 = vmatpush3.bf16.msra.mxu1 %v5870_v22 }
 0x28f   : > { %4305 = vmatprep.subr.bf16.mxu1 %v5305_v0 }
 0x292   : > { %4307 = vmatpush3.bf16.msra.mxu1 %v5881_v25 }
 0x348   : > { %v1105_v31 = vpop.f32.mrb[0].mxu1 }
 0x349   : > { %v1109_v32 = vsub.f32 %v5890_v26, %v1105_v31  ;;  %v3767_v33 = vpop.f32.mrb[1].mxu1  ;;  %v1524_v31 = vld [vmem:[%s6381_s9 + $0xb8] sm:$0xff] }
 0x34a   : > { %v4331_v33 = vpack.c.bf16 %v1524_v31, %v1522_v30 }
 0x34b   : > { %v1110_v34 = vmul.f32 %v1109_v32, %v1109_v32 }
 0x34d   : > { %3801 = vmatmul.mubr.f32.vlgmr.msra.gmra.mrb[2].mxu1 %v1110_v34  ;;  %v1521_v34 = vld [vmem:[%s6381_s9 + $0xa0] sm:$0xff] }
 0x34e   : > { %3810 = vmatprep.mubr.msk.f32.mxu1 %vm1035_vm1, %v1271_v38 }
 0x420   : > { %v1177_v35 = vpop.f32.mrb[2].mxu1 }
 0x421   : > { %v1181_v36 = vmul.f32 0.0625, %v1177_v35  ;;  %v3802_v37 = vpop.f32.mrb[3].mxu1  ;;  %v1523_v35 = vld [vmem:[%s6381_s9 + $0xb0] sm:$0xff] }
 0x422   : > { %v1528_v37 = vld [vmem:[%s6381_s9 + $0xd8] sm:$0xff]  ;;  %v4333_v38 = vpack.c.bf16 %v1523_v35, %v1521_v34 }
 0x423   : > { %3806 = vmatmul.mubr.msk.f32.vlgmr.msra.gmra.mrb[2].mxu0 %vm1035_vm1, %v1181_v36  ;;  %v1526_v36 = vld [vmem:[%s6381_s9 + $0xc8] sm:$0xff] }
 0x424   : > { %3817 = vmatprep.mubr.msk.f32.mxu0 %vm5306_vm0, %v5307_v1  ;;  %v4335_v39 = vpack.c.bf16 %v1528_v37, %v1526_v36 }
 0x4f6   : > { %v1251_v42 = vpop.f32.mrb[2].mxu0 }
 0x4f7   : > { %v1252_v43 = vadd.f32 1e-05, %v1251_v42  ;;  %v3807_v44 = vpop.f32.mrb[3].mxu0  ;;  %v1530_v42 = vld [vmem:[%s6381_s9 + $0xe8] sm:$0xff] }
 0x4f8   : > { %v4337_v44 = vpack.c.bf16 %v1527_v41, %v1525_v40 }
 0x4f9   : > { %4826 = vrsqrt.f32 %v1252_v43  ;;  %v1532_v43 = vld [vmem:[%s6381_s9 + $0xf8] sm:$0xff] }
 0x503   : > { %v4827_v45 = vpop.eup %4826 }
 0x504   : > { %v1256_v47 = vmul.f32 %v4827_v45, %v1109_v32  ;;  %v4329_v32 = vpack.c.bf16 %v1519_v29, %v1517_v28  ;;  %v4339_v45 = vpack.c.bf16 %v1532_v43, %v1530_v42 }
 0x506   : > { %v1263_v49 = vmul.f32 %v3417_v46, %v1256_v47  ;;  %v1280_v46 = vpop.permute.xlu0 %1279 }
 0x508   : > { %v1270_v50 = vadd.f32 %v3418_v48, %v1263_v49 }
 0x50a   : > { %3808 = vmatprep.subr.mxu1 %v1270_v50  ;;  %v1285_v47 = vpop.permute.xlu0 %1284 }
 0x50b   : > { %3809 = vmatpush3.msra.mxu1 %v1270_v50 }
 0x50c   : > { %3811 = vmatmul.mubr.msk.f32.vlgmr.msra.gmra.mrb[4].mxu1 %vm1035_vm1, %v1272_v51  ;;  %4312 = vmatprep.subr.bf16.mxu1 %v4311_v55 }
 0x50d   : > { %1609 = vmatprep.mubr.f32.mxu1 %v5307_v1  ;;  %4314 = vmatpush1.bf16.msra.mxu1 %v4313_v59 }
 0x50e   : > { %4316 = vmatprep.subr.bf16.mxu1 %v4315_v63 }
 0x511   : > { %4318 = vmatpush1.bf16.msra.mxu1 %v4317_v4 }
 0x512   : > { %4320 = vmatprep.subr.bf16.mxu1 %v4319_v6 }
 0x515   : > { %4322 = vmatpush1.bf16.msra.mxu1 %v4321_v14 }
 0x516   : > { %4324 = vmatprep.subr.bf16.mxu1 %v4323_v15 }
 0x519   : > { %4326 = vmatpush1.bf16.msra.mxu1 %v4325_v23 }
 0x51a   : > { %4328 = vmatprep.subr.bf16.mxu1 %v4327_v24 }
 0x51d   : > { %4330 = vmatpush1.bf16.msra.mxu1 %v4329_v32 }
 0x51e   : > { %4332 = vmatprep.subr.bf16.mxu1 %v4331_v33 }
 0x521   : > { %4334 = vmatpush1.bf16.msra.mxu1 %v4333_v38 }
 0x522   : > { %4336 = vmatprep.subr.bf16.mxu1 %v4335_v39  ;;  %v5309_v39 = vmov -1.0  }
 0x525   : > { %4338 = vmatpush1.bf16.msra.mxu1 %v4337_v44 }
 0x526   : > { %4340 = vmatprep.subr.bf16.mxu1 %v4339_v45 }
 0x5df   : > { %v3812_v48 = vpop.f32.mrb[4].mxu1 }
 0x5e0   : > { %v1365_v49 = vadd.f32 %v3812_v48, %v1285_v47  ;;  %v1359_v50 = vpop.f32.mrb[5].mxu1 }
 0x5e1   : > { %v1360_v51 = vadd.f32 %v1359_v50, %v1280_v46 }
 0x5e2   : > { %v1371_v52 = vmul.f32 0.70710677, %v1365_v49  ;;  %v1369_v45 = vmul.f32 0.5, %v1365_v49  ;;  %v1531_v49 = vld [vmem:[%s6381_s9 + $0xf0] sm:$0xff] }
 0x5e3   : > { %v1370_v53 = vmul.f32 0.70710677, %v1360_v51  ;;  %v1368_v47 = vmul.f32 0.5, %v1360_v51 }
 0x5e4   : > { %v1377_v54 = vand.u32 2147483647, %v1371_v52  ;;  %vm1373_vm2 = vcmp.ge.f32.partialorder %v1371_v52, 0.0  ;;  %v1275_v52 = vld [vmem:[%s6382_s15] sm:$0xff] }
 0x5e5   : > { %v1376_v55 = vand.u32 2147483647, %v1370_v53  ;;  %vm1372_vm3 = vcmp.ge.f32.partialorder %v1370_v53, 0.0  ;;  %v1375_v40 = vsel %vm1373_vm2, 1.0, %v5309_v39  ;;  %v1529_v53 = vld [vmem:[%s6381_s9 + $0xe0] sm:$0xff] }
 0x5e6   : > { %v1379_v56 = vmul.f32 0.3275911, %v1377_v54  ;;  %v1405_v60 = vsub.f32 0.0, %v1377_v54  ;;  %v1374_v43 = vsel %vm1372_vm3, 1.0, %v5309_v39  ;;  %v4341_v51 = vpack.c.bf16 %v1531_v49, %v1529_v53  ;;  %v1684_v49 = vld [vmem:[#allocation5 + $0x70] sm:$0xff] }
 0x5e7   : > { %v1378_v57 = vmul.f32 0.3275911, %v1376_v55  ;;  %v1404_v61 = vsub.f32 0.0, %v1376_v55 }
 0x5e8   : > { %v1381_v58 = vadd.f32 1.0, %v1379_v56  ;;  %v1407_v63 = vmul.f32 %v1405_v60, %v1377_v54  ;;  %4342 = vmatpush1.bf16.msra.mxu1 %v4341_v51  ;;  %v1425_v56 = vpop.permute.xlu1 %1424  ;;  %v1686_v60 = vld [vmem:[#allocation5 + $0x80] sm:$0xff]  ;;  %v1685_v51 = vld [vmem:[#allocation5 + $0x78] sm:$0xff] }
 0x5e9   : > { %v1380_v59 = vadd.f32 1.0, %v1378_v57  ;;  %v1406_v4 = vmul.f32 %v1404_v61, %v1376_v55  ;;  %4375 = vmatprep.subr.bf16.mxu1 %v5305_v0  ;;  %v1687_v61 = vld [vmem:[#allocation5 + $0x88] sm:$0xff] }
 0x5ea   : > { %4828 = vrcp.f32 %v1381_v58  ;;  %v1410_v9 = vmul.f32 1.442695, %v1407_v63  ;;  %v1670_v63 = vld [vmem:[#allocation5] sm:$0xff] }
 0x5eb   : > { %4830 = vrcp.f32 %v1380_v59  ;;  %v1408_v14 = vmul.f32 1.442695, %v1406_v4  ;;  %v1688_v4 = vld [vmem:[#allocation5 + $0x90] sm:$0xff] }
 0x5ec   : > { %4832 = vpow2.f32 %v1410_v9  ;;  %v1672_v9 = vld [vmem:[#allocation5 + $0x10] sm:$0xff] }
 0x5ed   : > { %4834 = vpow2.f32 %v1408_v14  ;;  %v1690_v14 = vld [vmem:[#allocation5 + $0xa0] sm:$0xff] }
 0x5f4   : > { %v4829_v62 = vpop.eup %4828 }
 0x5f5   : > { %v4831_v2 = vpop.eup %4830  ;;  %v1387_v3 = vmul.f32 1.0614054, %v4829_v62 }
 0x5f6   : > { %v1386_v6 = vmul.f32 1.0614054, %v4831_v2  ;;  %v4833_v33 = vpop.eup %4832 }
 0x5f7   : > { %v1389_v8 = vadd.f32 -1.4531521, %v1387_v3  ;;  %v4835_v35 = vpop.eup %4834 }
 0x5f8   : > { %v1388_v11 = vadd.f32 -1.4531521, %v1386_v6  ;;  %v1689_v6 = vld [vmem:[#allocation5 + $0x98] sm:$0xff] }
 0x5f9   : > { %v1391_v12 = vmul.f32 %v4829_v62, %v1389_v8  ;;  %v4347_v8 = vpack.c.bf16 %v1689_v6, %v1688_v4 }
 0x5fa   : > { %v1390_v15 = vmul.f32 %v4831_v2, %v1388_v11  ;;  %v1673_v11 = vld [vmem:[#allocation5 + $0x18] sm:$0xff] }
 0x5fb   : > { %v1393_v17 = vadd.f32 1.4214138, %v1391_v12  ;;  %v4349_v12 = vpack.c.bf16 %v1673_v11, %v1672_v9 }
 0x5fc   : > { %v1392_v18 = vadd.f32 1.4214138, %v1390_v15  ;;  %v1691_v15 = vld [vmem:[#allocation5 + $0xa8] sm:$0xff] }
 0x5fd   : > { %v1395_v20 = vmul.f32 %v4829_v62, %v1393_v17  ;;  %v4351_v17 = vpack.c.bf16 %v1691_v15, %v1690_v14 }
 0x5fe   : > { %v1394_v21 = vmul.f32 %v4831_v2, %v1392_v18  ;;  %v1674_v18 = vld [vmem:[#allocation5 + $0x20] sm:$0xff] }
 0x5ff   : > { %v1397_v23 = vadd.f32 -0.28449672, %v1395_v20  ;;  %v1675_v20 = vld [vmem:[#allocation5 + $0x28] sm:$0xff] }
 0x600   : > { %v1396_v24 = vadd.f32 -0.28449672, %v1394_v21  ;;  %v4353_v21 = vpack.c.bf16 %v1675_v20, %v1674_v18 }
 0x601   : > { %v1399_v28 = vmul.f32 %v4829_v62, %v1397_v23  ;;  %v1692_v23 = vld [vmem:[#allocation5 + $0xb0] sm:$0xff] }
 0x602   : > { %v1398_v29 = vmul.f32 %v4831_v2, %v1396_v24  ;;  %v1693_v24 = vld [vmem:[#allocation5 + $0xb8] sm:$0xff] }
 0x603   : > { %v1401_v30 = vadd.f32 0.2548296, %v1399_v28  ;;  %v4355_v28 = vpack.c.bf16 %v1693_v24, %v1692_v23 }
 0x604   : > { %v1400_v31 = vadd.f32 0.2548296, %v1398_v29  ;;  %v1676_v29 = vld [vmem:[#allocation5 + $0x30] sm:$0xff] }
 0x605   : > { %v1403_v32 = vmul.f32 %v4829_v62, %v1401_v30  ;;  %v4343_v62 = vpack.c.bf16 %v1687_v61, %v1686_v60  ;;  %v1677_v30 = vld [vmem:[#allocation5 + $0x38] sm:$0xff] }
 0x606   : > { %v1402_v34 = vmul.f32 %v4831_v2, %v1400_v31  ;;  %v1671_v2 = vld [vmem:[#allocation5 + $0x8] sm:$0xff]  ;;  %v4357_v31 = vpack.c.bf16 %v1677_v30, %v1676_v29  ;;  %v1533_v60 = vld [vmem:[#allocation3] sm:$0x3] }
 0x607   : > { %v1413_v36 = vmul.f32 %v4833_v33, %v1403_v32  ;;  %v4345_v3 = vpack.c.bf16 %v1671_v2, %v1670_v63  ;;  %v1694_v32 = vld [vmem:[#allocation5 + $0xc0] sm:$0xff]  ;;  %v1695_v33 = vld [vmem:[#allocation5 + $0xc8] sm:$0xff] }
 0x608   : > { %v1412_v37 = vmul.f32 %v4835_v35, %v1402_v34  ;;  %v4359_v34 = vpack.c.bf16 %v1695_v33, %v1694_v32  ;;  %v1678_v35 = vld [vmem:[#allocation5 + $0x40] sm:$0xff] }
 0x609   : > { %v1415_v38 = vsub.f32 1.0, %v1413_v36  ;;  %v1679_v36 = vld [vmem:[#allocation5 + $0x48] sm:$0xff] }
 0x60a   : > { %v1414_v41 = vsub.f32 1.0, %v1412_v37  ;;  %v4361_v37 = vpack.c.bf16 %v1679_v36, %v1678_v35 }
 0x60b   : > { %v1417_v42 = vmul.f32 %v1415_v38, %v1375_v40  ;;  %v1696_v38 = vld [vmem:[#allocation5 + $0xd0] sm:$0xff]  ;;  %v1697_v40 = vld [vmem:[#allocation5 + $0xd8] sm:$0xff] }
 0x60c   : > { %v1416_v44 = vmul.f32 %v1414_v41, %v1374_v43  ;;  %v4363_v41 = vpack.c.bf16 %v1697_v40, %v1696_v38  ;;  %v1681_v43 = vld [vmem:[#allocation5 + $0x58] sm:$0xff] }
 0x60d   : > { %v1419_v46 = vadd.f32 1.0, %v1417_v42  ;;  %v1680_v42 = vld [vmem:[#allocation5 + $0x50] sm:$0xff] }
 0x60e   : > { %v1418_v48 = vadd.f32 1.0, %v1416_v44  ;;  %v4365_v44 = vpack.c.bf16 %v1681_v43, %v1680_v42 }
 0x60f   : > { %v1421_v50 = vmul.f32 %v1419_v46, %v1369_v45  ;;  %v1698_v45 = vld [vmem:[#allocation5 + $0xe0] sm:$0xff]  ;;  %v1699_v46 = vld [vmem:[#allocation5 + $0xe8] sm:$0xff] }
 0x610   : > { %v1420_v54 = vmul.f32 %v1418_v48, %v1368_v47  ;;  %v4367_v47 = vpack.c.bf16 %v1699_v46, %v1698_v45  ;;  %v1682_v48 = vld [vmem:[#allocation5 + $0x60] sm:$0xff] }
 0x612   : > { %v4309_v55 = vpack.c.bf16 %v1421_v50, %v1420_v54  ;;  %v1683_v50 = vld [vmem:[#allocation5 + $0x68] sm:$0xff] }
 0x613   : > { %v4369_v54 = vpack.c.bf16 %v1683_v50, %v1682_v48 }
 0x614   : > { %4310 = vmatpush3.bf16.msra.mxu0 %v4309_v55  ;;  %v1700_v55 = vld [vmem:[#allocation5 + $0xf0] sm:$0xff] }
 0x615   : > { %4344 = vmatprep.subr.bf16.mxu0 %v4343_v62 }
 0x617   : > { %3818 = vmatmul.mubr.msk.f32.vlgmr.msra.gmra.mrb[4].mxu0 %vm1427_vm4, %v1275_v52  ;;  %v1701_v52 = vld [vmem:[#allocation5 + $0xf8] sm:$0xff] }
 0x618   : > { %4346 = vmatpush3.bf16.msra.mxu0 %v4345_v3  ;;  %v4371_v53 = vpack.c.bf16 %v1701_v52, %v1700_v55 }
 0x619   : > { %4348 = vmatprep.subr.bf16.mxu0 %v4347_v8 }
 0x61c   : > { %4350 = vmatpush3.bf16.msra.mxu0 %v4349_v12 }
 0x61d   : > { %4352 = vmatprep.subr.bf16.mxu0 %v4351_v17 }
 0x620   : > { %4354 = vmatpush3.bf16.msra.mxu0 %v4353_v21 }
 0x621   : > { %4356 = vmatprep.subr.bf16.mxu0 %v4355_v28 }
 0x624   : > { %4358 = vmatpush3.bf16.msra.mxu0 %v4357_v31 }
 0x625   : > { %4360 = vmatprep.subr.bf16.mxu0 %v4359_v34 }
 0x628   : > { %4362 = vmatpush3.bf16.msra.mxu0 %v4361_v37 }
 0x629   : > { %4364 = vmatprep.subr.bf16.mxu0 %v4363_v41 }
 0x62c   : > { %4366 = vmatpush3.bf16.msra.mxu0 %v4365_v44 }
 0x62d   : > { %4368 = vmatprep.subr.bf16.mxu0 %v4367_v47 }
 0x630   : > { %4370 = vmatpush3.bf16.msra.mxu0 %v4369_v54 }
 0x631   : > { %4372 = vmatprep.subr.bf16.mxu0 %v4371_v53 }
 0x6ea   : > { %v1497_v57 = vpop.f32.mrb[4].mxu0 }
 0x6eb   : > { %v1498_v58 = vadd.f32 %v1497_v57, %v1425_v56  ;;  %v3819_v59 = vpop.f32.mrb[5].mxu0  ;;  %v4373_v56 = vpack.c.bf16 %v1685_v51, %v1684_v49  ;;  %v1535_v57 = vlaneseq }
 0x6ed   : > { %1610 = vmatmul.mubr.f32.vlgmr.msra.gmra.mrb[6].mxu1 %v1498_v58  ;;  %4374 = vmatpush3.bf16.msra.mxu0 %v4373_v56  ;;  %v1536_v58 = vshrl.u32 %v1535_v57, 7 }
 0x6ee   : > { %4377 = vmatpush3.bf16.msra.mxu1 %v5810_v5  ;;  %3852 = vmatprep.mubr.msk.f32.mxu1 %vm5306_vm0, %v5307_v1 }
 0x6ef   : > { %4378 = vmatprep.subr.bf16.mxu1 %v5305_v0  ;;  %3855 = vmatprep.subr.mxu0 %v5307_v1  ;;  %v1537_v59 = vsub.s32 0, %v1536_v58  ;;  %v1541_v61 = vsub.s32 1, %v1536_v58 }
 0x6f1   : > { %v1538_v62 = vrot.slane %v1533_v60, %v1537_v59  ;;  %v1542_v63 = vrot.slane %v1533_v60, %v1541_v61 }
 0x6f2   : > { %4380 = vmatpush3.bf16.msra.mxu1 %v5816_v7 }
 0x6f3   : > { %4381 = vmatprep.subr.bf16.mxu1 %v5305_v0 }
 0x6f6   : > { %4383 = vmatpush3.bf16.msra.mxu1 %v5826_v10 }
 0x6f7   : > { %4384 = vmatprep.subr.bf16.mxu1 %v5305_v0 }
 0x6fa   : > { %4386 = vmatpush3.bf16.msra.mxu1 %v5836_v13 }
 0x6fb   : > { %4387 = vmatprep.subr.bf16.mxu1 %v5305_v0 }
 0x6fe   : > { %4389 = vmatpush3.bf16.msra.mxu1 %v5846_v16 }
 0x6ff   : > { %4390 = vmatprep.subr.bf16.mxu1 %v5305_v0 }
 0x702   : > { %4392 = vmatpush3.bf16.msra.mxu1 %v5857_v19 }
 0x703   : > { %4393 = vmatprep.subr.bf16.mxu1 %v5305_v0 }
 0x706   : > { %4395 = vmatpush3.bf16.msra.mxu1 %v5870_v22 }
 0x707   : > { %4396 = vmatprep.subr.bf16.mxu1 %v5305_v0 }
 0x70a   : > { %4398 = vmatpush3.bf16.msra.mxu1 %v5881_v25 }
 0x70b   : > { %3895 = vmatprep.subr.mxu1 %v5307_v1 }
 0x7c0   : > { %v1611_v2 = vpop.f32.mrb[6].mxu1 }
 0x7c1   : > { %v1612_v3 = vadd.f32 %v1611_v2, %v1538_v62  ;;  %v1613_v4 = vpop.f32.mrb[7].mxu1 }
 0x7c2   : > { %v1614_v6 = vadd.f32 %v1613_v4, %v1542_v63 }
 0x7c3   : > { %v1618_v8 = vmul.f32 0.70710677, %v1612_v3  ;;  %v1616_v2 = vmul.f32 0.5, %v1612_v3 }
 0x7c4   : > { %v1619_v9 = vmul.f32 0.70710677, %v1614_v6  ;;  %v1617_v62 = vmul.f32 0.5, %v1614_v6 }
 0x7c5   : > { %v1624_v11 = vand.u32 2147483647, %v1618_v8  ;;  %vm1620_vm5 = vcmp.ge.f32.partialorder %v1618_v8, 0.0 }
 0x7c6   : > { %v1625_v12 = vand.u32 2147483647, %v1619_v9  ;;  %vm1621_vm6 = vcmp.ge.f32.partialorder %v1619_v9, 0.0  ;;  %v1622_v56 = vsel %vm1620_vm5, 1.0, %v5309_v39 }
 0x7c7   : > { %v1626_v14 = vmul.f32 0.3275911, %v1624_v11  ;;  %v1652_v20 = vsub.f32 0.0, %v1624_v11  ;;  %v1623_v59 = vsel %vm1621_vm6, 1.0, %v5309_v39 }
 0x7c8   : > { %v1627_v15 = vmul.f32 0.3275911, %v1625_v12  ;;  %v1653_v21 = vsub.f32 0.0, %v1625_v12 }
 0x7c9   : > { %v1628_v17 = vadd.f32 1.0, %v1626_v14  ;;  %v1654_v24 = vmul.f32 %v1652_v20, %v1624_v11  ;;  %v3422_v14 = vld [vmem:[#allocation7] ss:$0 sm:$0xff] }
 0x7ca   : > { %v1629_v18 = vadd.f32 1.0, %v1627_v15  ;;  %v1655_v30 = vmul.f32 %v1653_v21, %v1625_v12 }
 0x7cb   : > { %4836 = vrcp.f32 %v1628_v17  ;;  %v1656_v33 = vmul.f32 1.442695, %v1654_v24  ;;  %v2090_v24 = vld [vmem:[%s6383_s6 + $0x8] sm:$0xff] }
 0x7cc   : > { %4838 = vrcp.f32 %v1629_v18  ;;  %v1658_v36 = vmul.f32 1.442695, %v1655_v30 }
 0x7cd   : > { %4840 = vpow2.f32 %v1656_v33  ;;  %v2092_v33 = vld [vmem:[%s6383_s6 + $0x18] sm:$0xff] }
 0x7ce   : > { %4842 = vpow2.f32 %v1658_v36  ;;  %v2094_v36 = vld [vmem:[%s6383_s6 + $0x28] sm:$0xff] }
 0x7d5   : > { %v4837_v23 = vpop.eup %4836 }
 0x7d6   : > { %v4839_v28 = vpop.eup %4838  ;;  %v1634_v29 = vmul.f32 1.0614054, %v4837_v23 }
 0x7d7   : > { %v1635_v31 = vmul.f32 1.0614054, %v4839_v28  ;;  %v4841_v54 = vpop.eup %4840 }
 0x7d8   : > { %v1636_v32 = vadd.f32 -1.4531521, %v1634_v29  ;;  %v4843_v52 = vpop.eup %4842 }
 0x7d9   : > { %v1637_v34 = vadd.f32 -1.4531521, %v1635_v31 }
 0x7da   : > { %v1638_v35 = vmul.f32 %v4837_v23, %v1636_v32  ;;  %v2091_v32 = vld [vmem:[%s6383_s6 + $0x10] sm:$0xff] }
 0x7db   : > { %v1639_v37 = vmul.f32 %v4839_v28, %v1637_v34  ;;  %v4427_v34 = vpack.c.bf16 %v2092_v33, %v2091_v32  ;;  %v2224_v32 = vld [vmem:[#allocation13 + $0x78] sm:$0xff] }
 0x7dc   : > { %v1640_v38 = vadd.f32 1.4214138, %v1638_v35  ;;  %v2093_v35 = vld [vmem:[%s6383_s6 + $0x20] sm:$0xff] }
 0x7dd   : > { %v1641_v40 = vadd.f32 1.4214138, %v1639_v37  ;;  %v4430_v37 = vpack.c.bf16 %v2094_v36, %v2093_v35 }
 0x7de   : > { %v1642_v41 = vmul.f32 %v4837_v23, %v1640_v38  ;;  %v2095_v38 = vld [vmem:[%s6383_s6 + $0x30] sm:$0xff] }
 0x7df   : > { %v1643_v42 = vmul.f32 %v4839_v28, %v1641_v40  ;;  %v2096_v40 = vld [vmem:[%s6383_s6 + $0x38] sm:$0xff] }
 0x7e0   : > { %v1644_v43 = vadd.f32 -0.28449672, %v1642_v41  ;;  %v4433_v41 = vpack.c.bf16 %v2096_v40, %v2095_v38 }
 0x7e1   : > { %v1645_v44 = vadd.f32 -0.28449672, %v1643_v42  ;;  %v2097_v42 = vld [vmem:[%s6383_s6 + $0x40] sm:$0xff] }
 0x7e2   : > { %v1646_v45 = vmul.f32 %v4837_v23, %v1644_v43  ;;  %v2098_v43 = vld [vmem:[%s6383_s6 + $0x48] sm:$0xff] }
 0x7e3   : > { %v1647_v46 = vmul.f32 %v4839_v28, %v1645_v44  ;;  %v4436_v44 = vpack.c.bf16 %v2098_v43, %v2097_v42 }
 0x7e4   : > { %v1648_v47 = vadd.f32 0.2548296, %v1646_v45  ;;  %v2099_v45 = vld [vmem:[%s6383_s6 + $0x50] sm:$0xff] }
 0x7e5   : > { %v1649_v48 = vadd.f32 0.2548296, %v1647_v46  ;;  %v2100_v46 = vld [vmem:[%s6383_s6 + $0x58] sm:$0xff] }
 0x7e6   : > { %v1650_v50 = vmul.f32 %v4837_v23, %v1648_v47  ;;  %v2089_v23 = vld [vmem:[%s6383_s6] sm:$0xff]  ;;  %v4439_v47 = vpack.c.bf16 %v2100_v46, %v2099_v45 }
 0x7e7   : > { %v1651_v55 = vmul.f32 %v4839_v28, %v1649_v48  ;;  %v4424_v29 = vpack.c.bf16 %v2090_v24, %v2089_v23  ;;  %v2101_v48 = vld [vmem:[%s6383_s6 + $0x60] sm:$0xff]  ;;  %v2220_v23 = vld [vmem:[#allocation13 + $0x58] sm:$0xff] }
 0x7e8   : > { %v1660_v53 = vmul.f32 %v4841_v54, %v1650_v50  ;;  %v2102_v50 = vld [vmem:[%s6383_s6 + $0x68] sm:$0xff] }
 0x7e9   : > { %v1661_v49 = vmul.f32 %v4843_v52, %v1651_v55  ;;  %v4442_v54 = vpack.c.bf16 %v2102_v50, %v2101_v48  ;;  %v2103_v55 = vld [vmem:[%s6383_s6 + $0x70] sm:$0xff]  ;;  %v2104_v52 = vld [vmem:[%s6383_s6 + $0x78] sm:$0xff] }
 0x7ea   : > { %v1662_v51 = vsub.f32 1.0, %v1660_v53  ;;  %v4445_v53 = vpack.c.bf16 %v2104_v52, %v2103_v55 }
 0x7eb   : > { %v1663_v57 = vsub.f32 1.0, %v1661_v49 }
 0x7ec   : > { %v1664_v58 = vmul.f32 %v1662_v51, %v1622_v56 }
 0x7ed   : > { %v1665_v60 = vmul.f32 %v1663_v57, %v1623_v59 }
 0x7ee   : > { %v1666_v61 = vadd.f32 1.0, %v1664_v58  ;;  %v3425_v58 = vld [vmem:[#allocation8] ss:$0 sm:$0xff] }
 0x7ef   : > { %v1667_v63 = vadd.f32 1.0, %v1665_v60  ;;  %v3426_v60 = vld [vmem:[#allocation10] ss:$0 sm:$0xff] }
 0x7f0   : > { %v1668_v11 = vmul.f32 %v1666_v61, %v1616_v2  ;;  %v2210_v2 = vld [vmem:[#allocation13 + $0x8] sm:$0xff] }
 0x7f1   : > { %v1669_v4 = vmul.f32 %v1667_v63, %v1617_v62  ;;  %v2209_v63 = vld [vmem:[#allocation13] sm:$0xff] }
 0x7f3   : > { %1766 = vmatprep.mubr.f32.mxu0 %v1669_v4  ;;  %v4448_v4 = vpack.c.bf16 %v2210_v2, %v2209_v63  ;;  %v4856_v2 = vld [vmem:[%s6374_s26] sm:$0xff] }
 0x7f4   : > { %1767 = vmatmul.mubr.f32.vlgmr.msra.gmra.mrb[6].mxu0 %v1668_v11  ;;  %v2211_v11 = vld [vmem:[#allocation13 + $0x10] sm:$0xff] }
 0x7f5   : > { %3856 = vmatpush3.msra.mxu0 %v5899_v27  ;;  %3857 = vmatprep.mubr.msk.f32.mxu0 %vm5306_vm0, %v5307_v1 }
 0x7f6   : > { %4399 = vmatprep.subr.bf16.mxu0 %v5305_v0 }
 0x8c7   : > { %v3513_v8 = vpop.f32.mrb[6].mxu0 }
 0x8c8   : > { %v3514_v9 = vpop.f32.mrb[7].mxu0 }
 0x8c9   : > { %v3515_v12 = vadd.f32 %v3514_v9, %v3513_v8  ;;  %v2212_v8 = vld [vmem:[#allocation13 + $0x18] sm:$0xff] }
 0x8ca   : > { %v4451_v9 = vpack.c.bf16 %v2212_v8, %v2211_v11  ;;  %v3428_v11 = vld [vmem:[#allocation14] ss:$0 sm:$0xff] }
 0x8cb   : > { %v1772_v15 = vadd.f32 %v3515_v12, %v5890_v26  ;;  %v2213_v12 = vld [vmem:[#allocation13 + $0x20] sm:$0xff] }
 0x8cd   : > { %v6079_v6 = vadd.f32 %v3422_v14, %v1772_v15  ;;  %v2214_v14 = vld [vmem:[#allocation13 + $0x28] sm:$0xff] }
 0x8ce   : > { %v4454_v15 = vpack.c.bf16 %v2214_v14, %v2213_v12 }
 0x8cf   : > { %3853 = vmatmul.mubr.f32.vlgmr.msra.gmra.mrb[8].mxu1 %v6079_v6 }
 0x8d0   : > { %3896 = vmatpush3.msra.mxu1 %v5899_v27  ;;  %3897 = vmatprep.mubr.msk.f32.mxu1 %vm5306_vm0, %v5307_v1 }
 0x8d1   : > { %4423 = vmatprep.subr.bf16.mxu1 %v5305_v0 }
 0x9a2   : > { %v1849_v3 = vpop.f32.mrb[8].mxu1 }
 0x9a3   : > { %v1853_v17 = vmul.f32 0.0625, %v1849_v3  ;;  %v3854_v18 = vpop.f32.mrb[9].mxu1  ;;  %v2215_v3 = vld [vmem:[#allocation13 + $0x30] sm:$0xff] }
 0x9a5   : > { %3858 = vmatmul.mubr.msk.f32.vlgmr.msra.gmra.mrb[8].mxu0 %vm1035_vm1, %v1853_v17  ;;  %v2216_v17 = vld [vmem:[#allocation13 + $0x38] sm:$0xff] }
 0x9a6   : > { %4401 = vmatpush3.bf16.msra.mxu0 %v5810_v5  ;;  %3892 = vmatprep.mubr.msk.f32.mxu0 %vm5306_vm0, %v5307_v1  ;;  %v4457_v18 = vpack.c.bf16 %v2216_v17, %v2215_v3 }
 0x9a7   : > { %4402 = vmatprep.subr.bf16.mxu0 %v5305_v0 }
 0x9aa   : > { %4404 = vmatpush3.bf16.msra.mxu0 %v5816_v7 }
 0x9ab   : > { %4405 = vmatprep.subr.bf16.mxu0 %v5305_v0 }
 0x9ae   : > { %4407 = vmatpush3.bf16.msra.mxu0 %v5826_v10 }
 0x9af   : > { %4408 = vmatprep.subr.bf16.mxu0 %v5305_v0 }
 0x9b2   : > { %4410 = vmatpush3.bf16.msra.mxu0 %v5836_v13 }
 0x9b3   : > { %4411 = vmatprep.subr.bf16.mxu0 %v5305_v0 }
 0x9b6   : > { %4413 = vmatpush3.bf16.msra.mxu0 %v5846_v16 }
 0x9b7   : > { %4414 = vmatprep.subr.bf16.mxu0 %v5305_v0 }
 0x9ba   : > { %4416 = vmatpush3.bf16.msra.mxu0 %v5857_v19 }
 0x9bb   : > { %4417 = vmatprep.subr.bf16.mxu0 %v5305_v0 }
 0x9be   : > { %4419 = vmatpush3.bf16.msra.mxu0 %v5870_v22 }
 0x9bf   : > { %4420 = vmatprep.subr.bf16.mxu0 %v5305_v0 }
 0x9c2   : > { %4422 = vmatpush3.bf16.msra.mxu0 %v5881_v25 }
 0x9c3   : > { %4447 = vmatprep.subr.bf16.mxu0 %v5305_v0 }
 0xa78   : > { %v1923_v26 = vpop.f32.mrb[8].mxu0 }
 0xa79   : > { %v1927_v27 = vsub.f32 %v6079_v6, %v1923_v26  ;;  %v3859_v20 = vpop.f32.mrb[9].mxu0  ;;  %v2217_v26 = vld [vmem:[#allocation13 + $0x40] sm:$0xff] }
 0xa7b   : > { %v1928_v21 = vmul.f32 %v1927_v27, %v1927_v27 }
 0xa7d   : > { %3893 = vmatmul.mubr.f32.vlgmr.msra.gmra.mrb[10].mxu0 %v1928_v21  ;;  %v2219_v21 = vld [vmem:[#allocation13 + $0x50] sm:$0xff] }
 0xa7e   : > { %3967 = vmatprep.mubr.msk.f32.mxu0 %vm5306_vm0, %v5307_v1  ;;  %4449 = vmatpush3.bf16.msra.mxu0 %v4448_v4  ;;  %v4463_v24 = vpack.c.bf16 %v2220_v23, %v2219_v21  ;;  %v2622_v21 = vld [vmem:[#allocation19 + $0x28] sm:$0xff] }
 0xa7f   : > { %4450 = vmatprep.subr.bf16.mxu0 %v5305_v0 }
 0xa82   : > { %4452 = vmatpush3.bf16.msra.mxu0 %v4451_v9 }
 0xa83   : > { %4453 = vmatprep.subr.bf16.mxu0 %v5305_v0 }
 0xa86   : > { %4455 = vmatpush3.bf16.msra.mxu0 %v4454_v15 }
 0xa87   : > { %4456 = vmatprep.subr.bf16.mxu0 %v5305_v0 }
 0xa8a   : > { %4458 = vmatpush3.bf16.msra.mxu0 %v4457_v18 }
 0xa8b   : > { %4459 = vmatprep.subr.bf16.mxu0 %v5305_v0 }
 0xb50   : > { %v1995_v28 = vpop.f32.mrb[10].mxu0 }
 0xb51   : > { %v1999_v30 = vmul.f32 0.0625, %v1995_v28  ;;  %v3894_v31 = vpop.f32.mrb[11].mxu0  ;;  %v2221_v28 = vld [vmem:[#allocation13 + $0x60] sm:$0xff] }
 0xb52   : > { %v2223_v31 = vld [vmem:[#allocation13 + $0x70] sm:$0xff] }
 0xb53   : > { %3898 = vmatmul.mubr.msk.f32.vlgmr.msra.gmra.mrb[10].mxu1 %vm1035_vm1, %v1999_v30  ;;  %v4469_v33 = vpack.c.bf16 %v2224_v32, %v2223_v31  ;;  %v2626_v31 = vld [vmem:[#allocation19 + $0x48] sm:$0xff] }
 0xb54   : > { %4425 = vmatpush3.bf16.msra.mxu1 %v4424_v29  ;;  %3932 = vmatprep.mubr.msk.f32.mxu1 %vm5306_vm0, %v5307_v1  ;;  %v2222_v29 = vld [vmem:[#allocation13 + $0x68] sm:$0xff] }
 0xb55   : > { %4426 = vmatprep.subr.bf16.mxu1 %v5305_v0  ;;  %v4466_v30 = vpack.c.bf16 %v2222_v29, %v2221_v28  ;;  %v2624_v28 = vld [vmem:[#allocation19 + $0x38] sm:$0xff] }
 0xb58   : > { %4428 = vmatpush3.bf16.msra.mxu1 %v4427_v34  ;;  %v3427_v34 = vld [vmem:[#allocation11] ss:$0 sm:$0xff] }
 0xb59   : > { %4429 = vmatprep.subr.bf16.mxu1 %v5305_v0 }
 0xb5c   : > { %4431 = vmatpush3.bf16.msra.mxu1 %v4430_v37 }
 0xb5d   : > { %4432 = vmatprep.subr.bf16.mxu1 %v5305_v0 }
 0xb60   : > { %4434 = vmatpush3.bf16.msra.mxu1 %v4433_v41 }
 0xb61   : > { %4435 = vmatprep.subr.bf16.mxu1 %v5305_v0 }
 0xb64   : > { %4437 = vmatpush3.bf16.msra.mxu1 %v4436_v44 }
 0xb65   : > { %4438 = vmatprep.subr.bf16.mxu1 %v5305_v0 }
 0xb68   : > { %4440 = vmatpush3.bf16.msra.mxu1 %v4439_v47 }
 0xb69   : > { %4441 = vmatprep.subr.bf16.mxu1 %v5305_v0 }
 0xb6c   : > { %4443 = vmatpush3.bf16.msra.mxu1 %v4442_v54 }
 0xb6d   : > { %4444 = vmatprep.subr.bf16.mxu1 %v5305_v0 }
 0xb70   : > { %4446 = vmatpush3.bf16.msra.mxu1 %v4445_v53 }
 0xb71   : > { %4471 = vmatprep.subr.bf16.mxu1 %v5305_v0 }
 0xc26   : > { %v2069_v49 = vpop.f32.mrb[10].mxu1 }
 0xc27   : > { %v2070_v51 = vadd.f32 1e-05, %v2069_v49  ;;  %v3899_v56 = vpop.f32.mrb[11].mxu1 }
 0xc29   : > { %4844 = vrsqrt.f32 %v2070_v51 }
 0xc33   : > { %v4845_v57 = vpop.eup %4844 }
 0xc34   : > { %v2074_v59 = vmul.f32 %v4845_v57, %v1927_v27  ;;  %v2218_v27 = vld [vmem:[#allocation13 + $0x48] sm:$0xff] }
 0xc35   : > { %v4460_v20 = vpack.c.bf16 %v2218_v27, %v2217_v26  ;;  %v2620_v26 = vld [vmem:[#allocation19 + $0x18] sm:$0xff] }
 0xc36   : > { %v2081_v61 = vmul.f32 %v3425_v58, %v2074_v59 }
 0xc37   : > { %4461 = vmatpush3.bf16.msra.mxu0 %v4460_v20  ;;  %v2621_v20 = vld [vmem:[#allocation19 + $0x20] sm:$0xff] }
 0xc38   : > { %v2088_v62 = vadd.f32 %v3426_v60, %v2081_v61  ;;  %4462 = vmatprep.subr.bf16.mxu0 %v5305_v0  ;;  %v4526_v23 = vpack.c.bf16 %v2622_v21, %v2621_v20  ;;  %v2807_v21 = vld [vmem:[#allocation19 + $0x130] sm:$0xff] }
 0xc3a   : > { %3933 = vmatmul.mubr.f32.vlgmr.msra.gmra.mrb[12].mxu1 %v2088_v62 }
 0xc3b   : > { %4473 = vmatpush3.bf16.msra.mxu1 %v5810_v5  ;;  %4002 = vmatprep.mubr.msk.f32.mxu1 %vm5306_vm0, %v5307_v1 }
 0xc3c   : > { %4474 = vmatprep.subr.bf16.mxu1 %v5305_v0  ;;  %4464 = vmatpush3.bf16.msra.mxu0 %v4463_v24  ;;  %v2623_v24 = vld [vmem:[#allocation19 + $0x30] sm:$0xff] }
 0xc3d   : > { %4465 = vmatprep.subr.bf16.mxu0 %v5305_v0  ;;  %v4529_v29 = vpack.c.bf16 %v2624_v28, %v2623_v24  ;;  %v2809_v28 = vld [vmem:[#allocation19 + $0x140] sm:$0xff] }
 0xc3f   : > { %4476 = vmatpush3.bf16.msra.mxu1 %v5816_v7 }
 0xc40   : > { %4477 = vmatprep.subr.bf16.mxu1 %v5305_v0  ;;  %4467 = vmatpush3.bf16.msra.mxu0 %v4466_v30  ;;  %v2625_v30 = vld [vmem:[#allocation19 + $0x40] sm:$0xff] }
 0xc41   : > { %4468 = vmatprep.subr.bf16.mxu0 %v5305_v0  ;;  %v4532_v32 = vpack.c.bf16 %v2626_v31, %v2625_v30  ;;  %v2811_v31 = vld [vmem:[#allocation19 + $0x150] sm:$0xff] }
 0xc43   : > { %4479 = vmatpush3.bf16.msra.mxu1 %v5826_v10 }
 0xc44   : > { %4480 = vmatprep.subr.bf16.mxu1 %v5305_v0  ;;  %4470 = vmatpush3.bf16.msra.mxu0 %v4469_v33  ;;  %v2627_v33 = vld [vmem:[#allocation19 + $0x50] sm:$0xff] }
 0xc45   : > { %4005 = vmatprep.subr.mxu0 %v5307_v1 }
 0xc47   : > { %4482 = vmatpush3.bf16.msra.mxu1 %v5836_v13 }
 0xc48   : > { %4483 = vmatprep.subr.bf16.mxu1 %v5305_v0 }
 0xc4b   : > { %4485 = vmatpush3.bf16.msra.mxu1 %v5846_v16 }
 0xc4c   : > { %4486 = vmatprep.subr.bf16.mxu1 %v5305_v0 }
 0xc4f   : > { %4488 = vmatpush3.bf16.msra.mxu1 %v5857_v19 }
 0xc50   : > { %4489 = vmatprep.subr.bf16.mxu1 %v5305_v0 }
 0xc53   : > { %4491 = vmatpush3.bf16.msra.mxu1 %v5870_v22 }
 0xc54   : > { %4492 = vmatprep.subr.bf16.mxu1 %v5305_v0 }
 0xc57   : > { %4494 = vmatpush3.bf16.msra.mxu1 %v5881_v25 }
 0xc58   : > { %4045 = vmatprep.subr.mxu1 %v5307_v1 }
 0xd0d   : > { %v2178_v35 = vpop.f32.mrb[12].mxu1 }
 0xd0e   : > { %v2179_v36 = vadd.f32 %v3427_v34, %v2178_v35  ;;  %v3934_v37 = vpop.f32.mrb[13].mxu1  ;;  %v2628_v34 = vld [vmem:[#allocation19 + $0x58] sm:$0xff] }
 0xd0f   : > { %v4535_v35 = vpack.c.bf16 %v2628_v34, %v2627_v33  ;;  %v2630_v37 = vld [vmem:[#allocation19 + $0x68] sm:$0xff]  ;;  %v2813_v34 = vld [vmem:[#allocation19 + $0x160] sm:$0xff] }
 0xd10   : > { %v2183_v38 = vmul.f32 0.70710677, %v2179_v36  ;;  %v2182_v61 = vmul.f32 0.5, %v2179_v36  ;;  %v2629_v36 = vld [vmem:[#allocation19 + $0x60] sm:$0xff] }
 0xd12   : > { %v2186_v40 = vand.u32 2147483647, %v2183_v38  ;;  %vm2184_vm7 = vcmp.ge.f32.partialorder %v2183_v38, 0.0  ;;  %v4538_v38 = vpack.c.bf16 %v2630_v37, %v2629_v36  ;;  %v2815_v37 = vld [vmem:[#allocation19 + $0x170] sm:$0xff] }
 0xd13   : > { %v2185_v59 = vsel %vm2184_vm7, 1.0, %v5309_v39 }
 0xd14   : > { %v2187_v41 = vmul.f32 0.3275911, %v2186_v40  ;;  %v2200_v43 = vsub.f32 0.0, %v2186_v40 }
 0xd16   : > { %v2188_v42 = vadd.f32 1.0, %v2187_v41  ;;  %v2201_v45 = vmul.f32 %v2200_v43, %v2186_v40  ;;  %v2631_v40 = vld [vmem:[#allocation19 + $0x70] sm:$0xff]  ;;  %v2632_v41 = vld [vmem:[#allocation19 + $0x78] sm:$0xff] }
 0xd18   : > { %4846 = vrcp.f32 %v2188_v42  ;;  %v2202_v48 = vmul.f32 1.442695, %v2201_v45  ;;  %v4541_v42 = vpack.c.bf16 %v2632_v41, %v2631_v40 }
 0xd1a   : > { %4848 = vpow2.f32 %v2202_v48 }
 0xd22   : > { %v4847_v44 = vpop.eup %4846 }
 0xd23   : > { %v2191_v46 = vmul.f32 1.0614054, %v4847_v44 }
 0xd24   : > { %v4849_v56 = vpop.eup %4848 }
 0xd25   : > { %v2192_v47 = vadd.f32 -1.4531521, %v2191_v46 }
 0xd27   : > { %v2193_v50 = vmul.f32 %v4847_v44, %v2192_v47  ;;  %v3431_v47 = vld [vmem:[#allocation16] ss:$0 sm:$0xff] }
 0xd29   : > { %v2194_v54 = vadd.f32 1.4214138, %v2193_v50  ;;  %v3432_v50 = vld [vmem:[#allocation17] ss:$0 sm:$0xff] }
 0xd2b   : > { %v2195_v55 = vmul.f32 %v4847_v44, %v2194_v54 }
 0xd2d   : > { %v2196_v52 = vadd.f32 -0.28449672, %v2195_v55 }
 0xd2f   : > { %v2197_v53 = vmul.f32 %v4847_v44, %v2196_v52  ;;  %v2712_v52 = vld [vmem:[#allocation19 + $0x80] sm:$0xff] }
 0xd31   : > { %v2198_v49 = vadd.f32 0.2548296, %v2197_v53  ;;  %v2713_v53 = vld [vmem:[#allocation19 + $0x88] sm:$0xff] }
 0xd33   : > { %v2199_v51 = vmul.f32 %v4847_v44, %v2198_v49  ;;  %v4544_v49 = vpack.c.bf16 %v2713_v53, %v2712_v52  ;;  %v2925_v52 = vld [vmem:[#allocation22 + $0x38] sm:$0xff] }
 0xd35   : > { %v2204_v57 = vmul.f32 %v4849_v56, %v2199_v51  ;;  %v2714_v51 = vld [vmem:[#allocation19 + $0x90] sm:$0xff]  ;;  %v2715_v56 = vld [vmem:[#allocation19 + $0x98] sm:$0xff] }
 0xd37   : > { %v2205_v58 = vsub.f32 1.0, %v2204_v57 }
 0xd39   : > { %v2206_v60 = vmul.f32 %v2205_v58, %v2185_v59  ;;  %v4547_v58 = vpack.c.bf16 %v2715_v56, %v2714_v51  ;;  %v2716_v59 = vld [vmem:[#allocation19 + $0xa0] sm:$0xff]  ;;  %v2927_v51 = vld [vmem:[#allocation22 + $0x48] sm:$0xff] }
 0xd3b   : > { %v2207_v62 = vadd.f32 1.0, %v2206_v60  ;;  %v2717_v60 = vld [vmem:[#allocation19 + $0xa8] sm:$0xff] }
 0xd3d   : > { %v2208_v63 = vmul.f32 %v2207_v62, %v2182_v61  ;;  %v4550_v61 = vpack.c.bf16 %v2717_v60, %v2716_v59  ;;  %v2718_v62 = vld [vmem:[#allocation19 + $0xb0] sm:$0xff]  ;;  %v2930_v60 = vld [vmem:[#allocation22 + $0x60] sm:$0xff] }
 0xd3f   : > { %3968 = vmatmul.mubr.f32.vlgmr.msra.gmra.mrb[12].mxu0 %v2208_v63  ;;  %v2719_v63 = vld [vmem:[#allocation19 + $0xb8] sm:$0xff] }
 0xd40   : > { %4006 = vmatpush3.msra.mxu0 %v4856_v2  ;;  %4007 = vmatprep.mubr.msk.f32.mxu0 %vm5306_vm0, %v5307_v1 }
 0xd41   : > { %4495 = vmatprep.subr.bf16.mxu0 %v5305_v0 }
 0xe12   : > { %v2291_v4 = vpop.f32.mrb[12].mxu0 }
 0xe13   : > { %v2295_v8 = vadd.f32 %v2291_v4, %v6079_v6  ;;  %v3969_v9 = vpop.f32.mrb[13].mxu0  ;;  %v2720_v4 = vld [vmem:[#allocation19 + $0xc0] sm:$0xff] }
 0xe14   : > { %v2722_v9 = vld [vmem:[#allocation19 + $0xd0] sm:$0xff] }
 0xe15   : > { %v6201_v12 = vadd.f32 %v3428_v11, %v2295_v8  ;;  %v2721_v11 = vld [vmem:[#allocation19 + $0xc8] sm:$0xff] }
 0xe16   : > { %v4556_v8 = vpack.c.bf16 %v2721_v11, %v2720_v4  ;;  %v3433_v11 = vld [vmem:[#allocation20] ss:$0 sm:$0xff] }
 0xe17   : > { %4003 = vmatmul.mubr.f32.vlgmr.msra.gmra.mrb[14].mxu1 %v6201_v12 }
 0xe18   : > { %4046 = vmatpush3.msra.mxu1 %v4856_v2  ;;  %4047 = vmatprep.mubr.msk.f32.mxu1 %vm5306_vm0, %v5307_v1  ;;  %v4553_v2 = vpack.c.bf16 %v2719_v63, %v2718_v62  ;;  %v2932_v63 = vld [vmem:[#allocation22 + $0x70] sm:$0xff] }
 0xe19   : > { %4519 = vmatprep.subr.bf16.mxu1 %v5305_v0 }
 0xeea   : > { %v2372_v14 = vpop.f32.mrb[14].mxu1 }
 0xeeb   : > { %v2376_v15 = vmul.f32 0.0625, %v2372_v14  ;;  %v4004_v3 = vpop.f32.mrb[15].mxu1  ;;  %v2723_v14 = vld [vmem:[#allocation19 + $0xd8] sm:$0xff] }
 0xeec   : > { %v2724_v3 = vld [vmem:[#allocation19 + $0xe0] sm:$0xff] }
 0xeed   : > { %4008 = vmatmul.mubr.msk.f32.vlgmr.msra.gmra.mrb[14].mxu0 %vm1035_vm1, %v2376_v15  ;;  %v4559_v15 = vpack.c.bf16 %v2723_v14, %v2722_v9 }
 0xeee   : > { %4497 = vmatpush3.bf16.msra.mxu0 %v5810_v5  ;;  %4042 = vmatprep.mubr.msk.f32.mxu0 %vm5306_vm0, %v5307_v1 }
 0xeef   : > { %4498 = vmatprep.subr.bf16.mxu0 %v5305_v0 }
 0xef2   : > { %4500 = vmatpush3.bf16.msra.mxu0 %v5816_v7 }
 0xef3   : > { %4501 = vmatprep.subr.bf16.mxu0 %v5305_v0 }
 0xef6   : > { %4503 = vmatpush3.bf16.msra.mxu0 %v5826_v10 }
 0xef7   : > { %4504 = vmatprep.subr.bf16.mxu0 %v5305_v0 }
 0xefa   : > { %4506 = vmatpush3.bf16.msra.mxu0 %v5836_v13 }
 0xefb   : > { %4507 = vmatprep.subr.bf16.mxu0 %v5305_v0 }
 0xefe   : > { %4509 = vmatpush3.bf16.msra.mxu0 %v5846_v16  ;;  %v2617_v16 = vld [vmem:[#allocation19] sm:$0xff] }
 0xeff   : > { %4510 = vmatprep.subr.bf16.mxu0 %v5305_v0 }
 0xf02   : > { %4512 = vmatpush3.bf16.msra.mxu0 %v5857_v19  ;;  %v2618_v19 = vld [vmem:[#allocation19 + $0x8] sm:$0xff] }
 0xf03   : > { %4513 = vmatprep.subr.bf16.mxu0 %v5305_v0  ;;  %v4520_v17 = vpack.c.bf16 %v2618_v19, %v2617_v16  ;;  %v2801_v19 = vld [vmem:[#allocation19 + $0x100] sm:$0xff] }
 0xf06   : > { %4515 = vmatpush3.bf16.msra.mxu0 %v5870_v22 }
 0xf07   : > { %4516 = vmatprep.subr.bf16.mxu0 %v5305_v0 }
 0xf0a   : > { %4518 = vmatpush3.bf16.msra.mxu0 %v5881_v25  ;;  %v2619_v25 = vld [vmem:[#allocation19 + $0x10] sm:$0xff] }
 0xf0b   : > { %4591 = vmatprep.subr.bf16.mxu0 %v5305_v0  ;;  %v4523_v27 = vpack.c.bf16 %v2620_v26, %v2619_v25  ;;  %v2805_v26 = vld [vmem:[#allocation19 + $0x120] sm:$0xff] }
 0xfc0   : > { %v2446_v5 = vpop.f32.mrb[14].mxu0 }
 0xfc1   : > { %v2450_v7 = vsub.f32 %v6201_v12, %v2446_v5  ;;  %v4009_v10 = vpop.f32.mrb[15].mxu0  ;;  %v2725_v5 = vld [vmem:[#allocation19 + $0xe8] sm:$0xff] }
 0xfc2   : > { %v2726_v10 = vld [vmem:[#allocation19 + $0xf0] sm:$0xff] }
 0xfc3   : > { %v2451_v13 = vmul.f32 %v2450_v7, %v2450_v7 }
 0xfc5   : > { %4043 = vmatmul.mubr.f32.vlgmr.msra.gmra.mrb[16].mxu0 %v2451_v13  ;;  %v2727_v13 = vld [vmem:[#allocation19 + $0xf8] sm:$0xff] }
 0xfc6   : > { %4187 = vmatprep.mubr.msk.f32.mxu0 %vm5306_vm0, %v5307_v1  ;;  %v4565_v16 = vpack.c.bf16 %v2727_v13, %v2726_v10 }
0x1098   : > { %v2518_v6 = vpop.f32.mrb[16].mxu0 }
0x1099   : > { %v2522_v22 = vmul.f32 0.0625, %v2518_v6  ;;  %v4044_v18 = vpop.f32.mrb[17].mxu0  ;;  %v2802_v6 = vld [vmem:[#allocation19 + $0x108] sm:$0xff] }
0x109a   : > { %v2804_v18 = vld [vmem:[#allocation19 + $0x118] sm:$0xff] }
0x109b   : > { %4048 = vmatmul.mubr.msk.f32.vlgmr.msra.gmra.mrb[16].mxu1 %vm1035_vm1, %v2522_v22  ;;  %v2803_v22 = vld [vmem:[#allocation19 + $0x110] sm:$0xff] }
0x109c   : > { %4521 = vmatpush3.bf16.msra.mxu1 %v4520_v17  ;;  %4082 = vmatprep.mubr.msk.f32.mxu1 %vm5306_vm0, %v5307_v1  ;;  %v4568_v17 = vpack.c.bf16 %v2802_v6, %v2801_v19  ;;  %v4571_v25 = vpack.c.bf16 %v2804_v18, %v2803_v22 }
0x109d   : > { %4522 = vmatprep.subr.bf16.mxu1 %v5305_v0 }
0x10a0   : > { %4524 = vmatpush3.bf16.msra.mxu1 %v4523_v27  ;;  %v2806_v27 = vld [vmem:[#allocation19 + $0x128] sm:$0xff] }
0x10a1   : > { %4525 = vmatprep.subr.bf16.mxu1 %v5305_v0  ;;  %v4574_v20 = vpack.c.bf16 %v2806_v27, %v2805_v26 }
0x10a4   : > { %4527 = vmatpush3.bf16.msra.mxu1 %v4526_v23  ;;  %v2808_v23 = vld [vmem:[#allocation19 + $0x138] sm:$0xff] }
0x10a5   : > { %4528 = vmatprep.subr.bf16.mxu1 %v5305_v0  ;;  %v4577_v24 = vpack.c.bf16 %v2808_v23, %v2807_v21 }
0x10a8   : > { %4530 = vmatpush3.bf16.msra.mxu1 %v4529_v29  ;;  %v2810_v29 = vld [vmem:[#allocation19 + $0x148] sm:$0xff] }
0x10a9   : > { %4531 = vmatprep.subr.bf16.mxu1 %v5305_v0  ;;  %v4580_v30 = vpack.c.bf16 %v2810_v29, %v2809_v28 }
0x10ac   : > { %4533 = vmatpush3.bf16.msra.mxu1 %v4532_v32  ;;  %v2812_v32 = vld [vmem:[#allocation19 + $0x158] sm:$0xff] }
0x10ad   : > { %4534 = vmatprep.subr.bf16.mxu1 %v5305_v0  ;;  %v4583_v33 = vpack.c.bf16 %v2812_v32, %v2811_v31 }
0x10b0   : > { %4536 = vmatpush3.bf16.msra.mxu1 %v4535_v35  ;;  %v2814_v35 = vld [vmem:[#allocation19 + $0x168] sm:$0xff] }
0x10b1   : > { %4537 = vmatprep.subr.bf16.mxu1 %v5305_v0  ;;  %v4586_v36 = vpack.c.bf16 %v2814_v35, %v2813_v34  ;;  %v3013_v34 = vld [vmem:[#allocation22 + $0x80] sm:$0xff]  ;;  %v3014_v35 = vld [vmem:[#allocation22 + $0x88] sm:$0xff] }
0x10b4   : > { %4539 = vmatpush3.bf16.msra.mxu1 %v4538_v38  ;;  %v2816_v38 = vld [vmem:[#allocation19 + $0x178] sm:$0xff] }
0x10b5   : > { %4540 = vmatprep.subr.bf16.mxu1 %v5305_v0  ;;  %v4589_v40 = vpack.c.bf16 %v2816_v38, %v2815_v37  ;;  %v3015_v37 = vld [vmem:[#allocation22 + $0x90] sm:$0xff]  ;;  %v3016_v38 = vld [vmem:[#allocation22 + $0x98] sm:$0xff] }
0x10b8   : > { %4542 = vmatpush3.bf16.msra.mxu1 %v4541_v42  ;;  %v2918_v42 = vld [vmem:[#allocation22] sm:$0xff] }
0x10b9   : > { %4543 = vmatprep.subr.bf16.mxu1 %v5305_v0 }
0x116e   : > { %v2592_v43 = vpop.f32.mrb[16].mxu1 }
0x116f   : > { %v2593_v44 = vadd.f32 1e-05, %v2592_v43  ;;  %v4049_v45 = vpop.f32.mrb[17].mxu1  ;;  %v2919_v43 = vld [vmem:[#allocation22 + $0x8] sm:$0xff] }
0x1170   : > { %v2920_v45 = vld [vmem:[#allocation22 + $0x10] sm:$0xff] }
0x1171   : > { %4850 = vrsqrt.f32 %v2593_v44  ;;  %v4592_v44 = vpack.c.bf16 %v2919_v43, %v2918_v42  ;;  %v3018_v42 = vld [vmem:[#allocation22 + $0xa8] sm:$0xff] }
0x1173   : > { %4593 = vmatpush3.bf16.msra.mxu0 %v4592_v44  ;;  %v3019_v44 = vld [vmem:[#allocation22 + $0xb0] sm:$0xff] }
0x1174   : > { %4594 = vmatprep.subr.bf16.mxu0 %v5305_v0 }
0x117b   : > { %v4851_v46 = vpop.eup %4850 }
0x117c   : > { %v2597_v48 = vmul.f32 %v4851_v46, %v2450_v7  ;;  %v4562_v7 = vpack.c.bf16 %v2725_v5, %v2724_v3  ;;  %v2921_v46 = vld [vmem:[#allocation22 + $0x18] sm:$0xff] }
0x117e   : > { %v2604_v54 = vmul.f32 %v3431_v47, %v2597_v48  ;;  %v4595_v47 = vpack.c.bf16 %v2921_v46, %v2920_v45  ;;  %v2922_v48 = vld [vmem:[#allocation22 + $0x20] sm:$0xff]  ;;  %v3020_v45 = vld [vmem:[#allocation22 + $0xb8] sm:$0xff] }
0x117f   : > { %v4625_v46 = vpack.c.bf16 %v3020_v45, %v3019_v44 }
0x1180   : > { %v2611_v55 = vadd.f32 %v3432_v50, %v2604_v54  ;;  %4596 = vmatpush3.bf16.msra.mxu0 %v4595_v47  ;;  %v2923_v50 = vld [vmem:[#allocation22 + $0x28] sm:$0xff]  ;;  %v3021_v47 = vld [vmem:[#allocation22 + $0xc0] sm:$0xff] }
0x1181   : > { %4597 = vmatprep.subr.bf16.mxu0 %v5305_v0  ;;  %v4598_v54 = vpack.c.bf16 %v2923_v50, %v2922_v48  ;;  %v3022_v48 = vld [vmem:[#allocation22 + $0xc8] sm:$0xff] }
0x1182   : > { %2615 = vst [vmem:[#allocation2 + $0x1] sm:$0xff] %v2611_v55  ;;  %v4628_v50 = vpack.c.bf16 %v3022_v48, %v3021_v47 }
0x1184   : > { %4599 = vmatpush3.bf16.msra.mxu0 %v4598_v54  ;;  %v3023_v54 = vld [vmem:[#allocation22 + $0xd0] sm:$0xff] }
0x1185   : > { %4600 = vmatprep.subr.bf16.mxu0 %v5305_v0 }
0x1189   : > { %v2616_v57 = vld [vmem:[#allocation2] sm:$0xff] }
0x118a   : > { %4083 = vmatmul.mubr.f32.vlgmr.msra.gmra.mrb[18].mxu1 %v2616_v57  ;;  %v2799_v41 = vld [vmem:[#allocation2 + $0x2] sm:$0xff]  ;;  %v2928_v57 = vld [vmem:[#allocation22 + $0x50] sm:$0xff] }
0x118b   : > { %4545 = vmatpush3.bf16.msra.mxu1 %v4544_v49  ;;  %4117 = vmatprep.mubr.msk.f32.mxu1 %vm5306_vm0, %v5307_v1  ;;  %v2926_v49 = vld [vmem:[#allocation22 + $0x40] sm:$0xff] }
0x118c   : > { %4546 = vmatprep.subr.bf16.mxu1 %v5305_v0  ;;  %v4604_v56 = vpack.c.bf16 %v2927_v51, %v2926_v49  ;;  %v3026_v49 = vld [vmem:[#allocation22 + $0xe8] sm:$0xff] }
0x118f   : > { %4548 = vmatpush3.bf16.msra.mxu1 %v4547_v58  ;;  %v2929_v58 = vld [vmem:[#allocation22 + $0x58] sm:$0xff] }
0x1190   : > { %4549 = vmatprep.subr.bf16.mxu1 %v5305_v0  ;;  %v4607_v59 = vpack.c.bf16 %v2929_v58, %v2928_v57  ;;  %v3028_v57 = vld [vmem:[#allocation22 + $0xf8] sm:$0xff] }
0x1193   : > { %4551 = vmatpush3.bf16.msra.mxu1 %v4550_v61  ;;  %v2931_v61 = vld [vmem:[#allocation22 + $0x68] sm:$0xff] }
0x1194   : > { %4552 = vmatprep.subr.bf16.mxu1 %v5305_v0  ;;  %v4610_v62 = vpack.c.bf16 %v2931_v61, %v2930_v60  ;;  %v3103_v60 = vld [vmem:[#allocation22 + $0x108] sm:$0xff] }
0x1197   : > { %4554 = vmatpush3.bf16.msra.mxu1 %v4553_v2  ;;  %v2933_v2 = vld [vmem:[#allocation22 + $0x78] sm:$0xff] }
0x1198   : > { %4555 = vmatprep.subr.bf16.mxu1 %v5305_v0  ;;  %v4613_v4 = vpack.c.bf16 %v2933_v2, %v2932_v63  ;;  %v3105_v63 = vld [vmem:[#allocation22 + $0x118] sm:$0xff] }
0x119b   : > { %4557 = vmatpush3.bf16.msra.mxu1 %v4556_v8 }
0x119c   : > { %4558 = vmatprep.subr.bf16.mxu1 %v5305_v0 }
0x119f   : > { %4560 = vmatpush3.bf16.msra.mxu1 %v4559_v15 }
0x11a0   : > { %4561 = vmatprep.subr.bf16.mxu1 %v5305_v0 }
0x11a3   : > { %4563 = vmatpush3.bf16.msra.mxu1 %v4562_v7 }
0x11a4   : > { %4564 = vmatprep.subr.bf16.mxu1 %v5305_v0 }
0x11a7   : > { %4566 = vmatpush3.bf16.msra.mxu1 %v4565_v16 }
0x11a8   : > { %4567 = vmatprep.subr.bf16.mxu1 %v5305_v0 }
0x11aa   : > { %4118 = vmatmul.mubr.f32.vlgmr.msra.gmra.mrb[18].mxu1 %v2611_v55  ;;  %v2924_v55 = vld [vmem:[#allocation22 + $0x30] sm:$0xff] }
0x11ab   : > { %4569 = vmatpush3.bf16.msra.mxu1 %v4568_v17  ;;  %4152 = vmatprep.mubr.msk.f32.mxu1 %vm5306_vm0, %v5307_v1  ;;  %v4601_v53 = vpack.c.bf16 %v2925_v52, %v2924_v55  ;;  %v3024_v55 = vld [vmem:[#allocation22 + $0xd8] sm:$0xff] }
0x11ac   : > { %4570 = vmatprep.subr.bf16.mxu1 %v5305_v0  ;;  %v4631_v52 = vpack.c.bf16 %v3024_v55, %v3023_v54 }
0x11ad   : > { %4602 = vmatpush3.bf16.msra.mxu0 %v4601_v53  ;;  %v3025_v53 = vld [vmem:[#allocation22 + $0xe0] sm:$0xff] }
0x11ae   : > { %4603 = vmatprep.subr.bf16.mxu0 %v5305_v0  ;;  %v4634_v51 = vpack.c.bf16 %v3026_v49, %v3025_v53 }
0x11af   : > { %4572 = vmatpush3.bf16.msra.mxu1 %v4571_v25 }
0x11b0   : > { %4573 = vmatprep.subr.bf16.mxu1 %v5305_v0 }
0x11b1   : > { %4605 = vmatpush3.bf16.msra.mxu0 %v4604_v56  ;;  %v3027_v56 = vld [vmem:[#allocation22 + $0xf0] sm:$0xff] }
0x11b2   : > { %4606 = vmatprep.subr.bf16.mxu0 %v5305_v0  ;;  %v4637_v58 = vpack.c.bf16 %v3028_v57, %v3027_v56 }
0x11b3   : > { %4575 = vmatpush3.bf16.msra.mxu1 %v4574_v20 }
0x11b4   : > { %4576 = vmatprep.subr.bf16.mxu1 %v5305_v0 }
0x11b5   : > { %4608 = vmatpush3.bf16.msra.mxu0 %v4607_v59  ;;  %v3102_v59 = vld [vmem:[#allocation22 + $0x100] sm:$0xff] }
0x11b6   : > { %4609 = vmatprep.subr.bf16.mxu0 %v5305_v0  ;;  %v4640_v61 = vpack.c.bf16 %v3103_v60, %v3102_v59 }
0x11b7   : > { %4578 = vmatpush3.bf16.msra.mxu1 %v4577_v24 }
0x11b8   : > { %4579 = vmatprep.subr.bf16.mxu1 %v5305_v0 }
0x11b9   : > { %4611 = vmatpush3.bf16.msra.mxu0 %v4610_v62  ;;  %v3104_v62 = vld [vmem:[#allocation22 + $0x110] sm:$0xff] }
0x11ba   : > { %4612 = vmatprep.subr.bf16.mxu0 %v5305_v0  ;;  %v4643_v2 = vpack.c.bf16 %v3105_v63, %v3104_v62 }
0x11bb   : > { %4581 = vmatpush3.bf16.msra.mxu1 %v4580_v30 }
0x11bc   : > { %4582 = vmatprep.subr.bf16.mxu1 %v5305_v0 }
0x11bd   : > { %4614 = vmatpush3.bf16.msra.mxu0 %v4613_v4  ;;  %v3106_v4 = vld [vmem:[#allocation22 + $0x120] sm:$0xff] }
0x11be   : > { %4615 = vmatprep.subr.bf16.mxu0 %v5305_v0 }
0x11bf   : > { %4584 = vmatpush3.bf16.msra.mxu1 %v4583_v33 }
0x11c0   : > { %4585 = vmatprep.subr.bf16.mxu1 %v5305_v0 }
0x11c3   : > { %4587 = vmatpush3.bf16.msra.mxu1 %v4586_v36  ;;  %v4616_v36 = vpack.c.bf16 %v3014_v35, %v3013_v34 }
0x11c4   : > { %4588 = vmatprep.subr.bf16.mxu1 %v5305_v0 }
0x11c7   : > { %4590 = vmatpush3.bf16.msra.mxu1 %v4589_v40 }
0x11ca   : > { %4153 = vmatmul.mubr.f32.vlgmr.msra.gmra.mrb[18].mxu1 %v2799_v41  ;;  %v4619_v41 = vpack.c.bf16 %v3016_v38, %v3015_v37 }
0x129d   : > { %v2883_v8 = vpop.f32.mrb[18].mxu1 }
0x129e   : > { %v4663_v9 = vadd.f32 %v3433_v11, %v2883_v8  ;;  %v4154_v14 = vpop.f32.mrb[19].mxu1  ;;  %v3107_v11 = vld [vmem:[#allocation22 + $0x128] sm:$0xff] }
0x129f   : > { %v4646_v8 = vpack.c.bf16 %v3107_v11, %v3106_v4  ;;  %v3109_v14 = vld [vmem:[#allocation22 + $0x138] sm:$0xff] }
0x12a0   : > { %v2889_v15 = vmul.f32 0.70710677, %v4663_v9  ;;  %v2888_v31 = vmul.f32 0.5, %v4663_v9  ;;  %v3108_v9 = vld [vmem:[#allocation22 + $0x130] sm:$0xff] }
0x12a2   : > { %v2892_v3 = vand.u32 2147483647, %v2889_v15  ;;  %vm2890_vm8 = vcmp.ge.f32.partialorder %v2889_v15, 0.0  ;;  %v4649_v15 = vpack.c.bf16 %v3109_v14, %v3108_v9 }
0x12a3   : > { %v2891_v29 = vsel %vm2890_vm8, 1.0, %v5309_v39  ;;  %v3017_v39 = vld [vmem:[#allocation22 + $0xa0] sm:$0xff] }
0x12a4   : > { %v2893_v5 = vmul.f32 0.3275911, %v2892_v3  ;;  %v2906_v10 = vsub.f32 0.0, %v2892_v3  ;;  %v4622_v43 = vpack.c.bf16 %v3018_v42, %v3017_v39 }
0x12a6   : > { %v2894_v7 = vadd.f32 1.0, %v2893_v5  ;;  %v2907_v16 = vmul.f32 %v2906_v10, %v2892_v3  ;;  %v3110_v3 = vld [vmem:[#allocation22 + $0x140] sm:$0xff]  ;;  %v3111_v5 = vld [vmem:[#allocation22 + $0x148] sm:$0xff]  ;;  %v3113_v10 = vld [vmem:[#allocation22 + $0x158] sm:$0xff] }
0x12a8   : > { %4852 = vrcp.f32 %v2894_v7  ;;  %v2908_v17 = vmul.f32 1.442695, %v2907_v16  ;;  %v4652_v7 = vpack.c.bf16 %v3111_v5, %v3110_v3  ;;  %v3114_v16 = vld [vmem:[#allocation22 + $0x160] sm:$0xff] }
0x12aa   : > { %4854 = vpow2.f32 %v2908_v17  ;;  %v3116_v17 = vld [vmem:[#allocation22 + $0x170] sm:$0xff] }
0x12b2   : > { %v4853_v13 = vpop.eup %4852 }
0x12b3   : > { %v2897_v19 = vmul.f32 1.0614054, %v4853_v13 }
0x12b4   : > { %v4855_v23 = vpop.eup %4854 }
0x12b5   : > { %v2898_v6 = vadd.f32 -1.4531521, %v2897_v19  ;;  %v3115_v19 = vld [vmem:[#allocation22 + $0x168] sm:$0xff] }
0x12b7   : > { %v2899_v22 = vmul.f32 %v4853_v13, %v2898_v6  ;;  %v4658_v6 = vpack.c.bf16 %v3115_v19, %v3114_v16 }
0x12b9   : > { %v2900_v18 = vadd.f32 1.4214138, %v2899_v22  ;;  %v3117_v22 = vld [vmem:[#allocation22 + $0x178] sm:$0xff] }
0x12bb   : > { %v2901_v25 = vmul.f32 %v4853_v13, %v2900_v18  ;;  %v4661_v18 = vpack.c.bf16 %v3117_v22, %v3116_v17 }
0x12bd   : > { %v2902_v26 = vadd.f32 -0.28449672, %v2901_v25 }
0x12bf   : > { %v2903_v27 = vmul.f32 %v4853_v13, %v2902_v26 }
0x12c1   : > { %v2904_v20 = vadd.f32 0.2548296, %v2903_v27 }
0x12c3   : > { %v2905_v21 = vmul.f32 %v4853_v13, %v2904_v20  ;;  %v3434_v20 = vld [vmem:[#allocation23] ss:$0 sm:$0xff] }
0x12c5   : > { %v2910_v24 = vmul.f32 %v4855_v23, %v2905_v21 }
0x12c7   : > { %v2911_v28 = vsub.f32 1.0, %v2910_v24 }
0x12c9   : > { %v2912_v30 = vmul.f32 %v2911_v28, %v2891_v29 }
0x12cb   : > { %v2913_v32 = vadd.f32 1.0, %v2912_v30 }
0x12cd   : > { %v2914_v33 = vmul.f32 %v2913_v32, %v2888_v31 }
0x12cf   : > { %2916 = vst [vmem:[#allocation2 + $0x1] sm:$0xff] %v2914_v33 }
0x12d6   : > { %v2917_v40 = vld [vmem:[#allocation2] sm:$0xff] }
0x12d7   : > { %4188 = vmatmul.mubr.f32.vlgmr.msra.gmra.mrb[18].mxu0 %v2917_v40  ;;  %v3100_v25 = vld [vmem:[#allocation2 + $0x2] sm:$0xff] }
0x12d8   : > { %4617 = vmatpush3.bf16.msra.mxu0 %v4616_v36  ;;  %4222 = vmatprep.mubr.msk.f32.mxu0 %vm5306_vm0, %v5307_v1 }
0x12d9   : > { %4618 = vmatprep.subr.bf16.mxu0 %v5305_v0 }
0x12dc   : > { %4620 = vmatpush3.bf16.msra.mxu0 %v4619_v41 }
0x12dd   : > { %4621 = vmatprep.subr.bf16.mxu0 %v5305_v0 }
0x12e0   : > { %4623 = vmatpush3.bf16.msra.mxu0 %v4622_v43 }
0x12e1   : > { %4624 = vmatprep.subr.bf16.mxu0 %v5305_v0 }
0x12e4   : > { %4626 = vmatpush3.bf16.msra.mxu0 %v4625_v46 }
0x12e5   : > { %4627 = vmatprep.subr.bf16.mxu0 %v5305_v0 }
0x12e8   : > { %4629 = vmatpush3.bf16.msra.mxu0 %v4628_v50 }
0x12e9   : > { %4630 = vmatprep.subr.bf16.mxu0 %v5305_v0 }
0x12ec   : > { %4632 = vmatpush3.bf16.msra.mxu0 %v4631_v52 }
0x12ed   : > { %4633 = vmatprep.subr.bf16.mxu0 %v5305_v0 }
0x12f0   : > { %4635 = vmatpush3.bf16.msra.mxu0 %v4634_v51 }
0x12f1   : > { %4636 = vmatprep.subr.bf16.mxu0 %v5305_v0 }
0x12f4   : > { %4638 = vmatpush3.bf16.msra.mxu0 %v4637_v58 }
0x12f5   : > { %4639 = vmatprep.subr.bf16.mxu0 %v5305_v0 }
0x12f7   : > { %4223 = vmatmul.mubr.f32.vlgmr.msra.gmra.mrb[20].mxu0 %v2914_v33 }
0x12f8   : > { %4641 = vmatpush3.bf16.msra.mxu0 %v4640_v61  ;;  %4257 = vmatprep.mubr.msk.f32.mxu0 %vm5306_vm0, %v5307_v1  ;;  %v3112_v1 = vld [vmem:[#allocation22 + $0x150] sm:$0xff] }
0x12f9   : > { %4642 = vmatprep.subr.bf16.mxu0 %v5305_v0  ;;  %v4655_v13 = vpack.c.bf16 %v3113_v10, %v3112_v1 }
0x12fc   : > { %4644 = vmatpush3.bf16.msra.mxu0 %v4643_v2 }
0x12fd   : > { %4645 = vmatprep.subr.bf16.mxu0 %v5305_v0 }
0x1300   : > { %4647 = vmatpush3.bf16.msra.mxu0 %v4646_v8 }
0x1301   : > { %4648 = vmatprep.subr.bf16.mxu0 %v5305_v0 }
0x1304   : > { %4650 = vmatpush3.bf16.msra.mxu0 %v4649_v15 }
0x1305   : > { %4651 = vmatprep.subr.bf16.mxu0 %v5305_v0 }
0x1308   : > { %4653 = vmatpush3.bf16.msra.mxu0 %v4652_v7 }
0x1309   : > { %4654 = vmatprep.subr.bf16.mxu0 %v5305_v0 }
0x130c   : > { %4656 = vmatpush3.bf16.msra.mxu0 %v4655_v13 }
0x130d   : > { %4657 = vmatprep.subr.bf16.mxu0 %v5305_v0 }
0x1310   : > { %4659 = vmatpush3.bf16.msra.mxu0 %v4658_v6 }
0x1311   : > { %4660 = vmatprep.subr.bf16.mxu0 %v5305_v0 }
0x1314   : > { %4662 = vmatpush3.bf16.msra.mxu0 %v4661_v18 }
0x1317   : > { %4258 = vmatmul.mubr.f32.vlgmr.msra.gmra.mrb[22].mxu0 %v3100_v25 }
0x13aa   : > { %v3000_v26 = vpop.f32.mrb[18].mxu0 }
0x13ab   : > { %v4189_v27 = vpop.f32.mrb[19].mxu0  ;;  %v3010_v21 = vadd.f32 %v3434_v20, %v3000_v26 }
0x13ca   : > { %v3095_v23 = vpop.f32.mrb[20].mxu0 }
0x13cb   : > { %v3099_v24 = vadd.f32 %v3095_v23, %v3010_v21  ;;  %v4224_v28 = vpop.f32.mrb[21].mxu0 }
0x13ea   : > { %v3184_v29 = vpop.f32.mrb[22].mxu0 }
0x13eb   : > { %v3188_v30 = vadd.f32 %v3184_v29, %v3099_v24  ;;  %v4259_v31 = vpop.f32.mrb[23].mxu0 }
0x13ed   : > { %v3189_v0 = vadd.f32 %v3188_v30, %v6201_v12 }
0x13ef   : > { %3190 = vst [vmem:[%s943_s25] sm:$0xff] %v3189_v0 }
0x13f0 PF: > { %s6386_s8 = sld [smem:[#allocation33_spill]] }
0x13f6   : > { %s43_s29 = sadd.s32 1, %s6386_s8  }
0x13f7   : > { %p40_p0 = scmp.ge.s32.totalorder %s43_s29, 4  }
0x13f9   :  { %42 = sbr.rel (!%p40_p0) target bundleno = 21 (0x15), region = 211 }
0x1400   :  { %3210 = vsyncpa [#allocation4], 1 }
0x1401   :  { %3212 = vsyncpa [#allocation4 + $0x1], 1 }
0x1402   :  { %3213 = vsyncpa [#allocation6], 1 }
0x1403   :  { %3214 = vsyncpa [#allocation9], 1 }
0x1404   :  { %3215 = vsyncpa [#allocation12], 1 }
0x1405   :  { %3216 = vsyncpa [#allocation15], 1 }
0x1406   :  { %3217 = vsyncpa [#allocation18], 1 }
0x1407   :  { %3218 = vsyncpa [#allocation21], 1 }
0x1408   :  { %3219 = vsyncpa [#allocation24], 1 }

</bundles_post_ra>
